<compile_context>
chip_gen: v7x
topology: tpu7x:2x2x1
jax: 0.10.0
libtpu: 0.0.40
codegen_flags: <defaults>
</compile_context>

<pallas_src>
import functools
import math

import jax
import jax.numpy as jnp
from jax import lax
from jax.experimental import pallas as pl
from jax.experimental.pallas import tpu as pltpu


def _round_up(x, m):
    return (x + m - 1) // m * m


def _layer_norm(v, g, b, true_d, eps=1e-5):
    # v is lane-padded with exact zeros beyond true_d, so sums over the padded
    # axis equal sums over the true feature axis; divide by true_d explicitly.
    mu = jnp.sum(v, axis=-1, keepdims=True) / true_d
    ms = jnp.sum(v * v, axis=-1, keepdims=True) / true_d
    var = ms - mu * mu
    return (v - mu) * lax.rsqrt(var + eps) * g + b


# ----------------------------------------------------------------------------
# Fused per-stream Pallas kernel: encoder stack + conv feature extractor
# ----------------------------------------------------------------------------

def _stream_kernel(x_ref,
                   wqkv_ref, bqkv_ref, wo_ref, bo_ref,
                   ln1g_ref, ln1b_ref, ln2g_ref, ln2b_ref,
                   w1_ref, b1_ref, w2_ref, b2_ref,
                   cw_ref, cb_ref, clen_ref,
                   o_ref,
                   *, num_heads, true_d, matmul_dtype):
    """Fused forward for one stream and one batch element (grid=(B,))."""
    L = x_ref.shape[1]
    dp = x_ref.shape[2]                      # padded d_model (multiple of 128)
    H = num_heads
    hp = wo_ref.shape[1]                     # H * head_slot (head_slot = 128)
    hs = hp // H
    dh = true_d // H
    scale = 1.0 / math.sqrt(dh)
    n_layers = wqkv_ref.shape[0]
    max_f = cw_ref.shape[0] // dp
    c_pad = cw_ref.shape[1]

    xf = x_ref[0]                            # (L, dp) f32, padded lanes == 0

    # ---- pre-LN encoder stack (weights VMEM-resident; tiny layer counts) ----
    # TODO(synk): for deep stacks stream weights via a grid axis / fori_loop.
    for l in range(n_layers):
        xn = _layer_norm(xf, ln1g_ref[l], ln1b_ref[l], true_d)
        qkv = jnp.dot(xn.astype(matmul_dtype), wqkv_ref[l],
                      preferred_element_type=jnp.float32) + bqkv_ref[l]
        heads = []
        for h in range(H):                   # static loop, 128-aligned slices
            qh = qkv[:, h * hs:(h + 1) * hs].astype(matmul_dtype)
            kh = qkv[:, hp + h * hs:hp + (h + 1) * hs].astype(matmul_dtype)
            vh = qkv[:, 2 * hp + h * hs:2 * hp + (h + 1) * hs].astype(matmul_dtype)
            s = jnp.einsum("qd,kd->qk", qh, kh,
                           preferred_element_type=jnp.float32) * scale
            s = s - jnp.max(s, axis=-1, keepdims=True)
            p = jnp.exp(s)
            p = p * pl.reciprocal(jnp.sum(p, axis=-1, keepdims=True),
                                  approx=False)
            heads.append(jnp.einsum("qk,kd->qd", p.astype(matmul_dtype), vh,
                                    preferred_element_type=jnp.float32))
        attn = jnp.concatenate(heads, axis=-1)          # (L, hp), aligned
        attn = jnp.dot(attn.astype(matmul_dtype), wo_ref[l],
                       preferred_element_type=jnp.float32) + bo_ref[l]
        xf = xf + attn

        xn = _layer_norm(xf, ln2g_ref[l], ln2b_ref[l], true_d)
        h1 = jnp.dot(xn.astype(matmul_dtype), w1_ref[l],
                     preferred_element_type=jnp.float32) + b1_ref[l]
        h1 = jax.nn.gelu(h1, approximate=True)
        xf = xf + jnp.dot(h1.astype(matmul_dtype), w2_ref[l],
                          preferred_element_type=jnp.float32) + b2_ref[l]

    # ---- fused multi-filter Conv1d + ReLU + global max-pool ----
    # One packed im2col matmul for ALL filter sizes.  Tap shifts are built with
    # pltpu.roll (XLU); wrap-around rows only land in invalid output positions,
    # which the per-column valid-length mask removes before the max.
    taps = [xf]
    for j in range(1, max_f):
        taps.append(pltpu.roll(xf, shift=L - j, axis=0))
    patches = jnp.concatenate(taps, axis=-1).astype(matmul_dtype)  # (L, max_f*dp)
    z = jnp.dot(patches, cw_ref[...],
                preferred_element_type=jnp.float32) + cb_ref[...]
    z = jnp.maximum(z, 0.0)                                        # ReLU
    row = lax.broadcasted_iota(jnp.int32, (L, c_pad), 0)
    z = jnp.where(row < clen_ref[...], z, 0.0)        # mask invalid rows (>=0)
    feat = jnp.max(z, axis=0, keepdims=True)          # (1, c_pad)
    # Lane/sublane-dense (8, 128) store; row 0 is the real feature vector.
    o_ref[...] = jnp.broadcast_to(feat[None], (1, 8, c_pad)).astype(o_ref.dtype)


def har_stream(x_pad, stack, conv, *, num_heads, true_d, matmul_dtype):
    """One pallas_call for a whole stream (encoder stack + conv features)."""
    B, L, dp = x_pad.shape
    c_pad = conv["w"].shape[1]

    args = [x_pad,
            stack["wqkv"], stack["bqkv"], stack["wo"], stack["bo"],
            stack["ln1_g"], stack["ln1_b"], stack["ln2_g"], stack["ln2_b"],
            stack["w1"], stack["b1"], stack["w2"], stack["b2"],
            conv["w"], conv["b"], conv["lens"]]

    def full_spec(a):
        # Full-array VMEM resident; constant index map => no re-DMA across b.
        return pl.BlockSpec(a.shape, lambda b, _n=a.ndim: (0,) * _n)

    in_specs = [pl.BlockSpec((1, L, dp), lambda b: (b, 0, 0))]
    in_specs += [full_spec(a) for a in args[1:]]

    kern = functools.partial(_stream_kernel, num_heads=num_heads,
                             true_d=true_d, matmul_dtype=matmul_dtype)
    out = pl.pallas_call(
        kern,
        out_shape=jax.ShapeDtypeStruct((B, 8, c_pad), jnp.float32),
        grid=(B,),
        in_specs=in_specs,
        out_specs=pl.BlockSpec((1, 8, c_pad), lambda b: (b, 0, 0)),
        compiler_params=pltpu.CompilerParams(
            dimension_semantics=("parallel",),
            vmem_limit_bytes=32 * 1024 * 1024),
    )(*args)
    return out[:, 0, :conv["c_total"]]                 # strip padding outside


# ----------------------------------------------------------------------------
# Parameter initialization (deterministic, synthetic) + lane-dense packing
# ----------------------------------------------------------------------------

def _linear_init(key, fan_in, fan_out):
    kw, kb = jax.random.split(key)
    lim = 1.0 / math.sqrt(fan_in)
    w = jax.random.uniform(kw, (fan_in, fan_out), jnp.float32, -lim, lim)
    b = jax.random.uniform(kb, (1, fan_out), jnp.float32, -lim, lim)
    return w, b


def init_encoder_stack(key, n_layers, d_model, n_heads, matmul_dtype):
    """Build a lane-padded, QKV-fused, head-slot-aligned stacked encoder."""
    d_ff = 4 * d_model
    dp = _round_up(d_model, 128)             # padded residual width
    fp = _round_up(d_ff, 128)                # padded FFN width
    dh = d_model // n_heads
    hs = _round_up(dh, 128)                  # 128-lane slot per head
    packed = []
    for k in jax.random.split(key, n_layers):
        keys = jax.random.split(k, 6)
        wq, bq = _linear_init(keys[0], d_model, d_model)
        wk, bk = _linear_init(keys[1], d_model, d_model)
        wv, bv = _linear_init(keys[2], d_model, d_model)
        wo, bo = _linear_init(keys[3], d_model, d_model)
        w1, b1 = _linear_init(keys[4], d_model, d_ff)
        w2, b2 = _linear_init(keys[5], d_ff, d_model)

        def head_cols(w, b):
            wp = jnp.pad(w.reshape(d_model, n_heads, dh),
                         ((0, dp - d_model), (0, 0), (0, hs - dh)))
            bp = jnp.pad(b.reshape(1, n_heads, dh),
                         ((0, 0), (0, 0), (0, hs - dh)))
            return wp.reshape(dp, n_heads * hs), bp.reshape(1, n_heads * hs)

        wqp, bqp = head_cols(wq, bq)
        wkp, bkp = head_cols(wk, bk)
        wvp, bvp = head_cols(wv, bv)
        p = {
            "wqkv": jnp.concatenate([wqp, wkp, wvp], axis=1),
            "bqkv": jnp.concatenate([bqp, bkp, bvp], axis=1),
            "wo": jnp.pad(wo.reshape(n_heads, dh, d_model),
                          ((0, 0), (0, hs - dh), (0, dp - d_model))
                          ).reshape(n_heads * hs, dp),
            "bo": jnp.pad(bo, ((0, 0), (0, dp - d_model))),
            "ln1_g": jnp.pad(jnp.ones((1, d_model), jnp.float32),
                             ((0, 0), (0, dp - d_model))),
            "ln1_b": jnp.zeros((1, dp), jnp.float32),
            "ln2_g": jnp.pad(jnp.ones((1, d_model), jnp.float32),
                             ((0, 0), (0, dp - d_model))),
            "ln2_b": jnp.zeros((1, dp), jnp.float32),
            "w1": jnp.pad(w1, ((0, dp - d_model), (0, fp - d_ff))),
            "b1": jnp.pad(b1, ((0, 0), (0, fp - d_ff))),
            "w2": jnp.pad(w2, ((0, fp - d_ff), (0, dp - d_model))),
            "b2": jnp.pad(b2, ((0, 0), (0, dp - d_model))),
        }
        packed.append(p)
    stack = {k: jnp.stack([p[k] for p in packed], axis=0) for k in packed[0]}
    for name in ("wqkv", "wo", "w1", "w2"):            # bf16 MXU staging
        stack[name] = stack[name].astype(matmul_dtype)
    return stack


def init_conv_bank(key, filter_sizes, c_in, c_out, dp, seq_len, matmul_dtype):
    """Pack all Conv1d filters into one lane-padded im2col weight.

    Row index = tap*dp + cin (matches in-kernel patches layout); filter i's
    output channels occupy columns [i*c_out, (i+1)*c_out) (PyTorch concat
    order); per-column valid length = seq_len - f + 1 for masked max-pooling.
    """
    convs = []
    for k, f in zip(jax.random.split(key, len(filter_sizes)), filter_sizes):
        kw, kb = jax.random.split(k)
        lim = 1.0 / math.sqrt(c_in * f)
        w = jax.random.uniform(kw, (f, c_in, c_out), jnp.float32, -lim, lim)
        b = jax.random.uniform(kb, (c_out,), jnp.float32, -lim, lim)
        convs.append((f, w, b))
    max_f = max(filter_sizes)
    c_total = c_out * len(filter_sizes)
    c_pad = _round_up(max(c_total, 128), 128)
    W = jnp.zeros((max_f * dp, c_pad), jnp.float32)
    B = jnp.zeros((1, c_pad), jnp.float32)
    lens = jnp.ones((1, c_pad), jnp.int32)
    off = 0
    for f, w, b in convs:
        blk = jnp.pad(w, ((0, 0), (0, dp - c_in), (0, 0))).reshape(f * dp, c_out)
        W = W.at[:f * dp, off:off + c_out].set(blk)
        B = B.at[0, off:off + c_out].set(b)
        lens = lens.at[0, off:off + c_out].set(seq_len - f + 1)
        off += c_out
    return dict(w=W.astype(matmul_dtype), b=B, lens=lens, c_total=c_total)


def init_gaussian_position(key, d_model, total_size, K):
    lim = math.sqrt(6.0 / (K + d_model))               # xavier-uniform
    emb = jax.random.uniform(key, (K, d_model), jnp.float32, -lim, lim)
    interval = total_size / K
    mu = (jnp.arange(K, dtype=jnp.float32) * interval)[None, :]   # (1, K)
    sigma = jnp.full((1, K), 50.0, jnp.float32)                   # (1, K)
    return dict(emb=emb, mu=mu, sigma=sigma)


def gaussian_pos_encoding(gp, total_size):
    # matches THAT normal_pdf: -(a*a)/(2*sigma) - log(sigma)/2, softmax over K
    pos = jnp.arange(total_size, dtype=jnp.float32)[:, None]      # (P, 1)
    a = pos - gp["mu"]                                            # (P, K)
    log_p = -(a * a) / (2.0 * gp["sigma"]) - jnp.log(gp["sigma"]) / 2.0
    pdfs = jax.nn.softmax(log_p, axis=1)
    return pdfs @ gp["emb"]                                       # (P, d_model)


def init_params(key, cfg):
    mxu = cfg["matmul_dtype"]
    keys = jax.random.split(key, 5)
    d_h, d_v = cfg["waves"], cfg["packets"]
    h_dp, v_dp = _round_up(d_h, 128), _round_up(d_v, 128)
    return {
        "gauss": init_gaussian_position(keys[0], d_h, cfg["packets"], cfg["K"]),
        "h_stack": init_encoder_stack(keys[1], cfg["hlayers"], d_h,
                                      cfg["hheads"], mxu),
        "v_stack": init_encoder_stack(keys[2], cfg["vlayers"], d_v,
                                      cfg["vheads"], mxu),
        # horizontal conv runs over L = packets; vertical over L = sub/antenna
        "h_conv": init_conv_bank(keys[3], cfg["filter_sizes"], d_h,
                                 cfg["kernel_num"], h_dp, cfg["packets"], mxu),
        "v_conv": init_conv_bank(keys[4], cfg["filter_sizes_v"], d_v,
                                 cfg["kernel_num_v"], v_dp,
                                 cfg["subcarriers_per_antenna"], mxu),
        "h_dp": h_dp,
        "v_dp": v_dp,
    }


# ----------------------------------------------------------------------------
# HARTrans forward
# ----------------------------------------------------------------------------

def _pad_lanes(x, dp):
    return jnp.pad(x, ((0, 0), (0, 0), (0, dp - x.shape[-1])))


def hartrans_forward(data, params, cfg):
    N, _, T, S = data.shape
    sample = cfg["sample"]

    # horizontal stream: average `sample` consecutive packets + Gaussian PE
    x = data.reshape(N, -1, sample, S)
    x = jnp.sum(x, axis=-2) / float(sample)              # (N, packets, waves)
    x = x + gaussian_pos_encoding(params["gauss"], cfg["packets"])[None]
    q_re = har_stream(_pad_lanes(x, params["h_dp"]),
                      params["h_stack"], params["h_conv"],
                      num_heads=cfg["hheads"], true_d=cfg["waves"],
                      matmul_dtype=cfg["matmul_dtype"])

    # vertical stream: sum over antennas; (packets, sub) -> (sub, packets)
    # transpose done once in the wrapper (layout-only HBM transform).
    y = data.reshape(N, cfg["packets"], cfg["antennas"],
                     cfg["subcarriers_per_antenna"])
    y = jnp.sum(y, axis=-2)                               # (N, packets, sub)
    y = jnp.swapaxes(y, -1, -2)                           # (N, sub, packets)
    v_re = har_stream(_pad_lanes(y, params["v_dp"]),
                      params["v_stack"], params["v_conv"],
                      num_heads=cfg["vheads"], true_d=cfg["packets"],
                      matmul_dtype=cfg["matmul_dtype"])

    # dropout = identity (eval); the outer F.relu is a no-op on ReLU'd
    # max-pooled features, so it is folded into the kernels.
    return jnp.concatenate([q_re, v_re], axis=1)


# ----------------------------------------------------------------------------
# Main
# ----------------------------------------------------------------------------

if __name__ == "__main__":
    # Small, shape-consistent configuration:
    #   waves == S, packets == T // sample, antennas * sub_per_ant == sample * S
    cfg = dict(
        N=2, T=16, S=32, sample=2,
        waves=32, packets=8, antennas=4, subcarriers_per_antenna=16,
        K=4,
        hlayers=2, hheads=4,
        vlayers=1, vheads=2,
        kernel_num=8, filter_sizes=(3, 5),
        kernel_num_v=4, filter_sizes_v=(2, 3),
        # bf16 MXU operand staging (f32 accumulate) per v6e/v7x review items;
        # set to jnp.float32 for exact-f32 validation runs.
        matmul_dtype=jnp.bfloat16,
    )

    data = jax.random.normal(jax.random.PRNGKey(0),
                             (cfg["N"], 1, cfg["T"], cfg["S"]),
                             dtype=jnp.float32)
    params = init_params(jax.random.PRNGKey(1), cfg)

    out = jax.block_until_ready(hartrans_forward(data, params, cfg))

    expected_feat = (cfg["kernel_num"] * len(cfg["filter_sizes"])
                     + cfg["kernel_num_v"] * len(cfg["filter_sizes_v"]))
    assert out.shape == (cfg["N"], expected_feat), out.shape
    assert bool(jnp.all(jnp.isfinite(out)))
    print("KERNEL_OK")
</pallas_src>

<mosaic_0001>
module attributes {stable_mosaic.version = 11 : i64} {
  func.func @_stream_kernel(%arg0: i32, %arg1: memref<1x8x128xf32, #tpu.memory_space<vmem>>, %arg2: memref<2x128x1536xbf16, #tpu.memory_space<vmem>>, %arg3: memref<2x1x1536xf32, #tpu.memory_space<vmem>>, %arg4: memref<2x512x128xbf16, #tpu.memory_space<vmem>>, %arg5: memref<2x1x128xf32, #tpu.memory_space<vmem>>, %arg6: memref<2x1x128xf32, #tpu.memory_space<vmem>>, %arg7: memref<2x1x128xf32, #tpu.memory_space<vmem>>, %arg8: memref<2x1x128xf32, #tpu.memory_space<vmem>>, %arg9: memref<2x1x128xf32, #tpu.memory_space<vmem>>, %arg10: memref<2x128x128xbf16, #tpu.memory_space<vmem>>, %arg11: memref<2x1x128xf32, #tpu.memory_space<vmem>>, %arg12: memref<2x128x128xbf16, #tpu.memory_space<vmem>>, %arg13: memref<2x1x128xf32, #tpu.memory_space<vmem>>, %arg14: memref<640x128xbf16, #tpu.memory_space<vmem>>, %arg15: memref<1x128xf32, #tpu.memory_space<vmem>>, %arg16: memref<1x128xi32, #tpu.memory_space<vmem>>, %arg17: memref<1x8x128xf32, #tpu.memory_space<vmem>>) attributes {dimension_semantics = [#tpu.dimension_semantics<parallel>], iteration_bounds = array<i64: 2>, scalar_prefetch = 0 : i64, scratch_operands = 0 : i64, tpu.core_type = #tpu.core_type<tc>, window_params = [{transform_indices = @transform_0, window_bounds = array<i64: 1, 8, 128>}, {pipeline_mode = #tpu.pipeline_mode<synchronous>, transform_indices = @transform_1, window_bounds = array<i64: 2, 128, 1536>}, {pipeline_mode = #tpu.pipeline_mode<synchronous>, transform_indices = @transform_2, window_bounds = array<i64: 2, 1, 1536>}, {pipeline_mode = #tpu.pipeline_mode<synchronous>, transform_indices = @transform_3, window_bounds = array<i64: 2, 512, 128>}, {pipeline_mode = #tpu.pipeline_mode<synchronous>, transform_indices = @transform_4, window_bounds = array<i64: 2, 1, 128>}, {pipeline_mode = #tpu.pipeline_mode<synchronous>, transform_indices = @transform_5, window_bounds = array<i64: 2, 1, 128>}, {pipeline_mode = #tpu.pipeline_mode<synchronous>, transform_indices = @transform_6, window_bounds = array<i64: 2, 1, 128>}, {pipeline_mode = #tpu.pipeline_mode<synchronous>, transform_indices = @transform_7, window_bounds = array<i64: 2, 1, 128>}, {pipeline_mode = #tpu.pipeline_mode<synchronous>, transform_indices = @transform_8, window_bounds = array<i64: 2, 1, 128>}, {pipeline_mode = #tpu.pipeline_mode<synchronous>, transform_indices = @transform_9, window_bounds = array<i64: 2, 128, 128>}, {pipeline_mode = #tpu.pipeline_mode<synchronous>, transform_indices = @transform_10, window_bounds = array<i64: 2, 1, 128>}, {pipeline_mode = #tpu.pipeline_mode<synchronous>, transform_indices = @transform_11, window_bounds = array<i64: 2, 128, 128>}, {pipeline_mode = #tpu.pipeline_mode<synchronous>, transform_indices = @transform_12, window_bounds = array<i64: 2, 1, 128>}, {pipeline_mode = #tpu.pipeline_mode<synchronous>, transform_indices = @transform_13, window_bounds = array<i64: 640, 128>}, {pipeline_mode = #tpu.pipeline_mode<synchronous>, transform_indices = @transform_14, window_bounds = array<i64: 1, 128>}, {pipeline_mode = #tpu.pipeline_mode<synchronous>, transform_indices = @transform_15, window_bounds = array<i64: 1, 128>}, {transform_indices = @transform_16, window_bounds = array<i64: 1, 8, 128>}]} {
    %c0 = arith.constant 0 : index
    %c0_0 = arith.constant 0 : index
    %c0_1 = arith.constant 0 : index
    %0 = vector.load %arg1[%c0, %c0_0, %c0_1] : memref<1x8x128xf32, #tpu.memory_space<vmem>>, vector<1x8x128xf32>
    %1 = vector.shape_cast %0 : vector<1x8x128xf32> to vector<8x128xf32>
    %c0_2 = arith.constant 0 : index
    %c0_3 = arith.constant 0 : index
    %c0_4 = arith.constant 0 : index
    %2 = vector.load %arg6[%c0_2, %c0_3, %c0_4] : memref<2x1x128xf32, #tpu.memory_space<vmem>>, vector<1x1x128xf32>
    %3 = vector.shape_cast %2 : vector<1x1x128xf32> to vector<1x128xf32>
    %c0_5 = arith.constant 0 : index
    %c0_6 = arith.constant 0 : index
    %c0_7 = arith.constant 0 : index
    %4 = vector.load %arg7[%c0_5, %c0_6, %c0_7] : memref<2x1x128xf32, #tpu.memory_space<vmem>>, vector<1x1x128xf32>
    %5 = vector.shape_cast %4 : vector<1x1x128xf32> to vector<1x128xf32>
    %cst = arith.constant dense<0.000000e+00> : vector<8xf32>
    %6 = vector.multi_reduction <add>, %1, %cst [1] : vector<8x128xf32> to vector<8xf32>
    %7 = vector.shape_cast %6 : vector<8xf32> to vector<8x1xf32>
    %cst_8 = arith.constant 3.200000e+01 : f32
    %8 = vector.broadcast %cst_8 : f32 to vector<8x1xf32>
    %9 = arith.divf %7, %8 : vector<8x1xf32>
    %10 = arith.mulf %1, %1 : vector<8x128xf32>
    %cst_9 = arith.constant dense<0.000000e+00> : vector<8xf32>
    %11 = vector.multi_reduction <add>, %10, %cst_9 [1] : vector<8x128xf32> to vector<8xf32>
    %12 = vector.shape_cast %11 : vector<8xf32> to vector<8x1xf32>
    %cst_10 = arith.constant 3.200000e+01 : f32
    %13 = vector.broadcast %cst_10 : f32 to vector<8x1xf32>
    %14 = arith.divf %12, %13 : vector<8x1xf32>
    %15 = arith.mulf %9, %9 : vector<8x1xf32>
    %16 = arith.subf %14, %15 : vector<8x1xf32>
    %17 = vector.broadcast %9 : vector<8x1xf32> to vector<8x128xf32>
    %18 = arith.subf %1, %17 : vector<8x128xf32>
    %cst_11 = arith.constant 9.99999974E-6 : f32
    %19 = vector.broadcast %cst_11 : f32 to vector<8x1xf32>
    %20 = arith.addf %16, %19 : vector<8x1xf32>
    %21 = math.rsqrt %20 : vector<8x1xf32>
    %22 = vector.broadcast %21 : vector<8x1xf32> to vector<8x128xf32>
    %23 = arith.mulf %18, %22 : vector<8x128xf32>
    %24 = vector.broadcast %3 : vector<1x128xf32> to vector<8x128xf32>
    %25 = arith.mulf %23, %24 : vector<8x128xf32>
    %26 = vector.broadcast %5 : vector<1x128xf32> to vector<8x128xf32>
    %27 = arith.addf %25, %26 : vector<8x128xf32>
    %28 = arith.truncf %27 : vector<8x128xf32> to vector<8x128xbf16>
    %c0_12 = arith.constant 0 : index
    %c0_13 = arith.constant 0 : index
    %c0_14 = arith.constant 0 : index
    %29 = vector.load %arg2[%c0_12, %c0_13, %c0_14] : memref<2x128x1536xbf16, #tpu.memory_space<vmem>>, vector<1x128x1536xbf16>
    %30 = vector.shape_cast %29 : vector<1x128x1536xbf16> to vector<128x1536xbf16>
    %cst_15 = arith.constant dense<0.000000e+00> : vector<8x1536xf32>
    %31 = tpu.matmul %28, %30, %cst_15 {dimension_numbers = #tpu.dot_dimension_numbers<[1], [0], [0], [1], [0, 0, 1, 1], [], []>} : vector<8x128xbf16>, vector<128x1536xbf16>, vector<8x1536xf32> -> vector<8x1536xf32>
    %c0_16 = arith.constant 0 : index
    %c0_17 = arith.constant 0 : index
    %c0_18 = arith.constant 0 : index
    %32 = vector.load %arg3[%c0_16, %c0_17, %c0_18] : memref<2x1x1536xf32, #tpu.memory_space<vmem>>, vector<1x1x1536xf32>
    %33 = vector.shape_cast %32 : vector<1x1x1536xf32> to vector<1x1536xf32>
    %34 = vector.broadcast %33 : vector<1x1536xf32> to vector<8x1536xf32>
    %35 = arith.addf %31, %34 : vector<8x1536xf32>
    %36 = vector.extract_strided_slice %35 {offsets = [0, 0], sizes = [8, 128], strides = [1, 1]} : vector<8x1536xf32> to vector<8x128xf32>
    %37 = arith.truncf %36 : vector<8x128xf32> to vector<8x128xbf16>
    %38 = vector.extract_strided_slice %35 {offsets = [0, 512], sizes = [8, 128], strides = [1, 1]} : vector<8x1536xf32> to vector<8x128xf32>
    %39 = arith.truncf %38 : vector<8x128xf32> to vector<8x128xbf16>
    %40 = vector.extract_strided_slice %35 {offsets = [0, 1024], sizes = [8, 128], strides = [1, 1]} : vector<8x1536xf32> to vector<8x128xf32>
    %41 = arith.truncf %40 : vector<8x128xf32> to vector<8x128xbf16>
    "tpu.trace_start"() <{level = 10 : i32, message = "qd,kd->qk"}> : () -> ()
    %cst_19 = arith.constant dense<0.000000e+00> : vector<8x8xf32>
    %42 = tpu.matmul %37, %39, %cst_19 {dimension_numbers = #tpu.dot_dimension_numbers<[1], [1], [0], [0], [0, 0, 1, 0], [], []>} : vector<8x128xbf16>, vector<8x128xbf16>, vector<8x8xf32> -> vector<8x8xf32>
    "tpu.trace_stop"() : () -> ()
    %cst_20 = arith.constant 0.353553385 : f32
    %43 = vector.broadcast %cst_20 : f32 to vector<8x8xf32>
    %44 = arith.mulf %42, %43 : vector<8x8xf32>
    %cst_21 = arith.constant dense<0xFF800000> : vector<8xf32>
    %45 = vector.multi_reduction <maximumf>, %44, %cst_21 [1] : vector<8x8xf32> to vector<8xf32>
    %46 = vector.shape_cast %45 : vector<8xf32> to vector<8x1xf32>
    %47 = vector.broadcast %46 : vector<8x1xf32> to vector<8x8xf32>
    %48 = arith.subf %44, %47 : vector<8x8xf32>
    %49 = math.exp %48 : vector<8x8xf32>
    %cst_22 = arith.constant dense<0.000000e+00> : vector<8xf32>
    %50 = vector.multi_reduction <add>, %49, %cst_22 [1] : vector<8x8xf32> to vector<8xf32>
    %51 = vector.shape_cast %50 : vector<8xf32> to vector<8x1xf32>
    %52 = tpu.reciprocal %51 : vector<8x1xf32> -> vector<8x1xf32>
    %53 = vector.broadcast %52 : vector<8x1xf32> to vector<8x8xf32>
    %54 = arith.mulf %49, %53 : vector<8x8xf32>
    %55 = arith.truncf %54 : vector<8x8xf32> to vector<8x8xbf16>
    "tpu.trace_start"() <{level = 10 : i32, message = "qk,kd->qd"}> : () -> ()
    %cst_23 = arith.constant dense<0.000000e+00> : vector<8x128xf32>
    %56 = tpu.matmul %55, %41, %cst_23 {dimension_numbers = #tpu.dot_dimension_numbers<[1], [0], [0], [1], [0, 0, 1, 1], [], []>} : vector<8x8xbf16>, vector<8x128xbf16>, vector<8x128xf32> -> vector<8x128xf32>
    "tpu.trace_stop"() : () -> ()
    %57 = vector.extract_strided_slice %35 {offsets = [0, 128], sizes = [8, 128], strides = [1, 1]} : vector<8x1536xf32> to vector<8x128xf32>
    %58 = arith.truncf %57 : vector<8x128xf32> to vector<8x128xbf16>
    %59 = vector.extract_strided_slice %35 {offsets = [0, 640], sizes = [8, 128], strides = [1, 1]} : vector<8x1536xf32> to vector<8x128xf32>
    %60 = arith.truncf %59 : vector<8x128xf32> to vector<8x128xbf16>
    %61 = vector.extract_strided_slice %35 {offsets = [0, 1152], sizes = [8, 128], strides = [1, 1]} : vector<8x1536xf32> to vector<8x128xf32>
    %62 = arith.truncf %61 : vector<8x128xf32> to vector<8x128xbf16>
    "tpu.trace_start"() <{level = 10 : i32, message = "qd,kd->qk"}> : () -> ()
    %cst_24 = arith.constant dense<0.000000e+00> : vector<8x8xf32>
    %63 = tpu.matmul %58, %60, %cst_24 {dimension_numbers = #tpu.dot_dimension_numbers<[1], [1], [0], [0], [0, 0, 1, 0], [], []>} : vector<8x128xbf16>, vector<8x128xbf16>, vector<8x8xf32> -> vector<8x8xf32>
    "tpu.trace_stop"() : () -> ()
    %cst_25 = arith.constant 0.353553385 : f32
    %64 = vector.broadcast %cst_25 : f32 to vector<8x8xf32>
    %65 = arith.mulf %63, %64 : vector<8x8xf32>
    %cst_26 = arith.constant dense<0xFF800000> : vector<8xf32>
    %66 = vector.multi_reduction <maximumf>, %65, %cst_26 [1] : vector<8x8xf32> to vector<8xf32>
    %67 = vector.shape_cast %66 : vector<8xf32> to vector<8x1xf32>
    %68 = vector.broadcast %67 : vector<8x1xf32> to vector<8x8xf32>
    %69 = arith.subf %65, %68 : vector<8x8xf32>
    %70 = math.exp %69 : vector<8x8xf32>
    %cst_27 = arith.constant dense<0.000000e+00> : vector<8xf32>
    %71 = vector.multi_reduction <add>, %70, %cst_27 [1] : vector<8x8xf32> to vector<8xf32>
    %72 = vector.shape_cast %71 : vector<8xf32> to vector<8x1xf32>
    %73 = tpu.reciprocal %72 : vector<8x1xf32> -> vector<8x1xf32>
    %74 = vector.broadcast %73 : vector<8x1xf32> to vector<8x8xf32>
    %75 = arith.mulf %70, %74 : vector<8x8xf32>
    %76 = arith.truncf %75 : vector<8x8xf32> to vector<8x8xbf16>
    "tpu.trace_start"() <{level = 10 : i32, message = "qk,kd->qd"}> : () -> ()
    %cst_28 = arith.constant dense<0.000000e+00> : vector<8x128xf32>
    %77 = tpu.matmul %76, %62, %cst_28 {dimension_numbers = #tpu.dot_dimension_numbers<[1], [0], [0], [1], [0, 0, 1, 1], [], []>} : vector<8x8xbf16>, vector<8x128xbf16>, vector<8x128xf32> -> vector<8x128xf32>
    "tpu.trace_stop"() : () -> ()
    %78 = vector.extract_strided_slice %35 {offsets = [0, 256], sizes = [8, 128], strides = [1, 1]} : vector<8x1536xf32> to vector<8x128xf32>
    %79 = arith.truncf %78 : vector<8x128xf32> to vector<8x128xbf16>
    %80 = vector.extract_strided_slice %35 {offsets = [0, 768], sizes = [8, 128], strides = [1, 1]} : vector<8x1536xf32> to vector<8x128xf32>
    %81 = arith.truncf %80 : vector<8x128xf32> to vector<8x128xbf16>
    %82 = vector.extract_strided_slice %35 {offsets = [0, 1280], sizes = [8, 128], strides = [1, 1]} : vector<8x1536xf32> to vector<8x128xf32>
    %83 = arith.truncf %82 : vector<8x128xf32> to vector<8x128xbf16>
    "tpu.trace_start"() <{level = 10 : i32, message = "qd,kd->qk"}> : () -> ()
    %cst_29 = arith.constant dense<0.000000e+00> : vector<8x8xf32>
    %84 = tpu.matmul %79, %81, %cst_29 {dimension_numbers = #tpu.dot_dimension_numbers<[1], [1], [0], [0], [0, 0, 1, 0], [], []>} : vector<8x128xbf16>, vector<8x128xbf16>, vector<8x8xf32> -> vector<8x8xf32>
    "tpu.trace_stop"() : () -> ()
    %cst_30 = arith.constant 0.353553385 : f32
    %85 = vector.broadcast %cst_30 : f32 to vector<8x8xf32>
    %86 = arith.mulf %84, %85 : vector<8x8xf32>
    %cst_31 = arith.constant dense<0xFF800000> : vector<8xf32>
    %87 = vector.multi_reduction <maximumf>, %86, %cst_31 [1] : vector<8x8xf32> to vector<8xf32>
    %88 = vector.shape_cast %87 : vector<8xf32> to vector<8x1xf32>
    %89 = vector.broadcast %88 : vector<8x1xf32> to vector<8x8xf32>
    %90 = arith.subf %86, %89 : vector<8x8xf32>
    %91 = math.exp %90 : vector<8x8xf32>
    %cst_32 = arith.constant dense<0.000000e+00> : vector<8xf32>
    %92 = vector.multi_reduction <add>, %91, %cst_32 [1] : vector<8x8xf32> to vector<8xf32>
    %93 = vector.shape_cast %92 : vector<8xf32> to vector<8x1xf32>
    %94 = tpu.reciprocal %93 : vector<8x1xf32> -> vector<8x1xf32>
    %95 = vector.broadcast %94 : vector<8x1xf32> to vector<8x8xf32>
    %96 = arith.mulf %91, %95 : vector<8x8xf32>
    %97 = arith.truncf %96 : vector<8x8xf32> to vector<8x8xbf16>
    "tpu.trace_start"() <{level = 10 : i32, message = "qk,kd->qd"}> : () -> ()
    %cst_33 = arith.constant dense<0.000000e+00> : vector<8x128xf32>
    %98 = tpu.matmul %97, %83, %cst_33 {dimension_numbers = #tpu.dot_dimension_numbers<[1], [0], [0], [1], [0, 0, 1, 1], [], []>} : vector<8x8xbf16>, vector<8x128xbf16>, vector<8x128xf32> -> vector<8x128xf32>
    "tpu.trace_stop"() : () -> ()
    %99 = vector.extract_strided_slice %35 {offsets = [0, 384], sizes = [8, 128], strides = [1, 1]} : vector<8x1536xf32> to vector<8x128xf32>
    %100 = arith.truncf %99 : vector<8x128xf32> to vector<8x128xbf16>
    %101 = vector.extract_strided_slice %35 {offsets = [0, 896], sizes = [8, 128], strides = [1, 1]} : vector<8x1536xf32> to vector<8x128xf32>
    %102 = arith.truncf %101 : vector<8x128xf32> to vector<8x128xbf16>
    %103 = vector.extract_strided_slice %35 {offsets = [0, 1408], sizes = [8, 128], strides = [1, 1]} : vector<8x1536xf32> to vector<8x128xf32>
    %104 = arith.truncf %103 : vector<8x128xf32> to vector<8x128xbf16>
    "tpu.trace_start"() <{level = 10 : i32, message = "qd,kd->qk"}> : () -> ()
    %cst_34 = arith.constant dense<0.000000e+00> : vector<8x8xf32>
    %105 = tpu.matmul %100, %102, %cst_34 {dimension_numbers = #tpu.dot_dimension_numbers<[1], [1], [0], [0], [0, 0, 1, 0], [], []>} : vector<8x128xbf16>, vector<8x128xbf16>, vector<8x8xf32> -> vector<8x8xf32>
    "tpu.trace_stop"() : () -> ()
    %cst_35 = arith.constant 0.353553385 : f32
    %106 = vector.broadcast %cst_35 : f32 to vector<8x8xf32>
    %107 = arith.mulf %105, %106 : vector<8x8xf32>
    %cst_36 = arith.constant dense<0xFF800000> : vector<8xf32>
    %108 = vector.multi_reduction <maximumf>, %107, %cst_36 [1] : vector<8x8xf32> to vector<8xf32>
    %109 = vector.shape_cast %108 : vector<8xf32> to vector<8x1xf32>
    %110 = vector.broadcast %109 : vector<8x1xf32> to vector<8x8xf32>
    %111 = arith.subf %107, %110 : vector<8x8xf32>
    %112 = math.exp %111 : vector<8x8xf32>
    %cst_37 = arith.constant dense<0.000000e+00> : vector<8xf32>
    %113 = vector.multi_reduction <add>, %112, %cst_37 [1] : vector<8x8xf32> to vector<8xf32>
    %114 = vector.shape_cast %113 : vector<8xf32> to vector<8x1xf32>
    %115 = tpu.reciprocal %114 : vector<8x1xf32> -> vector<8x1xf32>
    %116 = vector.broadcast %115 : vector<8x1xf32> to vector<8x8xf32>
    %117 = arith.mulf %112, %116 : vector<8x8xf32>
    %118 = arith.truncf %117 : vector<8x8xf32> to vector<8x8xbf16>
    "tpu.trace_start"() <{level = 10 : i32, message = "qk,kd->qd"}> : () -> ()
    %cst_38 = arith.constant dense<0.000000e+00> : vector<8x128xf32>
    %119 = tpu.matmul %118, %104, %cst_38 {dimension_numbers = #tpu.dot_dimension_numbers<[1], [0], [0], [1], [0, 0, 1, 1], [], []>} : vector<8x8xbf16>, vector<8x128xbf16>, vector<8x128xf32> -> vector<8x128xf32>
    "tpu.trace_stop"() : () -> ()
    %120 = tpu.concatenate %56, %77, %98, %119 in 1 : vector<8x128xf32>, vector<8x128xf32>, vector<8x128xf32>, vector<8x128xf32> -> vector<8x512xf32>
    %121 = arith.truncf %120 : vector<8x512xf32> to vector<8x512xbf16>
    %c0_39 = arith.constant 0 : index
    %c0_40 = arith.constant 0 : index
    %c0_41 = arith.constant 0 : index
    %122 = vector.load %arg4[%c0_39, %c0_40, %c0_41] : memref<2x512x128xbf16, #tpu.memory_space<vmem>>, vector<1x512x128xbf16>
    %123 = vector.shape_cast %122 : vector<1x512x128xbf16> to vector<512x128xbf16>
    %cst_42 = arith.constant dense<0.000000e+00> : vector<8x128xf32>
    %124 = tpu.matmul %121, %123, %cst_42 {dimension_numbers = #tpu.dot_dimension_numbers<[1], [0], [0], [1], [0, 0, 1, 1], [], []>} : vector<8x512xbf16>, vector<512x128xbf16>, vector<8x128xf32> -> vector<8x128xf32>
    %c0_43 = arith.constant 0 : index
    %c0_44 = arith.constant 0 : index
    %c0_45 = arith.constant 0 : index
    %125 = vector.load %arg5[%c0_43, %c0_44, %c0_45] : memref<2x1x128xf32, #tpu.memory_space<vmem>>, vector<1x1x128xf32>
    %126 = vector.shape_cast %125 : vector<1x1x128xf32> to vector<1x128xf32>
    %127 = vector.broadcast %126 : vector<1x128xf32> to vector<8x128xf32>
    %128 = arith.addf %124, %127 : vector<8x128xf32>
    %129 = arith.addf %1, %128 : vector<8x128xf32>
    %c0_46 = arith.constant 0 : index
    %c0_47 = arith.constant 0 : index
    %c0_48 = arith.constant 0 : index
    %130 = vector.load %arg8[%c0_46, %c0_47, %c0_48] : memref<2x1x128xf32, #tpu.memory_space<vmem>>, vector<1x1x128xf32>
    %131 = vector.shape_cast %130 : vector<1x1x128xf32> to vector<1x128xf32>
    %c0_49 = arith.constant 0 : index
    %c0_50 = arith.constant 0 : index
    %c0_51 = arith.constant 0 : index
    %132 = vector.load %arg9[%c0_49, %c0_50, %c0_51] : memref<2x1x128xf32, #tpu.memory_space<vmem>>, vector<1x1x128xf32>
    %133 = vector.shape_cast %132 : vector<1x1x128xf32> to vector<1x128xf32>
    %cst_52 = arith.constant dense<0.000000e+00> : vector<8xf32>
    %134 = vector.multi_reduction <add>, %129, %cst_52 [1] : vector<8x128xf32> to vector<8xf32>
    %135 = vector.shape_cast %134 : vector<8xf32> to vector<8x1xf32>
    %cst_53 = arith.constant 3.200000e+01 : f32
    %136 = vector.broadcast %cst_53 : f32 to vector<8x1xf32>
    %137 = arith.divf %135, %136 : vector<8x1xf32>
    %138 = arith.mulf %129, %129 : vector<8x128xf32>
    %cst_54 = arith.constant dense<0.000000e+00> : vector<8xf32>
    %139 = vector.multi_reduction <add>, %138, %cst_54 [1] : vector<8x128xf32> to vector<8xf32>
    %140 = vector.shape_cast %139 : vector<8xf32> to vector<8x1xf32>
    %cst_55 = arith.constant 3.200000e+01 : f32
    %141 = vector.broadcast %cst_55 : f32 to vector<8x1xf32>
    %142 = arith.divf %140, %141 : vector<8x1xf32>
    %143 = arith.mulf %137, %137 : vector<8x1xf32>
    %144 = arith.subf %142, %143 : vector<8x1xf32>
    %145 = vector.broadcast %137 : vector<8x1xf32> to vector<8x128xf32>
    %146 = arith.subf %129, %145 : vector<8x128xf32>
    %cst_56 = arith.constant 9.99999974E-6 : f32
    %147 = vector.broadcast %cst_56 : f32 to vector<8x1xf32>
    %148 = arith.addf %144, %147 : vector<8x1xf32>
    %149 = math.rsqrt %148 : vector<8x1xf32>
    %150 = vector.broadcast %149 : vector<8x1xf32> to vector<8x128xf32>
    %151 = arith.mulf %146, %150 : vector<8x128xf32>
    %152 = vector.broadcast %131 : vector<1x128xf32> to vector<8x128xf32>
    %153 = arith.mulf %151, %152 : vector<8x128xf32>
    %154 = vector.broadcast %133 : vector<1x128xf32> to vector<8x128xf32>
    %155 = arith.addf %153, %154 : vector<8x128xf32>
    %156 = arith.truncf %155 : vector<8x128xf32> to vector<8x128xbf16>
    %c0_57 = arith.constant 0 : index
    %c0_58 = arith.constant 0 : index
    %c0_59 = arith.constant 0 : index
    %157 = vector.load %arg10[%c0_57, %c0_58, %c0_59] : memref<2x128x128xbf16, #tpu.memory_space<vmem>>, vector<1x128x128xbf16>
    %158 = vector.shape_cast %157 : vector<1x128x128xbf16> to vector<128x128xbf16>
    %cst_60 = arith.constant dense<0.000000e+00> : vector<8x128xf32>
    %159 = tpu.matmul %156, %158, %cst_60 {dimension_numbers = #tpu.dot_dimension_numbers<[1], [0], [0], [1], [0, 0, 1, 1], [], []>} : vector<8x128xbf16>, vector<128x128xbf16>, vector<8x128xf32> -> vector<8x128xf32>
    %c0_61 = arith.constant 0 : index
    %c0_62 = arith.constant 0 : index
    %c0_63 = arith.constant 0 : index
    %160 = vector.load %arg11[%c0_61, %c0_62, %c0_63] : memref<2x1x128xf32, #tpu.memory_space<vmem>>, vector<1x1x128xf32>
    %161 = vector.shape_cast %160 : vector<1x1x128xf32> to vector<1x128xf32>
    %162 = vector.broadcast %161 : vector<1x128xf32> to vector<8x128xf32>
    %163 = arith.addf %159, %162 : vector<8x128xf32>
    %164 = arith.mulf %163, %163 : vector<8x128xf32>
    %165 = arith.mulf %163, %164 : vector<8x128xf32>
    %cst_64 = arith.constant 4.471500e-02 : f32
    %166 = vector.broadcast %cst_64 : f32 to vector<8x128xf32>
    %167 = arith.mulf %166, %165 : vector<8x128xf32>
    %168 = arith.addf %163, %167 : vector<8x128xf32>
    %cst_65 = arith.constant 0.797884583 : f32
    %169 = vector.broadcast %cst_65 : f32 to vector<8x128xf32>
    %170 = arith.mulf %169, %168 : vector<8x128xf32>
    %171 = math.tanh %170 : vector<8x128xf32>
    %cst_66 = arith.constant 1.000000e+00 : f32
    %172 = vector.broadcast %cst_66 : f32 to vector<8x128xf32>
    %173 = arith.addf %172, %171 : vector<8x128xf32>
    %cst_67 = arith.constant 5.000000e-01 : f32
    %174 = vector.broadcast %cst_67 : f32 to vector<8x128xf32>
    %175 = arith.mulf %174, %173 : vector<8x128xf32>
    %176 = arith.mulf %163, %175 : vector<8x128xf32>
    %177 = arith.truncf %176 : vector<8x128xf32> to vector<8x128xbf16>
    %c0_68 = arith.constant 0 : index
    %c0_69 = arith.constant 0 : index
    %c0_70 = arith.constant 0 : index
    %178 = vector.load %arg12[%c0_68, %c0_69, %c0_70] : memref<2x128x128xbf16, #tpu.memory_space<vmem>>, vector<1x128x128xbf16>
    %179 = vector.shape_cast %178 : vector<1x128x128xbf16> to vector<128x128xbf16>
    %cst_71 = arith.constant dense<0.000000e+00> : vector<8x128xf32>
    %180 = tpu.matmul %177, %179, %cst_71 {dimension_numbers = #tpu.dot_dimension_numbers<[1], [0], [0], [1], [0, 0, 1, 1], [], []>} : vector<8x128xbf16>, vector<128x128xbf16>, vector<8x128xf32> -> vector<8x128xf32>
    %181 = arith.addf %129, %180 : vector<8x128xf32>
    %c0_72 = arith.constant 0 : index
    %c0_73 = arith.constant 0 : index
    %c0_74 = arith.constant 0 : index
    %182 = vector.load %arg13[%c0_72, %c0_73, %c0_74] : memref<2x1x128xf32, #tpu.memory_space<vmem>>, vector<1x1x128xf32>
    %183 = vector.shape_cast %182 : vector<1x1x128xf32> to vector<1x128xf32>
    %184 = vector.broadcast %183 : vector<1x128xf32> to vector<8x128xf32>
    %185 = arith.addf %181, %184 : vector<8x128xf32>
    %c1 = arith.constant 1 : index
    %c0_75 = arith.constant 0 : index
    %c0_76 = arith.constant 0 : index
    %186 = vector.load %arg6[%c1, %c0_75, %c0_76] : memref<2x1x128xf32, #tpu.memory_space<vmem>>, vector<1x1x128xf32>
    %187 = vector.shape_cast %186 : vector<1x1x128xf32> to vector<1x128xf32>
    %c1_77 = arith.constant 1 : index
    %c0_78 = arith.constant 0 : index
    %c0_79 = arith.constant 0 : index
    %188 = vector.load %arg7[%c1_77, %c0_78, %c0_79] : memref<2x1x128xf32, #tpu.memory_space<vmem>>, vector<1x1x128xf32>
    %189 = vector.shape_cast %188 : vector<1x1x128xf32> to vector<1x128xf32>
    %cst_80 = arith.constant dense<0.000000e+00> : vector<8xf32>
    %190 = vector.multi_reduction <add>, %185, %cst_80 [1] : vector<8x128xf32> to vector<8xf32>
    %191 = vector.shape_cast %190 : vector<8xf32> to vector<8x1xf32>
    %cst_81 = arith.constant 3.200000e+01 : f32
    %192 = vector.broadcast %cst_81 : f32 to vector<8x1xf32>
    %193 = arith.divf %191, %192 : vector<8x1xf32>
    %194 = arith.mulf %185, %185 : vector<8x128xf32>
    %cst_82 = arith.constant dense<0.000000e+00> : vector<8xf32>
    %195 = vector.multi_reduction <add>, %194, %cst_82 [1] : vector<8x128xf32> to vector<8xf32>
    %196 = vector.shape_cast %195 : vector<8xf32> to vector<8x1xf32>
    %cst_83 = arith.constant 3.200000e+01 : f32
    %197 = vector.broadcast %cst_83 : f32 to vector<8x1xf32>
    %198 = arith.divf %196, %197 : vector<8x1xf32>
    %199 = arith.mulf %193, %193 : vector<8x1xf32>
    %200 = arith.subf %198, %199 : vector<8x1xf32>
    %201 = vector.broadcast %193 : vector<8x1xf32> to vector<8x128xf32>
    %202 = arith.subf %185, %201 : vector<8x128xf32>
    %cst_84 = arith.constant 9.99999974E-6 : f32
    %203 = vector.broadcast %cst_84 : f32 to vector<8x1xf32>
    %204 = arith.addf %200, %203 : vector<8x1xf32>
    %205 = math.rsqrt %204 : vector<8x1xf32>
    %206 = vector.broadcast %205 : vector<8x1xf32> to vector<8x128xf32>
    %207 = arith.mulf %202, %206 : vector<8x128xf32>
    %208 = vector.broadcast %187 : vector<1x128xf32> to vector<8x128xf32>
    %209 = arith.mulf %207, %208 : vector<8x128xf32>
    %210 = vector.broadcast %189 : vector<1x128xf32> to vector<8x128xf32>
    %211 = arith.addf %209, %210 : vector<8x128xf32>
    %212 = arith.truncf %211 : vector<8x128xf32> to vector<8x128xbf16>
    %c1_85 = arith.constant 1 : index
    %c0_86 = arith.constant 0 : index
    %c0_87 = arith.constant 0 : index
    %213 = vector.load %arg2[%c1_85, %c0_86, %c0_87] : memref<2x128x1536xbf16, #tpu.memory_space<vmem>>, vector<1x128x1536xbf16>
    %214 = vector.shape_cast %213 : vector<1x128x1536xbf16> to vector<128x1536xbf16>
    %cst_88 = arith.constant dense<0.000000e+00> : vector<8x1536xf32>
    %215 = tpu.matmul %212, %214, %cst_88 {dimension_numbers = #tpu.dot_dimension_numbers<[1], [0], [0], [1], [0, 0, 1, 1], [], []>} : vector<8x128xbf16>, vector<128x1536xbf16>, vector<8x1536xf32> -> vector<8x1536xf32>
    %c1_89 = arith.constant 1 : index
    %c0_90 = arith.constant 0 : index
    %c0_91 = arith.constant 0 : index
    %216 = vector.load %arg3[%c1_89, %c0_90, %c0_91] : memref<2x1x1536xf32, #tpu.memory_space<vmem>>, vector<1x1x1536xf32>
    %217 = vector.shape_cast %216 : vector<1x1x1536xf32> to vector<1x1536xf32>
    %218 = vector.broadcast %217 : vector<1x1536xf32> to vector<8x1536xf32>
    %219 = arith.addf %215, %218 : vector<8x1536xf32>
    %220 = vector.extract_strided_slice %219 {offsets = [0, 0], sizes = [8, 128], strides = [1, 1]} : vector<8x1536xf32> to vector<8x128xf32>
    %221 = arith.truncf %220 : vector<8x128xf32> to vector<8x128xbf16>
    %222 = vector.extract_strided_slice %219 {offsets = [0, 512], sizes = [8, 128], strides = [1, 1]} : vector<8x1536xf32> to vector<8x128xf32>
    %223 = arith.truncf %222 : vector<8x128xf32> to vector<8x128xbf16>
    %224 = vector.extract_strided_slice %219 {offsets = [0, 1024], sizes = [8, 128], strides = [1, 1]} : vector<8x1536xf32> to vector<8x128xf32>
    %225 = arith.truncf %224 : vector<8x128xf32> to vector<8x128xbf16>
    "tpu.trace_start"() <{level = 10 : i32, message = "qd,kd->qk"}> : () -> ()
    %cst_92 = arith.constant dense<0.000000e+00> : vector<8x8xf32>
    %226 = tpu.matmul %221, %223, %cst_92 {dimension_numbers = #tpu.dot_dimension_numbers<[1], [1], [0], [0], [0, 0, 1, 0], [], []>} : vector<8x128xbf16>, vector<8x128xbf16>, vector<8x8xf32> -> vector<8x8xf32>
    "tpu.trace_stop"() : () -> ()
    %cst_93 = arith.constant 0.353553385 : f32
    %227 = vector.broadcast %cst_93 : f32 to vector<8x8xf32>
    %228 = arith.mulf %226, %227 : vector<8x8xf32>
    %cst_94 = arith.constant dense<0xFF800000> : vector<8xf32>
    %229 = vector.multi_reduction <maximumf>, %228, %cst_94 [1] : vector<8x8xf32> to vector<8xf32>
    %230 = vector.shape_cast %229 : vector<8xf32> to vector<8x1xf32>
    %231 = vector.broadcast %230 : vector<8x1xf32> to vector<8x8xf32>
    %232 = arith.subf %228, %231 : vector<8x8xf32>
    %233 = math.exp %232 : vector<8x8xf32>
    %cst_95 = arith.constant dense<0.000000e+00> : vector<8xf32>
    %234 = vector.multi_reduction <add>, %233, %cst_95 [1] : vector<8x8xf32> to vector<8xf32>
    %235 = vector.shape_cast %234 : vector<8xf32> to vector<8x1xf32>
    %236 = tpu.reciprocal %235 : vector<8x1xf32> -> vector<8x1xf32>
    %237 = vector.broadcast %236 : vector<8x1xf32> to vector<8x8xf32>
    %238 = arith.mulf %233, %237 : vector<8x8xf32>
    %239 = arith.truncf %238 : vector<8x8xf32> to vector<8x8xbf16>
    "tpu.trace_start"() <{level = 10 : i32, message = "qk,kd->qd"}> : () -> ()
    %cst_96 = arith.constant dense<0.000000e+00> : vector<8x128xf32>
    %240 = tpu.matmul %239, %225, %cst_96 {dimension_numbers = #tpu.dot_dimension_numbers<[1], [0], [0], [1], [0, 0, 1, 1], [], []>} : vector<8x8xbf16>, vector<8x128xbf16>, vector<8x128xf32> -> vector<8x128xf32>
    "tpu.trace_stop"() : () -> ()
    %241 = vector.extract_strided_slice %219 {offsets = [0, 128], sizes = [8, 128], strides = [1, 1]} : vector<8x1536xf32> to vector<8x128xf32>
    %242 = arith.truncf %241 : vector<8x128xf32> to vector<8x128xbf16>
    %243 = vector.extract_strided_slice %219 {offsets = [0, 640], sizes = [8, 128], strides = [1, 1]} : vector<8x1536xf32> to vector<8x128xf32>
    %244 = arith.truncf %243 : vector<8x128xf32> to vector<8x128xbf16>
    %245 = vector.extract_strided_slice %219 {offsets = [0, 1152], sizes = [8, 128], strides = [1, 1]} : vector<8x1536xf32> to vector<8x128xf32>
    %246 = arith.truncf %245 : vector<8x128xf32> to vector<8x128xbf16>
    "tpu.trace_start"() <{level = 10 : i32, message = "qd,kd->qk"}> : () -> ()
    %cst_97 = arith.constant dense<0.000000e+00> : vector<8x8xf32>
    %247 = tpu.matmul %242, %244, %cst_97 {dimension_numbers = #tpu.dot_dimension_numbers<[1], [1], [0], [0], [0, 0, 1, 0], [], []>} : vector<8x128xbf16>, vector<8x128xbf16>, vector<8x8xf32> -> vector<8x8xf32>
    "tpu.trace_stop"() : () -> ()
    %cst_98 = arith.constant 0.353553385 : f32
    %248 = vector.broadcast %cst_98 : f32 to vector<8x8xf32>
    %249 = arith.mulf %247, %248 : vector<8x8xf32>
    %cst_99 = arith.constant dense<0xFF800000> : vector<8xf32>
    %250 = vector.multi_reduction <maximumf>, %249, %cst_99 [1] : vector<8x8xf32> to vector<8xf32>
    %251 = vector.shape_cast %250 : vector<8xf32> to vector<8x1xf32>
    %252 = vector.broadcast %251 : vector<8x1xf32> to vector<8x8xf32>
    %253 = arith.subf %249, %252 : vector<8x8xf32>
    %254 = math.exp %253 : vector<8x8xf32>
    %cst_100 = arith.constant dense<0.000000e+00> : vector<8xf32>
    %255 = vector.multi_reduction <add>, %254, %cst_100 [1] : vector<8x8xf32> to vector<8xf32>
    %256 = vector.shape_cast %255 : vector<8xf32> to vector<8x1xf32>
    %257 = tpu.reciprocal %256 : vector<8x1xf32> -> vector<8x1xf32>
    %258 = vector.broadcast %257 : vector<8x1xf32> to vector<8x8xf32>
    %259 = arith.mulf %254, %258 : vector<8x8xf32>
    %260 = arith.truncf %259 : vector<8x8xf32> to vector<8x8xbf16>
    "tpu.trace_start"() <{level = 10 : i32, message = "qk,kd->qd"}> : () -> ()
    %cst_101 = arith.constant dense<0.000000e+00> : vector<8x128xf32>
    %261 = tpu.matmul %260, %246, %cst_101 {dimension_numbers = #tpu.dot_dimension_numbers<[1], [0], [0], [1], [0, 0, 1, 1], [], []>} : vector<8x8xbf16>, vector<8x128xbf16>, vector<8x128xf32> -> vector<8x128xf32>
    "tpu.trace_stop"() : () -> ()
    %262 = vector.extract_strided_slice %219 {offsets = [0, 256], sizes = [8, 128], strides = [1, 1]} : vector<8x1536xf32> to vector<8x128xf32>
    %263 = arith.truncf %262 : vector<8x128xf32> to vector<8x128xbf16>
    %264 = vector.extract_strided_slice %219 {offsets = [0, 768], sizes = [8, 128], strides = [1, 1]} : vector<8x1536xf32> to vector<8x128xf32>
    %265 = arith.truncf %264 : vector<8x128xf32> to vector<8x128xbf16>
    %266 = vector.extract_strided_slice %219 {offsets = [0, 1280], sizes = [8, 128], strides = [1, 1]} : vector<8x1536xf32> to vector<8x128xf32>
    %267 = arith.truncf %266 : vector<8x128xf32> to vector<8x128xbf16>
    "tpu.trace_start"() <{level = 10 : i32, message = "qd,kd->qk"}> : () -> ()
    %cst_102 = arith.constant dense<0.000000e+00> : vector<8x8xf32>
    %268 = tpu.matmul %263, %265, %cst_102 {dimension_numbers = #tpu.dot_dimension_numbers<[1], [1], [0], [0], [0, 0, 1, 0], [], []>} : vector<8x128xbf16>, vector<8x128xbf16>, vector<8x8xf32> -> vector<8x8xf32>
    "tpu.trace_stop"() : () -> ()
    %cst_103 = arith.constant 0.353553385 : f32
    %269 = vector.broadcast %cst_103 : f32 to vector<8x8xf32>
    %270 = arith.mulf %268, %269 : vector<8x8xf32>
    %cst_104 = arith.constant dense<0xFF800000> : vector<8xf32>
    %271 = vector.multi_reduction <maximumf>, %270, %cst_104 [1] : vector<8x8xf32> to vector<8xf32>
    %272 = vector.shape_cast %271 : vector<8xf32> to vector<8x1xf32>
    %273 = vector.broadcast %272 : vector<8x1xf32> to vector<8x8xf32>
    %274 = arith.subf %270, %273 : vector<8x8xf32>
    %275 = math.exp %274 : vector<8x8xf32>
    %cst_105 = arith.constant dense<0.000000e+00> : vector<8xf32>
    %276 = vector.multi_reduction <add>, %275, %cst_105 [1] : vector<8x8xf32> to vector<8xf32>
    %277 = vector.shape_cast %276 : vector<8xf32> to vector<8x1xf32>
    %278 = tpu.reciprocal %277 : vector<8x1xf32> -> vector<8x1xf32>
    %279 = vector.broadcast %278 : vector<8x1xf32> to vector<8x8xf32>
    %280 = arith.mulf %275, %279 : vector<8x8xf32>
    %281 = arith.truncf %280 : vector<8x8xf32> to vector<8x8xbf16>
    "tpu.trace_start"() <{level = 10 : i32, message = "qk,kd->qd"}> : () -> ()
    %cst_106 = arith.constant dense<0.000000e+00> : vector<8x128xf32>
    %282 = tpu.matmul %281, %267, %cst_106 {dimension_numbers = #tpu.dot_dimension_numbers<[1], [0], [0], [1], [0, 0, 1, 1], [], []>} : vector<8x8xbf16>, vector<8x128xbf16>, vector<8x128xf32> -> vector<8x128xf32>
    "tpu.trace_stop"() : () -> ()
    %283 = vector.extract_strided_slice %219 {offsets = [0, 384], sizes = [8, 128], strides = [1, 1]} : vector<8x1536xf32> to vector<8x128xf32>
    %284 = arith.truncf %283 : vector<8x128xf32> to vector<8x128xbf16>
    %285 = vector.extract_strided_slice %219 {offsets = [0, 896], sizes = [8, 128], strides = [1, 1]} : vector<8x1536xf32> to vector<8x128xf32>
    %286 = arith.truncf %285 : vector<8x128xf32> to vector<8x128xbf16>
    %287 = vector.extract_strided_slice %219 {offsets = [0, 1408], sizes = [8, 128], strides = [1, 1]} : vector<8x1536xf32> to vector<8x128xf32>
    %288 = arith.truncf %287 : vector<8x128xf32> to vector<8x128xbf16>
    "tpu.trace_start"() <{level = 10 : i32, message = "qd,kd->qk"}> : () -> ()
    %cst_107 = arith.constant dense<0.000000e+00> : vector<8x8xf32>
    %289 = tpu.matmul %284, %286, %cst_107 {dimension_numbers = #tpu.dot_dimension_numbers<[1], [1], [0], [0], [0, 0, 1, 0], [], []>} : vector<8x128xbf16>, vector<8x128xbf16>, vector<8x8xf32> -> vector<8x8xf32>
    "tpu.trace_stop"() : () -> ()
    %cst_108 = arith.constant 0.353553385 : f32
    %290 = vector.broadcast %cst_108 : f32 to vector<8x8xf32>
    %291 = arith.mulf %289, %290 : vector<8x8xf32>
    %cst_109 = arith.constant dense<0xFF800000> : vector<8xf32>
    %292 = vector.multi_reduction <maximumf>, %291, %cst_109 [1] : vector<8x8xf32> to vector<8xf32>
    %293 = vector.shape_cast %292 : vector<8xf32> to vector<8x1xf32>
    %294 = vector.broadcast %293 : vector<8x1xf32> to vector<8x8xf32>
    %295 = arith.subf %291, %294 : vector<8x8xf32>
    %296 = math.exp %295 : vector<8x8xf32>
    %cst_110 = arith.constant dense<0.000000e+00> : vector<8xf32>
    %297 = vector.multi_reduction <add>, %296, %cst_110 [1] : vector<8x8xf32> to vector<8xf32>
    %298 = vector.shape_cast %297 : vector<8xf32> to vector<8x1xf32>
    %299 = tpu.reciprocal %298 : vector<8x1xf32> -> vector<8x1xf32>
    %300 = vector.broadcast %299 : vector<8x1xf32> to vector<8x8xf32>
    %301 = arith.mulf %296, %300 : vector<8x8xf32>
    %302 = arith.truncf %301 : vector<8x8xf32> to vector<8x8xbf16>
    "tpu.trace_start"() <{level = 10 : i32, message = "qk,kd->qd"}> : () -> ()
    %cst_111 = arith.constant dense<0.000000e+00> : vector<8x128xf32>
    %303 = tpu.matmul %302, %288, %cst_111 {dimension_numbers = #tpu.dot_dimension_numbers<[1], [0], [0], [1], [0, 0, 1, 1], [], []>} : vector<8x8xbf16>, vector<8x128xbf16>, vector<8x128xf32> -> vector<8x128xf32>
    "tpu.trace_stop"() : () -> ()
    %304 = tpu.concatenate %240, %261, %282, %303 in 1 : vector<8x128xf32>, vector<8x128xf32>, vector<8x128xf32>, vector<8x128xf32> -> vector<8x512xf32>
    %305 = arith.truncf %304 : vector<8x512xf32> to vector<8x512xbf16>
    %c1_112 = arith.constant 1 : index
    %c0_113 = arith.constant 0 : index
    %c0_114 = arith.constant 0 : index
    %306 = vector.load %arg4[%c1_112, %c0_113, %c0_114] : memref<2x512x128xbf16, #tpu.memory_space<vmem>>, vector<1x512x128xbf16>
    %307 = vector.shape_cast %306 : vector<1x512x128xbf16> to vector<512x128xbf16>
    %cst_115 = arith.constant dense<0.000000e+00> : vector<8x128xf32>
    %308 = tpu.matmul %305, %307, %cst_115 {dimension_numbers = #tpu.dot_dimension_numbers<[1], [0], [0], [1], [0, 0, 1, 1], [], []>} : vector<8x512xbf16>, vector<512x128xbf16>, vector<8x128xf32> -> vector<8x128xf32>
    %c1_116 = arith.constant 1 : index
    %c0_117 = arith.constant 0 : index
    %c0_118 = arith.constant 0 : index
    %309 = vector.load %arg5[%c1_116, %c0_117, %c0_118] : memref<2x1x128xf32, #tpu.memory_space<vmem>>, vector<1x1x128xf32>
    %310 = vector.shape_cast %309 : vector<1x1x128xf32> to vector<1x128xf32>
    %311 = vector.broadcast %310 : vector<1x128xf32> to vector<8x128xf32>
    %312 = arith.addf %308, %311 : vector<8x128xf32>
    %313 = arith.addf %185, %312 : vector<8x128xf32>
    %c1_119 = arith.constant 1 : index
    %c0_120 = arith.constant 0 : index
    %c0_121 = arith.constant 0 : index
    %314 = vector.load %arg8[%c1_119, %c0_120, %c0_121] : memref<2x1x128xf32, #tpu.memory_space<vmem>>, vector<1x1x128xf32>
    %315 = vector.shape_cast %314 : vector<1x1x128xf32> to vector<1x128xf32>
    %c1_122 = arith.constant 1 : index
    %c0_123 = arith.constant 0 : index
    %c0_124 = arith.constant 0 : index
    %316 = vector.load %arg9[%c1_122, %c0_123, %c0_124] : memref<2x1x128xf32, #tpu.memory_space<vmem>>, vector<1x1x128xf32>
    %317 = vector.shape_cast %316 : vector<1x1x128xf32> to vector<1x128xf32>
    %cst_125 = arith.constant dense<0.000000e+00> : vector<8xf32>
    %318 = vector.multi_reduction <add>, %313, %cst_125 [1] : vector<8x128xf32> to vector<8xf32>
    %319 = vector.shape_cast %318 : vector<8xf32> to vector<8x1xf32>
    %cst_126 = arith.constant 3.200000e+01 : f32
    %320 = vector.broadcast %cst_126 : f32 to vector<8x1xf32>
    %321 = arith.divf %319, %320 : vector<8x1xf32>
    %322 = arith.mulf %313, %313 : vector<8x128xf32>
    %cst_127 = arith.constant dense<0.000000e+00> : vector<8xf32>
    %323 = vector.multi_reduction <add>, %322, %cst_127 [1] : vector<8x128xf32> to vector<8xf32>
    %324 = vector.shape_cast %323 : vector<8xf32> to vector<8x1xf32>
    %cst_128 = arith.constant 3.200000e+01 : f32
    %325 = vector.broadcast %cst_128 : f32 to vector<8x1xf32>
    %326 = arith.divf %324, %325 : vector<8x1xf32>
    %327 = arith.mulf %321, %321 : vector<8x1xf32>
    %328 = arith.subf %326, %327 : vector<8x1xf32>
    %329 = vector.broadcast %321 : vector<8x1xf32> to vector<8x128xf32>
    %330 = arith.subf %313, %329 : vector<8x128xf32>
    %cst_129 = arith.constant 9.99999974E-6 : f32
    %331 = vector.broadcast %cst_129 : f32 to vector<8x1xf32>
    %332 = arith.addf %328, %331 : vector<8x1xf32>
    %333 = math.rsqrt %332 : vector<8x1xf32>
    %334 = vector.broadcast %333 : vector<8x1xf32> to vector<8x128xf32>
    %335 = arith.mulf %330, %334 : vector<8x128xf32>
    %336 = vector.broadcast %315 : vector<1x128xf32> to vector<8x128xf32>
    %337 = arith.mulf %335, %336 : vector<8x128xf32>
    %338 = vector.broadcast %317 : vector<1x128xf32> to vector<8x128xf32>
    %339 = arith.addf %337, %338 : vector<8x128xf32>
    %340 = arith.truncf %339 : vector<8x128xf32> to vector<8x128xbf16>
    %c1_130 = arith.constant 1 : index
    %c0_131 = arith.constant 0 : index
    %c0_132 = arith.constant 0 : index
    %341 = vector.load %arg10[%c1_130, %c0_131, %c0_132] : memref<2x128x128xbf16, #tpu.memory_space<vmem>>, vector<1x128x128xbf16>
    %342 = vector.shape_cast %341 : vector<1x128x128xbf16> to vector<128x128xbf16>
    %cst_133 = arith.constant dense<0.000000e+00> : vector<8x128xf32>
    %343 = tpu.matmul %340, %342, %cst_133 {dimension_numbers = #tpu.dot_dimension_numbers<[1], [0], [0], [1], [0, 0, 1, 1], [], []>} : vector<8x128xbf16>, vector<128x128xbf16>, vector<8x128xf32> -> vector<8x128xf32>
    %c1_134 = arith.constant 1 : index
    %c0_135 = arith.constant 0 : index
    %c0_136 = arith.constant 0 : index
    %344 = vector.load %arg11[%c1_134, %c0_135, %c0_136] : memref<2x1x128xf32, #tpu.memory_space<vmem>>, vector<1x1x128xf32>
    %345 = vector.shape_cast %344 : vector<1x1x128xf32> to vector<1x128xf32>
    %346 = vector.broadcast %345 : vector<1x128xf32> to vector<8x128xf32>
    %347 = arith.addf %343, %346 : vector<8x128xf32>
    %348 = arith.mulf %347, %347 : vector<8x128xf32>
    %349 = arith.mulf %347, %348 : vector<8x128xf32>
    %cst_137 = arith.constant 4.471500e-02 : f32
    %350 = vector.broadcast %cst_137 : f32 to vector<8x128xf32>
    %351 = arith.mulf %350, %349 : vector<8x128xf32>
    %352 = arith.addf %347, %351 : vector<8x128xf32>
    %cst_138 = arith.constant 0.797884583 : f32
    %353 = vector.broadcast %cst_138 : f32 to vector<8x128xf32>
    %354 = arith.mulf %353, %352 : vector<8x128xf32>
    %355 = math.tanh %354 : vector<8x128xf32>
    %cst_139 = arith.constant 1.000000e+00 : f32
    %356 = vector.broadcast %cst_139 : f32 to vector<8x128xf32>
    %357 = arith.addf %356, %355 : vector<8x128xf32>
    %cst_140 = arith.constant 5.000000e-01 : f32
    %358 = vector.broadcast %cst_140 : f32 to vector<8x128xf32>
    %359 = arith.mulf %358, %357 : vector<8x128xf32>
    %360 = arith.mulf %347, %359 : vector<8x128xf32>
    %361 = arith.truncf %360 : vector<8x128xf32> to vector<8x128xbf16>
    %c1_141 = arith.constant 1 : index
    %c0_142 = arith.constant 0 : index
    %c0_143 = arith.constant 0 : index
    %362 = vector.load %arg12[%c1_141, %c0_142, %c0_143] : memref<2x128x128xbf16, #tpu.memory_space<vmem>>, vector<1x128x128xbf16>
    %363 = vector.shape_cast %362 : vector<1x128x128xbf16> to vector<128x128xbf16>
    %cst_144 = arith.constant dense<0.000000e+00> : vector<8x128xf32>
    %364 = tpu.matmul %361, %363, %cst_144 {dimension_numbers = #tpu.dot_dimension_numbers<[1], [0], [0], [1], [0, 0, 1, 1], [], []>} : vector<8x128xbf16>, vector<128x128xbf16>, vector<8x128xf32> -> vector<8x128xf32>
    %365 = arith.addf %313, %364 : vector<8x128xf32>
    %c1_145 = arith.constant 1 : index
    %c0_146 = arith.constant 0 : index
    %c0_147 = arith.constant 0 : index
    %366 = vector.load %arg13[%c1_145, %c0_146, %c0_147] : memref<2x1x128xf32, #tpu.memory_space<vmem>>, vector<1x1x128xf32>
    %367 = vector.shape_cast %366 : vector<1x1x128xf32> to vector<1x128xf32>
    %368 = vector.broadcast %367 : vector<1x128xf32> to vector<8x128xf32>
    %369 = arith.addf %365, %368 : vector<8x128xf32>
    %c7_i32 = arith.constant 7 : i32
    %370 = tpu.dynamic_rotate %369 by %c7_i32 dim 0 : vector<8x128xf32>, i32 -> vector<8x128xf32>
    %c6_i32 = arith.constant 6 : i32
    %371 = tpu.dynamic_rotate %369 by %c6_i32 dim 0 : vector<8x128xf32>, i32 -> vector<8x128xf32>
    %c5_i32 = arith.constant 5 : i32
    %372 = tpu.dynamic_rotate %369 by %c5_i32 dim 0 : vector<8x128xf32>, i32 -> vector<8x128xf32>
    %c4_i32 = arith.constant 4 : i32
    %373 = tpu.dynamic_rotate %369 by %c4_i32 dim 0 : vector<8x128xf32>, i32 -> vector<8x128xf32>
    %374 = tpu.concatenate %369, %370, %371, %372, %373 in 1 : vector<8x128xf32>, vector<8x128xf32>, vector<8x128xf32>, vector<8x128xf32>, vector<8x128xf32> -> vector<8x640xf32>
    %375 = arith.truncf %374 : vector<8x640xf32> to vector<8x640xbf16>
    %c0_148 = arith.constant 0 : index
    %c0_149 = arith.constant 0 : index
    %376 = vector.load %arg14[%c0_148, %c0_149] : memref<640x128xbf16, #tpu.memory_space<vmem>>, vector<640x128xbf16>
    %cst_150 = arith.constant dense<0.000000e+00> : vector<8x128xf32>
    %377 = tpu.matmul %375, %376, %cst_150 {dimension_numbers = #tpu.dot_dimension_numbers<[1], [0], [0], [1], [0, 0, 1, 1], [], []>} : vector<8x640xbf16>, vector<640x128xbf16>, vector<8x128xf32> -> vector<8x128xf32>
    %c0_151 = arith.constant 0 : index
    %c0_152 = arith.constant 0 : index
    %378 = vector.load %arg15[%c0_151, %c0_152] : memref<1x128xf32, #tpu.memory_space<vmem>>, vector<1x128xf32>
    %379 = vector.broadcast %378 : vector<1x128xf32> to vector<8x128xf32>
    %380 = arith.addf %377, %379 : vector<8x128xf32>
    %cst_153 = arith.constant 0.000000e+00 : f32
    %381 = vector.broadcast %cst_153 : f32 to vector<8x128xf32>
    %382 = arith.maximumf %380, %381 : vector<8x128xf32>
    %383 = tpu.iota {dimensions = array<i32: 0>} : vector<8x128xi32>
    %c0_154 = arith.constant 0 : index
    %c0_155 = arith.constant 0 : index
    %384 = vector.load %arg16[%c0_154, %c0_155] : memref<1x128xi32, #tpu.memory_space<vmem>>, vector<1x128xi32>
    %385 = vector.broadcast %384 : vector<1x128xi32> to vector<8x128xi32>
    %386 = arith.cmpi slt, %383, %385 : vector<8x128xi32>
    %cst_156 = arith.constant 0.000000e+00 : f32
    %387 = vector.broadcast %cst_156 : f32 to vector<8x128xf32>
    %388 = arith.select %386, %382, %387 : vector<8x128xi1>, vector<8x128xf32>
    %cst_157 = arith.constant dense<0xFF800000> : vector<128xf32>
    %389 = vector.multi_reduction <maximumf>, %388, %cst_157 [0] : vector<8x128xf32> to vector<128xf32>
    %390 = vector.shape_cast %389 : vector<128xf32> to vector<1x128xf32>
    %391 = vector.shape_cast %390 : vector<1x128xf32> to vector<1x1x128xf32>
    %392 = vector.shape_cast %391 : vector<1x1x128xf32> to vector<1x1x128xf32>
    %393 = vector.broadcast %392 : vector<1x1x128xf32> to vector<1x8x128xf32>
    %c0_158 = arith.constant 0 : index
    %c0_159 = arith.constant 0 : index
    %c0_160 = arith.constant 0 : index
    %394 = vector.load %arg17[%c0_158, %c0_159, %c0_160] : memref<1x8x128xf32, #tpu.memory_space<vmem>>, vector<1x8x128xf32>
    tpu.vector_store %arg17[%c0_158, %c0_159, %c0_160], %393 {strides = array<i32>} : memref<1x8x128xf32, #tpu.memory_space<vmem>>, vector<1x8x128xf32>,
    return
  }
  func.func @transform_0(%arg0: i32) -> (i32, i32, i32) {
    %c0_i32 = arith.constant 0 : i32
    %c0_i32_0 = arith.constant 0 : i32
    %c0_i32_1 = arith.constant 0 : i32
    return %arg0, %c0_i32, %c0_i32_0 : i32, i32, i32
  }
  func.func @transform_1(%arg0: i32) -> (i32, i32, i32) {
    %c0_i32 = arith.constant 0 : i32
    %c0_i32_0 = arith.constant 0 : i32
    %c0_i32_1 = arith.constant 0 : i32
    %c0_i32_2 = arith.constant 0 : i32
    return %c0_i32, %c0_i32_0, %c0_i32_1 : i32, i32, i32
  }
  func.func @transform_2(%arg0: i32) -> (i32, i32, i32) {
    %c0_i32 = arith.constant 0 : i32
    %c0_i32_0 = arith.constant 0 : i32
    %c0_i32_1 = arith.constant 0 : i32
    %c0_i32_2 = arith.constant 0 : i32
    return %c0_i32, %c0_i32_0, %c0_i32_1 : i32, i32, i32
  }
  func.func @transform_3(%arg0: i32) -> (i32, i32, i32) {
    %c0_i32 = arith.constant 0 : i32
    %c0_i32_0 = arith.constant 0 : i32
    %c0_i32_1 = arith.constant 0 : i32
    %c0_i32_2 = arith.constant 0 : i32
    return %c0_i32, %c0_i32_0, %c0_i32_1 : i32, i32, i32
  }
  func.func @transform_4(%arg0: i32) -> (i32, i32, i32) {
    %c0_i32 = arith.constant 0 : i32
    %c0_i32_0 = arith.constant 0 : i32
    %c0_i32_1 = arith.constant 0 : i32
    %c0_i32_2 = arith.constant 0 : i32
    return %c0_i32, %c0_i32_0, %c0_i32_1 : i32, i32, i32
  }
  func.func @transform_5(%arg0: i32) -> (i32, i32, i32) {
    %c0_i32 = arith.constant 0 : i32
    %c0_i32_0 = arith.constant 0 : i32
    %c0_i32_1 = arith.constant 0 : i32
    %c0_i32_2 = arith.constant 0 : i32
    return %c0_i32, %c0_i32_0, %c0_i32_1 : i32, i32, i32
  }
  func.func @transform_6(%arg0: i32) -> (i32, i32, i32) {
    %c0_i32 = arith.constant 0 : i32
    %c0_i32_0 = arith.constant 0 : i32
    %c0_i32_1 = arith.constant 0 : i32
    %c0_i32_2 = arith.constant 0 : i32
    return %c0_i32, %c0_i32_0, %c0_i32_1 : i32, i32, i32
  }
  func.func @transform_7(%arg0: i32) -> (i32, i32, i32) {
    %c0_i32 = arith.constant 0 : i32
    %c0_i32_0 = arith.constant 0 : i32
    %c0_i32_1 = arith.constant 0 : i32
    %c0_i32_2 = arith.constant 0 : i32
    return %c0_i32, %c0_i32_0, %c0_i32_1 : i32, i32, i32
  }
  func.func @transform_8(%arg0: i32) -> (i32, i32, i32) {
    %c0_i32 = arith.constant 0 : i32
    %c0_i32_0 = arith.constant 0 : i32
    %c0_i32_1 = arith.constant 0 : i32
    %c0_i32_2 = arith.constant 0 : i32
    return %c0_i32, %c0_i32_0, %c0_i32_1 : i32, i32, i32
  }
  func.func @transform_9(%arg0: i32) -> (i32, i32, i32) {
    %c0_i32 = arith.constant 0 : i32
    %c0_i32_0 = arith.constant 0 : i32
    %c0_i32_1 = arith.constant 0 : i32
    %c0_i32_2 = arith.constant 0 : i32
    return %c0_i32, %c0_i32_0, %c0_i32_1 : i32, i32, i32
  }
  func.func @transform_10(%arg0: i32) -> (i32, i32, i32) {
    %c0_i32 = arith.constant 0 : i32
    %c0_i32_0 = arith.constant 0 : i32
    %c0_i32_1 = arith.constant 0 : i32
    %c0_i32_2 = arith.constant 0 : i32
    return %c0_i32, %c0_i32_0, %c0_i32_1 : i32, i32, i32
  }
  func.func @transform_11(%arg0: i32) -> (i32, i32, i32) {
    %c0_i32 = arith.constant 0 : i32
    %c0_i32_0 = arith.constant 0 : i32
    %c0_i32_1 = arith.constant 0 : i32
    %c0_i32_2 = arith.constant 0 : i32
    return %c0_i32, %c0_i32_0, %c0_i32_1 : i32, i32, i32
  }
  func.func @transform_12(%arg0: i32) -> (i32, i32, i32) {
    %c0_i32 = arith.constant 0 : i32
    %c0_i32_0 = arith.constant 0 : i32
    %c0_i32_1 = arith.constant 0 : i32
    %c0_i32_2 = arith.constant 0 : i32
    return %c0_i32, %c0_i32_0, %c0_i32_1 : i32, i32, i32
  }
  func.func @transform_13(%arg0: i32) -> (i32, i32) {
    %c0_i32 = arith.constant 0 : i32
    %c0_i32_0 = arith.constant 0 : i32
    %c0_i32_1 = arith.constant 0 : i32
    return %c0_i32, %c0_i32_0 : i32, i32
  }
  func.func @transform_14(%arg0: i32) -> (i32, i32) {
    %c0_i32 = arith.constant 0 : i32
    %c0_i32_0 = arith.constant 0 : i32
    %c0_i32_1 = arith.constant 0 : i32
    return %c0_i32, %c0_i32_0 : i32, i32
  }
  func.func @transform_15(%arg0: i32) -> (i32, i32) {
    %c0_i32 = arith.constant 0 : i32
    %c0_i32_0 = arith.constant 0 : i32
    %c0_i32_1 = arith.constant 0 : i32
    return %c0_i32, %c0_i32_0 : i32, i32
  }
  func.func @transform_16(%arg0: i32) -> (i32, i32, i32) {
    %c0_i32 = arith.constant 0 : i32
    %c0_i32_0 = arith.constant 0 : i32
    %c0_i32_1 = arith.constant 0 : i32
    return %arg0, %c0_i32, %c0_i32_0 : i32, i32, i32
  }
}

</mosaic_0001>

<bundles_post_ra>
// kernel: tpu_custom_call.1
= control target key start
LH: loop header
LB: loop body
LE: loop exit
PB: predicated region body
PF: predicated region fallthrough
CT: control target
= control target key end

     0   :  { %s7547_s0 = inlined_call_operand.hbm [shape: f32[2,8,128], index: 0, kind: input, shape index: {}]   ;;  %s7548_s1 = inlined_call_operand.hbm [shape: bf16[2,128,1536], index: 1, kind: input, shape index: {}]   ;;  %s7549_s2 = inlined_call_operand.hbm [shape: f32[2,1,1536], index: 2, kind: input, shape index: {}]   ;;  %s7550_s3 = inlined_call_operand.hbm [shape: bf16[2,512,128], index: 3, kind: input, shape index: {}]   ;;  %s7551_s4 = inlined_call_operand.vmem [shape: f32[2,1,128], index: 4, kind: input, shape index: {}]   ;;  %s7552_s5 = inlined_call_operand.vmem [shape: f32[2,1,128], index: 5, kind: input, shape index: {}]   ;;  %s7553_s6 = inlined_call_operand.vmem [shape: f32[2,1,128], index: 6, kind: input, shape index: {}]   ;;  %s7554_s7 = inlined_call_operand.vmem [shape: f32[2,1,128], index: 7, kind: input, shape index: {}]   ;;  %s7555_s8 = inlined_call_operand.vmem [shape: f32[2,1,128], index: 8, kind: input, shape index: {}]   ;;  %s7556_s9 = inlined_call_operand.hbm [shape: bf16[2,128,128], index: 9, kind: input, shape index: {}]   ;;  %s7557_s10 = inlined_call_operand.vmem [shape: f32[2,1,128], index: 10, kind: input, shape index: {}]   ;;  %s7558_s11 = inlined_call_operand.hbm [shape: bf16[2,128,128], index: 11, kind: input, shape index: {}]   ;;  %s7559_s12 = inlined_call_operand.vmem [shape: f32[2,1,128], index: 12, kind: input, shape index: {}]   ;;  %s7560_s13 = inlined_call_operand.hbm [shape: bf16[640,128], index: 13, kind: input, shape index: {}]   ;;  %s7561_s14 = inlined_call_operand.vmem [shape: f32[1,128], index: 14, kind: input, shape index: {}]   ;;  %s7562_s15 = inlined_call_operand.vmem [shape: s32[1,128], index: 15, kind: input, shape index: {}]   ;;  %s7563_s16 = inlined_call_operand.hbm [shape: f32[2,8,128], index: 16, kind: output, shape index: {}]  }
   0x1   :  { %7577 = sst [smem:[#allocation20_spill]] %s7547_s0 }
   0x2   :  { %7578 = sst [smem:[#allocation21_spill]] %s7548_s1 }
   0x3   :  { %7579 = sst [smem:[#allocation22_spill]] %s7549_s2 }
   0x4   :  { %7580 = sst [smem:[#allocation23_spill]] %s7550_s3 }
   0x5   :  { %7581 = sst [smem:[#allocation24_spill]] %s7551_s4 }
   0x6   :  { %7582 = sst [smem:[#allocation25_spill]] %s7554_s7 }
   0x7   :  { %7583 = sst [smem:[#allocation26_spill]] %s7555_s8 }
   0x8   :  { %7584 = sst [smem:[#allocation27_spill]] %s7557_s10 }
   0x9   :  { %7585 = sst [smem:[#allocation28_spill]] %s7559_s12 }
   0xa   :  { %7586 = sst [smem:[#allocation29_spill]] %s7561_s14 }
   0xb   :  { %7587 = sst [smem:[#allocation30_spill]] %s7562_s15 }
   0xc   :  { %7588 = sst [smem:[#allocation31_spill]] %s7563_s16 }
   0xd   :  { %21 = vsyncpa [#allocation3], 0 }
   0xe   :  { %23 = vsyncpa [#allocation3 + $0x1], 0 }
   0xf   :  { %24 = vsyncpa [#allocation6], 0 }
  0x10   :  { %25 = vsyncpa [#allocation9], 0 }
  0x11   :  { %26 = vsyncpa [#allocation12], 0 }
  0x12   :  { %27 = vsyncpa [#allocation4], 0 }
  0x13   :  { %29 = vsyncpa [#allocation4 + $0x1], 0  ;;  %s6880_s21 = smov 0   ;;  %s6882_s22 = smov 0  }
  0x14   :  { %s6884_s23 = smov 0   ;;  %s6886_s24 = smov 0  }
  0x15 LB: > { %s6778_s25 = smov [#allocation5]   ;;  %s6901_s27 = sadd.s32 4294967295, %s6776_s24   ;;  %s6776_s24 = sphi %s6886_s24, %s7625_s24   ;;  %s6772_s23 = sphi %s6884_s23, %s7624_s23   ;;  %s6768_s22 = sphi %s6882_s22, %s7623_s22   ;;  %s6764_s21 = sphi %s6880_s21, %s7622_s21  }
  0x16   : > { %s419_s26 = sshll.u32 %s6778_s25, 4  ;;  %p5128_p0 = scmp.ge.s32.totalorder %s6776_s24, 1  ;;  %s6906_s26 = int_to_ptr.vmem [resolvable:$true] %s419_s26 }
  0x17   : > { %p7570_p1 = scmp.eq.s32.totalorder %s6901_s27, 0  ;;  %p407_p2 = scmp.lt.s32.totalorder %s6776_s24, 3 }
  0x18   : > { %s6779_s29 = smov [#allocation8]   ;;  %s6780_s17 = smov [#allocation11]  }
  0x19   : > { %p6908_p3 = pnand %p5128_p0, %p407_p2  ;;  %s445_s30 = sshll.u32 %s6779_s29, 4  ;;  %s6921_s30 = int_to_ptr.vmem [resolvable:$true] %s445_s30 }
  0x1a   : > { %s6923_s18 = sshll.u32 %s6780_s17, 4  ;;  %s7591_s1 = sld [smem:[#allocation21_spill]]  ;;  %s490_s18 = int_to_ptr.vmem [resolvable:$true] %s6923_s18 }
  0x1b   : > { %s7589_s28 = scalar_select %p6908_p3, 1, 0 }
  0x1c   : > { %p5943_p5 = pneg %p6908_p3 }
  0x1e   : > { %p6917_p6 = pnand %p5943_p5, %p7570_p1 }
  0x20   : > { %s6500_s25 = scalar_lea.hbm %s7591_s1, 24576  ;;  %p6933_p8 = pneg %p6917_p6 }
  0x21   : > { %p6501_p7 = scmp.ne.s32.totalorder %s7591_s1, %s6500_s25  ;;  %p6507_p11 = scmp.lt.u32.totalorder %s6500_s25, %s7591_s1 }
  0x23   : > { %p6503_p9 = pnand %p6933_p8, %p6501_p7 }
  0x25   : > { %p6504_p10 = pneg %p6503_p9 }
  0x27   : > { %p6509_p12 = pnand %p6507_p11, %p6504_p10 }
  0x29   : > { %6512 = shalt.err (!%p6509_p12)
}
  0x2a   : > { %s6513_s15 = scalar_lea.vmem %s6906_s26, 24576  ;;  %p6521_p5 = scmp.lt.s32.totalorder %s6906_s26, %s6906_s26 }
  0x2b   : > { %p6514_p13 = scmp.ne.s32.totalorder %s6906_s26, %s6513_s15  ;;  %p6522_p4 = scmp.lt.s32.totalorder %s6513_s15, %s6513_s15 }
  0x2d   : > { %p6516_p0 = pnand %p6514_p13, %p6933_p8  ;;  %p6523_p7 = por %p6522_p4, %p6521_p5 }
  0x2f   : > { %p6517_p2 = pneg %p6516_p0 }
  0x31   : > { %p6524_p9 = pnand %p6523_p7, %p6517_p2 }
  0x33   : > { %6527 = shalt.err (!%p6524_p9)
}
  0x34   : > { %s6781_s16 = smov 768   ;;  %s6782_s14 = smov 48  }
  0x35   : > { %5946 = dma.hbm_to_vmem [thread:$0]  (!%p6917_p6), %s7591_s1, 24576, %s6906_s26, [#allocation6], %s6781_s16, %s6781_s16, %s6782_s14  }
  0x36   : > { %s7593_s3 = sld [smem:[#allocation23_spill]] }
  0x3c   : > { %s6528_s12 = scalar_lea.hbm %s7593_s3, 8192 }
  0x3d   : > { %p6529_p4 = scmp.ne.s32.totalorder %s7593_s3, %s6528_s12  ;;  %p6535_p12 = scmp.lt.u32.totalorder %s6528_s12, %s7593_s3 }
  0x3f   : > { %p6531_p10 = pnand %p6529_p4, %p6933_p8 }
  0x41   : > { %p6532_p11 = pneg %p6531_p10 }
  0x43   : > { %p6537_p13 = pnand %p6535_p12, %p6532_p11 }
  0x45   : > { %6540 = shalt.err (!%p6537_p13)
}
  0x46   : > { %s6541_s26 = scalar_lea.vmem %s6921_s30, 8192  ;;  %p6549_p7 = scmp.lt.s32.totalorder %s6921_s30, %s6921_s30 }
  0x47   : > { %p6542_p0 = scmp.ne.s32.totalorder %s6921_s30, %s6541_s26  ;;  %p6550_p9 = scmp.lt.s32.totalorder %s6541_s26, %s6541_s26 }
  0x49   : > { %p6544_p2 = pnand %p6542_p0, %p6933_p8  ;;  %p6551_p4 = por %p6550_p9, %p6549_p7 }
  0x4b   : > { %p6545_p5 = pneg %p6544_p2 }
  0x4d   : > { %p6552_p10 = pnand %p6551_p4, %p6545_p5 }
  0x4f   : > { %6555 = shalt.err (!%p6552_p10)
}
  0x50   : > { %s7572_s8 = smov 64   ;;  %s7574_s7 = smov 4  }
  0x51   : > { %5952 = dma.hbm_to_vmem [thread:$0]  (!%p6917_p6), %s7593_s3, 8192, %s6921_s30, [#allocation9], %s7572_s8, %s7572_s8, %s7574_s7  }
  0x52   : > { %s6556_s19 = scalar_lea.hbm %s7558_s11, 2048 }
  0x53   : > { %p6557_p11 = scmp.ne.s32.totalorder %s7558_s11, %s6556_s19  ;;  %p6563_p0 = scmp.lt.u32.totalorder %s6556_s19, %s7558_s11 }
  0x55   : > { %p6559_p12 = pnand %p6557_p11, %p6933_p8 }
  0x57   : > { %p6560_p13 = pneg %p6559_p12 }
  0x59   : > { %p6565_p2 = pnand %p6563_p0, %p6560_p13 }
  0x5b   : > { %6568 = shalt.err (!%p6565_p2)
}
  0x5c   : > { %s6569_s26 = scalar_lea.vmem %s490_s18, 2048  ;;  %p6577_p4 = scmp.lt.s32.totalorder %s490_s18, %s490_s18 }
  0x5d   : > { %p6570_p5 = scmp.ne.s32.totalorder %s490_s18, %s6569_s26  ;;  %p6578_p10 = scmp.lt.s32.totalorder %s6569_s26, %s6569_s26 }
  0x5f   : > { %p6572_p7 = pnand %p6570_p5, %p6933_p8  ;;  %p6579_p1 = por %p6578_p10, %p6577_p4 }
  0x61   : > { %p6573_p9 = pneg %p6572_p7 }
  0x63   : > { %p6580_p3 = pnand %p6579_p1, %p6573_p9 }
  0x65   : > { %6583 = shalt.err (!%p6580_p3)
}
  0x66   : > { %5958 = dma.hbm_to_vmem [thread:$0]  (!%p6917_p6), %s7558_s11, 2048, %s490_s18, [#allocation12], %s7572_s8, %s7572_s8, %s7574_s7  }
  0x67   : > { %s6785_s12 = smov [#allocation7]   ;;  %s7594_s2 = sld [smem:[#allocation22_spill]] }
  0x68   : > { %s432_s16 = sshll.u32 %s6785_s12, 4  ;;  %s433_s16 = int_to_ptr.vmem [resolvable:$true] %s432_s16 }
  0x6d   : > { %s6584_s20 = scalar_lea.hbm %s7594_s2, 384 }
  0x6e   : > { %p6585_p1 = scmp.ne.s32.totalorder %s7594_s2, %s6584_s20  ;;  %p6591_p12 = scmp.lt.u32.totalorder %s6584_s20, %s7594_s2 }
  0x70   : > { %p6587_p3 = pnand %p6585_p1, %p6933_p8 }
  0x72   : > { %p6588_p11 = pneg %p6587_p3 }
  0x74   : > { %p6593_p13 = pnand %p6591_p12, %p6588_p11 }
  0x76   : > { %6596 = shalt.err (!%p6593_p13)
}
  0x77   : > { %s6597_s18 = scalar_lea.vmem %s433_s16, 384  ;;  %p6605_p7 = scmp.lt.s32.totalorder %s433_s16, %s433_s16 }
  0x78   : > { %p6598_p0 = scmp.ne.s32.totalorder %s433_s16, %s6597_s18  ;;  %p6606_p9 = scmp.lt.s32.totalorder %s6597_s18, %s6597_s18 }
  0x7a   : > { %p6600_p2 = pnand %p6598_p0, %p6933_p8  ;;  %p6607_p4 = por %p6606_p9, %p6605_p7 }
  0x7c   : > { %p6601_p5 = pneg %p6600_p2 }
  0x7e   : > { %p6608_p10 = pnand %p6607_p4, %p6601_p5 }
  0x80   : > { %6611 = shalt.err (!%p6608_p10)
}
  0x81   : > { %s6786_s30 = smov 192   ;;  %s6787_s10 = smov 12  }
  0x82   : > { %5949 = dma.hbm_to_vmem [thread:$0]  (!%p6917_p6), %s7594_s2, 384, %s433_s16, [#allocation6], %s6786_s30, %s6786_s30, %s6787_s10  }
  0x83   : > { %s6788_s19 = smov [#allocation10]   ;;  %s6789_s25 = smov [#allocation13]  }
  0x84   : > { %s473_s20 = sshll.u32 %s6788_s19, 4  ;;  %s505_s17 = sshll.u32 %s6789_s25, 4  ;;  %s474_s20 = int_to_ptr.vmem [resolvable:$true] %s473_s20  ;;  %s7020_s17 = int_to_ptr.vmem [resolvable:$true] %s505_s17 }
  0x85   : > { %s6612_s18 = scalar_lea.hbm %s7556_s9, 2048 }
  0x86   : > { %p6613_p1 = scmp.ne.s32.totalorder %s7556_s9, %s6612_s18  ;;  %p6619_p12 = scmp.lt.u32.totalorder %s6612_s18, %s7556_s9 }
  0x88   : > { %p6615_p3 = pnand %p6613_p1, %p6933_p8 }
  0x8a   : > { %p6616_p11 = pneg %p6615_p3 }
  0x8c   : > { %p6621_p13 = pnand %p6619_p12, %p6616_p11 }
  0x8e   : > { %6624 = shalt.err (!%p6621_p13)
}
  0x8f   : > { %s6625_s30 = scalar_lea.vmem %s474_s20, 2048  ;;  %p6633_p7 = scmp.lt.s32.totalorder %s474_s20, %s474_s20 }
  0x90   : > { %p6626_p0 = scmp.ne.s32.totalorder %s474_s20, %s6625_s30  ;;  %p6634_p9 = scmp.lt.s32.totalorder %s6625_s30, %s6625_s30 }
  0x92   : > { %p6628_p2 = pnand %p6626_p0, %p6933_p8  ;;  %p6635_p4 = por %p6634_p9, %p6633_p7 }
  0x94   : > { %p6629_p5 = pneg %p6628_p2 }
  0x96   : > { %p6636_p10 = pnand %p6635_p4, %p6629_p5 }
  0x98   : > { %6639 = shalt.err (!%p6636_p10)
}
  0x99   : > { %s7595_s8 = smov 4   ;;  %s7596_s7 = smov 64  }
  0x9a   : > { %5955 = dma.hbm_to_vmem [thread:$0]  (!%p6917_p6), %s7556_s9, 2048, %s474_s20, [#allocation9], %s7596_s7, %s7596_s7, %s7595_s8  }
  0x9b   : > { %s6640_s15 = scalar_lea.hbm %s7560_s13, 5120 }
  0x9c   : > { %p6641_p1 = scmp.ne.s32.totalorder %s7560_s13, %s6640_s15  ;;  %p6647_p12 = scmp.lt.u32.totalorder %s6640_s15, %s7560_s13 }
  0x9e   : > { %p6643_p3 = pnand %p6641_p1, %p6933_p8 }
  0xa0   : > { %p6644_p11 = pneg %p6643_p3 }
  0xa2   : > { %p6649_p13 = pnand %p6647_p12, %p6644_p11 }
  0xa4   : > { %6652 = shalt.err (!%p6649_p13)
}
  0xa5   : > { %s6653_s20 = scalar_lea.vmem %s7020_s17, 5120  ;;  %p6661_p7 = scmp.lt.s32.totalorder %s7020_s17, %s7020_s17 }
  0xa6   : > { %p6654_p0 = scmp.ne.s32.totalorder %s7020_s17, %s6653_s20  ;;  %p6662_p9 = scmp.lt.s32.totalorder %s6653_s20, %s6653_s20 }
  0xa8   : > { %p6656_p2 = pnand %p6654_p0, %p6933_p8  ;;  %p6663_p4 = por %p6662_p9, %p6661_p7 }
  0xaa   : > { %p6657_p5 = pneg %p6656_p2 }
  0xac   : > { %p6664_p10 = pnand %p6663_p4, %p6657_p5 }
  0xae   : > { %6667 = shalt.err (!%p6664_p10)
}
  0xaf   : > { %5961 = dma.hbm_to_vmem [thread:$0]  (!%p6917_p6), %s7560_s13, 5120, %s7020_s17, [#allocation12], %s7596_s7, %s7596_s7, %s7595_s8  }
  0xb0   : > { %s5127_s0 = sadd.s32 4294967294, %s6776_s24   ;;  %s7071_s29 = sadd.s32 1, %s6776_s24  }
  0xb1   : > { %s39_s14 = ssub.s32 %s6776_s24, %s7071_s29  ;;  %s42_s19 = sadd.s32 1, %s6772_s23 }
  0xb2   : > { %p40_p8 = scmp.eq.s32.totalorder %s39_s14, 0  ;;  %p49_p1 = scmp.ne.s32.totalorder %s6772_s23, %s6768_s22 }
  0xb3   : > { %p50_p3 = scmp.eq.s32.totalorder %s6776_s24, 0  ;;  %p55_p11 = scmp.ne.s32.totalorder %s6768_s22, %s6764_s21 }
  0xb4   : > { %s7082_s25 = scalar_select %p40_p8, %s6772_s23, %s42_s19  }
  0xb5   : > { %p7084_p12 = por %p50_p3, %p49_p1  ;;  %p7598_p13 = scmp.eq.s32.totalorder %s6901_s27, 0 }
  0xb6   : > { %p394_p0 = scmp.eq.s32.totalorder %s6901_s27, 1  ;;  %p400_p2 = scmp.eq.s32.totalorder %s5127_s0, 1 }
  0xb7   : > { %p7090_p6 = por %p7598_p13, %p55_p11  ;;  %p5976_p5 = scmp.lt.s32.totalorder %s6776_s24, 2 }
  0xb8   : > { %s525_s8 = sand.u32 1, %s6772_s23   ;;  %p7097_p7 = por %p394_p0, %p49_p1 }
  0xb9   : > { %p7101_p9 = por %p400_p2, %p55_p11  ;;  %s5136_s18 = sshll.u32 %s525_s8, 3 }
  0xba   : > { %s7600_s7 = scalar_select %p7097_p7, 1, 0 }
  0xbb   : > { %s7601_s26 = scalar_select %p7101_p9, 1, 0 }
  0xbc   : > { %s5137_s12 = sshll.u32 %s6776_s24, 7  ;;  %s7602_s30 = sld [smem:[#allocation20_spill]] }
  0xbd   : > { %s529_s0 = scalar_lea.vmem [#allocation2], %s5136_s18  ;;  %p7115_p4 = pnand %p5976_p5, %p7084_p12 }
  0xbe   : > { %s536_s14 = sshll.u32 %s529_s0, 4  ;;  %s526_s1 = scalar_lea.sflag [#allocation3], %s525_s8  ;;  %s7111_s14 = int_to_ptr.vmem [resolvable:$true] %s536_s14 }
  0xbf   : > { %p6670_p8 = pneg %p7115_p4 }
  0xc2   : > { %s7109_s10 = scalar_lea.hbm %s7602_s30, %s5137_s12  ;;  %s6673_s16 = scalar_lea.hbm %s7602_s30, 256 }
  0xc3   : > { %s6668_s2 = scalar_lea.hbm %s7109_s10, 128  ;;  %p6674_p11 = scmp.lt.u32.totalorder %s7109_s10, %s7602_s30 }
  0xc4   : > { %p6669_p10 = scmp.ne.s32.totalorder %s7109_s10, %s6668_s2  ;;  %p6675_p12 = scmp.lt.u32.totalorder %s6673_s16, %s6668_s2 }
  0xc5   : > { %p6677_p0 = scmp.lt.u32.totalorder %s6668_s2, %s7109_s10 }
  0xc6   : > { %p6671_p1 = pnand %p6670_p8, %p6669_p10  ;;  %p6676_p13 = por %p6675_p12, %p6674_p11 }
  0xc8   : > { %p6672_p3 = pneg %p6671_p1  ;;  %p6678_p2 = por %p6677_p0, %p6676_p13 }
  0xca   : > { %p6679_p5 = pnand %p6678_p2, %p6672_p3 }
  0xcc   : > { %6682 = shalt.err (!%p6679_p5)
}
  0xcd   : > { %s6683_s8 = scalar_lea.vmem %s7111_s14, 128  ;;  %s6790_s0 = smov [#allocation2]  }
  0xce   : > { %p6684_p10 = scmp.ne.s32.totalorder %s7111_s14, %s6683_s8  ;;  %s6688_s18 = sshll.u32 %s6790_s0, 4  ;;  %s6689_s18 = int_to_ptr.vmem [resolvable:$false] %s6688_s18 }
  0xcf   : > { %s6690_s12 = scalar_lea.vmem %s6689_s18, 256  ;;  %p6691_p7 = scmp.lt.s32.totalorder %s7111_s14, %s6689_s18 }
  0xd0   : > { %p6686_p1 = pnand %p6684_p10, %p6670_p8  ;;  %p6692_p11 = scmp.lt.s32.totalorder %s6690_s12, %s6683_s8 }
  0xd2   : > { %p6687_p9 = pneg %p6686_p1  ;;  %p6693_p12 = por %p6692_p11, %p6691_p7 }
  0xd4   : > { %p6694_p13 = pnand %p6693_p12, %p6687_p9 }
  0xd6   : > { %6697 = shalt.err (!%p6694_p13)
}
  0xd7   : > { %5965 = dma.hbm_to_vmem [thread:$0]  (!%p7115_p4), %s7109_s10, 128, %s7111_s14, %s526_s1  }
  0xd8   : > { %p7604_p3 = scmp.ne.s32.totalorder %s7589_s28, 0 }
  0xd9   : > { %s7147_s2 = sand.u32 (!%p7604_p3), 1, %s6768_s22  }
  0xda   : > { %545 = sbr.rel (%p7604_p3) target bundleno = 5128 (0x1408), region = 84  ;;  %s5139_s16 = sshll.u32 (!%p7604_p3), %s7147_s2, 3 }
  0xdb   : > { %s548_s15 = scalar_lea.sflag (!%p7604_p3), [#allocation3], %s7147_s2  ;;  %s7153_s20 = scalar_lea.vmem (!%p7604_p3), [#allocation2], %s5139_s16 }
  0xe1   : > { %6743 = dma.done.wait (%p7090_p6), %s548_s15, 128  }
  0xe2   : > { %6745 = vsyncadd (%p7090_p6), %s548_s15, 4294967168  ;;  %p7605_p7 = scmp.eq.s32.totalorder %s6901_s27, 0 }
  0xe4   : > { %6747 = dma.done.wait (%p7605_p7), [#allocation6], 24960   ;;  %p7606_p9 = pmov %p7605_p7 }
  0xe5   : > { %p7607_p4 = pmov %p7605_p7 }
  0xe6   : > { %6749 = vsyncadd (%p7606_p9), [#allocation6], 4294942336 }
  0xe7   : > { %6751 = dma.done.wait (%p7607_p4), [#allocation9], 10240   ;;  %p7608_p8 = pmov %p7607_p4 }
  0xe8   : > { %p7609_p0 = pmov %p7607_p4 }
  0xe9   : > { %6753 = vsyncadd (%p7608_p8), [#allocation9], 4294957056 }
  0xea   : > { %6755 = dma.done.wait (%p7609_p0), [#allocation12], 7168   ;;  %p7610_p2 = pmov %p7609_p0 }
  0xeb   : > { %v7172_v0 = vld [vmem:[%s7153_s20] sm:$0xff]  ;;  %v6791_v36 = vmov 0   ;;  %vm6793_vm0 = vmmov 0   ;;  %vm1603_vm1 = vcmask 1043456   ;;  %vm1587_vm2 = vcmask 64512   ;;  %s7611_s4 = sld [smem:[#allocation24_spill]] }
  0xec   : > { %6757 = vsyncadd (%p7610_p2), [#allocation12], 4294960128  ;;  %628 = vadd.xlane.f32.xlu0 %v7172_v0  ;;  %v632_v1 = vmul.f32 %v7172_v0, %v7172_v0  ;;  %v6031_v2 = vld [vmem:[#allocation5 + $0x4] ss:$48 sps:$4 sm:$0xff]   ;;  %v6033_v3 = vld [vmem:[#allocation5 + $0xc] ss:$48 sps:$4 sm:$0xff]   ;;  %1329 = vmatprep.mubr.bf16.mxu0 %v6791_v36 }
  0xed   : > { %v6035_v4 = vld [vmem:[#allocation5] ss:$48 sps:$4 sm:$0xff]   ;;  %v6036_v5 = vld [vmem:[#allocation5 + $0x8] ss:$48 sps:$4 sm:$0xff]   ;;  %1297 = vmatprep.subr.bf16.mxu0 %v6031_v2  ;;  %1338 = vmatprep.subr.bf16.mxu1 %v6033_v3  ;;  %v6037_v6 = vld [vmem:[#allocation5 + $0x64] ss:$48 sps:$4 sm:$0xff]  }
  0xee   : > { %1298 = vmatpush1.bf16.msra.mxu0 %v6035_v4  ;;  %1339 = vmatpush1.bf16.msra.mxu1 %v6036_v5  ;;  %v6039_v7 = vld [vmem:[#allocation5 + $0x6c] ss:$48 sps:$4 sm:$0xff]   ;;  %v6041_v8 = vld [vmem:[#allocation5 + $0x60] ss:$48 sps:$4 sm:$0xff]   ;;  %v6042_v9 = vld [vmem:[#allocation5 + $0x68] ss:$48 sps:$4 sm:$0xff]  }
  0xef   : > { %1299 = vmatprep.subr.bf16.mxu0 %v6037_v6  ;;  %1340 = vmatprep.subr.bf16.mxu1 %v6039_v7  ;;  %v6043_v10 = vld [vmem:[#allocation5 + $0xc4] ss:$48 sps:$4 sm:$0xff]   ;;  %v6045_v11 = vld [vmem:[#allocation5 + $0xcc] ss:$48 sps:$4 sm:$0xff]   ;;  %v6047_v12 = vld [vmem:[#allocation5 + $0xc0] ss:$48 sps:$4 sm:$0xff]  }
  0xf0   : > { %633 = vadd.xlane.f32.xlu0 %v632_v1  ;;  %v6048_v13 = vld [vmem:[#allocation5 + $0xc8] ss:$48 sps:$4 sm:$0xff]   ;;  %v6049_v14 = vld [vmem:[#allocation5 + $0x124] ss:$48 sps:$4 sm:$0xff]   ;;  %v6051_v15 = vld [vmem:[#allocation5 + $0x12c] ss:$48 sps:$4 sm:$0xff]   ;;  %1370 = vmatprep.mubr.bf16.mxu1 %v6791_v36 }
  0xf1   : > { %v6053_v16 = vld [vmem:[#allocation5 + $0x120] ss:$48 sps:$4 sm:$0xff]   ;;  %v6054_v17 = vld [vmem:[#allocation5 + $0x128] ss:$48 sps:$4 sm:$0xff]   ;;  %v6055_v18 = vld [vmem:[#allocation5 + $0x184] ss:$48 sps:$4 sm:$0xff]  }
  0xf2   : > { %1300 = vmatpush1.bf16.msra.mxu0 %v6041_v8  ;;  %1341 = vmatpush1.bf16.msra.mxu1 %v6042_v9  ;;  %v6057_v19 = vld [vmem:[#allocation5 + $0x18c] ss:$48 sps:$4 sm:$0xff]   ;;  %v6059_v20 = vld [vmem:[#allocation5 + $0x180] ss:$48 sps:$4 sm:$0xff]   ;;  %v6060_v21 = vld [vmem:[#allocation5 + $0x188] ss:$48 sps:$4 sm:$0xff]  }
  0xf3   : > { %1301 = vmatprep.subr.bf16.mxu0 %v6043_v10  ;;  %1342 = vmatprep.subr.bf16.mxu1 %v6045_v11  ;;  %v6061_v22 = vld [vmem:[#allocation5 + $0x1e4] ss:$48 sps:$4 sm:$0xff]   ;;  %v6063_v23 = vld [vmem:[#allocation5 + $0x1ec] ss:$48 sps:$4 sm:$0xff]   ;;  %v6065_v24 = vld [vmem:[#allocation5 + $0x1e0] ss:$48 sps:$4 sm:$0xff]  }
  0xf4   : > { %v6066_v25 = vld [vmem:[#allocation5 + $0x1e8] ss:$48 sps:$4 sm:$0xff]   ;;  %v6067_v26 = vld [vmem:[#allocation5 + $0x244] ss:$48 sps:$4 sm:$0xff]   ;;  %v6069_v27 = vld [vmem:[#allocation5 + $0x24c] ss:$48 sps:$4 sm:$0xff]  }
  0xf5   : > { %v6071_v28 = vld [vmem:[#allocation5 + $0x240] ss:$48 sps:$4 sm:$0xff]   ;;  %v6072_v29 = vld [vmem:[#allocation5 + $0x248] ss:$48 sps:$4 sm:$0xff]   ;;  %v6073_v30 = vld [vmem:[#allocation5 + $0x2a4] ss:$48 sps:$4 sm:$0xff]  }
  0xf6   : > { %1302 = vmatpush1.bf16.msra.mxu0 %v6047_v12  ;;  %1343 = vmatpush1.bf16.msra.mxu1 %v6048_v13  ;;  %v6075_v31 = vld [vmem:[#allocation5 + $0x2ac] ss:$48 sps:$4 sm:$0xff]   ;;  %v6077_v32 = vld [vmem:[#allocation5 + $0x2a0] ss:$48 sps:$4 sm:$0xff]   ;;  %v6078_v33 = vld [vmem:[#allocation5 + $0x2a8] ss:$48 sps:$4 sm:$0xff]  }
  0xf7   : > { %1303 = vmatprep.subr.bf16.mxu0 %v6049_v14  ;;  %1344 = vmatprep.subr.bf16.mxu1 %v6051_v15  ;;  %v6081_v34 = vld [vmem:[#allocation5 + $0x14] ss:$48 sps:$4 sm:$0xff]   ;;  %v6084_v35 = vld [vmem:[#allocation5 + $0x1c] ss:$48 sps:$4 sm:$0xff]   ;;  %v5147_v44 = vld [vmem:[%s7552_s5] ss:$0 sm:$0xff] }
  0xf8   : > { %v5148_v47 = vld [vmem:[%s7553_s6] ss:$0 sm:$0xff]  ;;  %v6082_v51 = vld [vmem:[#allocation5 + $0x18] ss:$48 sps:$4 sm:$0xff]   ;;  %v6087_v53 = vld [vmem:[#allocation5 + $0x74] ss:$48 sps:$4 sm:$0xff]  }
  0xf9   : > { %v6079_v50 = vld [vmem:[#allocation5 + $0x10] ss:$48 sps:$4 sm:$0xff]   ;;  %v6090_v54 = vld [vmem:[#allocation5 + $0x7c] ss:$48 sps:$4 sm:$0xff]   ;;  %v6088_v57 = vld [vmem:[#allocation5 + $0x78] ss:$48 sps:$4 sm:$0xff]  }
  0xfa   : > { %1304 = vmatpush1.bf16.msra.mxu0 %v6053_v16  ;;  %1345 = vmatpush1.bf16.msra.mxu1 %v6054_v17  ;;  %v6085_v56 = vld [vmem:[#allocation5 + $0x70] ss:$48 sps:$4 sm:$0xff]   ;;  %v6093_v58 = vld [vmem:[#allocation5 + $0xd4] ss:$48 sps:$4 sm:$0xff]   ;;  %v6096_v59 = vld [vmem:[#allocation5 + $0xdc] ss:$48 sps:$4 sm:$0xff]  }
  0xfb   : > { %1305 = vmatprep.subr.bf16.mxu0 %v6055_v18  ;;  %1346 = vmatprep.subr.bf16.mxu1 %v6057_v19  ;;  %v6091_v60 = vld [vmem:[#allocation5 + $0xd0] ss:$48 sps:$4 sm:$0xff]   ;;  %v6094_v61 = vld [vmem:[#allocation5 + $0xd8] ss:$48 sps:$4 sm:$0xff]   ;;  %v6099_v62 = vld [vmem:[#allocation5 + $0x134] ss:$48 sps:$4 sm:$0xff]  }
  0xfc   : > { %v6102_v63 = vld [vmem:[#allocation5 + $0x13c] ss:$48 sps:$4 sm:$0xff]   ;;  %v6100_v1 = vld [vmem:[#allocation5 + $0x138] ss:$48 sps:$4 sm:$0xff]   ;;  %v6105_v2 = vld [vmem:[#allocation5 + $0x194] ss:$48 sps:$4 sm:$0xff]  }
  0xfd   : > { %v6108_v3 = vld [vmem:[#allocation5 + $0x19c] ss:$48 sps:$4 sm:$0xff]   ;;  %v6103_v4 = vld [vmem:[#allocation5 + $0x190] ss:$48 sps:$4 sm:$0xff]   ;;  %v6106_v5 = vld [vmem:[#allocation5 + $0x198] ss:$48 sps:$4 sm:$0xff]  }
  0xfe   : > { %1306 = vmatpush1.bf16.msra.mxu0 %v6059_v20  ;;  %1347 = vmatpush1.bf16.msra.mxu1 %v6060_v21  ;;  %v6111_v6 = vld [vmem:[#allocation5 + $0x1f4] ss:$48 sps:$4 sm:$0xff]   ;;  %v6114_v7 = vld [vmem:[#allocation5 + $0x1fc] ss:$48 sps:$4 sm:$0xff]   ;;  %v6109_v8 = vld [vmem:[#allocation5 + $0x1f0] ss:$48 sps:$4 sm:$0xff]  }
  0xff   : > { %1307 = vmatprep.subr.bf16.mxu0 %v6061_v22  ;;  %1348 = vmatprep.subr.bf16.mxu1 %v6063_v23  ;;  %v6112_v9 = vld [vmem:[#allocation5 + $0x1f8] ss:$48 sps:$4 sm:$0xff]   ;;  %v6117_v10 = vld [vmem:[#allocation5 + $0x254] ss:$48 sps:$4 sm:$0xff]   ;;  %v6120_v11 = vld [vmem:[#allocation5 + $0x25c] ss:$48 sps:$4 sm:$0xff]  }
 0x100   : > { %v6115_v12 = vld [vmem:[#allocation5 + $0x250] ss:$48 sps:$4 sm:$0xff]   ;;  %v6118_v13 = vld [vmem:[#allocation5 + $0x258] ss:$48 sps:$4 sm:$0xff]   ;;  %v6123_v14 = vld [vmem:[#allocation5 + $0x2b4] ss:$48 sps:$4 sm:$0xff]  }
 0x101   : > { %v6126_v15 = vld [vmem:[#allocation5 + $0x2bc] ss:$48 sps:$4 sm:$0xff]   ;;  %v6121_v16 = vld [vmem:[#allocation5 + $0x2b0] ss:$48 sps:$4 sm:$0xff]   ;;  %v6124_v17 = vld [vmem:[#allocation5 + $0x2b8] ss:$48 sps:$4 sm:$0xff]  }
 0x102   : > { %1308 = vmatpush1.bf16.msra.mxu0 %v6065_v24  ;;  %1349 = vmatpush1.bf16.msra.mxu1 %v6066_v25  ;;  %v6129_v18 = vld [vmem:[#allocation5 + $0x24] ss:$48 sps:$4 sm:$0xff]   ;;  %v6132_v19 = vld [vmem:[#allocation5 + $0x2c] ss:$48 sps:$4 sm:$0xff]   ;;  %v6127_v20 = vld [vmem:[#allocation5 + $0x20] ss:$48 sps:$4 sm:$0xff]  }
 0x103   : > { %1309 = vmatprep.subr.bf16.mxu0 %v6067_v26  ;;  %1350 = vmatprep.subr.bf16.mxu1 %v6069_v27  ;;  %v6130_v21 = vld [vmem:[#allocation5 + $0x28] ss:$48 sps:$4 sm:$0xff]   ;;  %v6135_v22 = vld [vmem:[#allocation5 + $0x84] ss:$48 sps:$4 sm:$0xff]   ;;  %v6138_v23 = vld [vmem:[#allocation5 + $0x8c] ss:$48 sps:$4 sm:$0xff]  }
 0x104   : > { %v6133_v24 = vld [vmem:[#allocation5 + $0x80] ss:$48 sps:$4 sm:$0xff]   ;;  %v6136_v25 = vld [vmem:[#allocation5 + $0x88] ss:$48 sps:$4 sm:$0xff]   ;;  %v6141_v26 = vld [vmem:[#allocation5 + $0xe4] ss:$48 sps:$4 sm:$0xff]  }
 0x105   : > { %v6144_v27 = vld [vmem:[#allocation5 + $0xec] ss:$48 sps:$4 sm:$0xff]   ;;  %s7612_s18 = sld [smem:[#allocation25_spill]]  ;;  %s7614_s17 = sld [smem:[#allocation27_spill]] }
 0x106   : > { %1310 = vmatpush1.bf16.msra.mxu0 %v6071_v28  ;;  %1351 = vmatpush1.bf16.msra.mxu1 %v6072_v29  ;;  %v6139_v28 = vld [vmem:[#allocation5 + $0xe0] ss:$48 sps:$4 sm:$0xff]   ;;  %v6142_v29 = vld [vmem:[#allocation5 + $0xe8] ss:$48 sps:$4 sm:$0xff]   ;;  %s7615_s19 = sld [smem:[#allocation28_spill]]  ;;  %s7616_s8 = sld [smem:[#allocation29_spill]] }
 0x107   : > { %1311 = vmatprep.subr.bf16.mxu0 %v6073_v30  ;;  %1352 = vmatprep.subr.bf16.mxu1 %v6075_v31  ;;  %v6147_v30 = vld [vmem:[#allocation5 + $0x144] ss:$48 sps:$4 sm:$0xff]   ;;  %v6150_v31 = vld [vmem:[#allocation5 + $0x14c] ss:$48 sps:$4 sm:$0xff]   ;;  %s7617_s15 = sld [smem:[#allocation30_spill]]  ;;  %s5507_s1 = sshll.u32 %s6901_s27, 7 }
 0x108   : > { %s623_s28 = scalar_lea.vmem [#allocation14], %s5139_s16  ;;  %s7618_s0 = sld [smem:[#allocation31_spill]] }
 0x109   : > { %s5000_s10 = sshll.u32 %s623_s28, 4  ;;  %p7619_p5 = scmp.ne.s32.totalorder %s7600_s7, 0  ;;  %s7505_s10 = int_to_ptr.vmem [resolvable:$true] %s5000_s10 }
 0x10a   : > { %1312 = vmatpush1.bf16.msra.mxu0 %v6077_v32  ;;  %1353 = vmatpush1.bf16.msra.mxu1 %v6078_v33  ;;  %v6145_v32 = vld [vmem:[#allocation5 + $0x140] ss:$48 sps:$4 sm:$0xff]   ;;  %v6148_v33 = vld [vmem:[#allocation5 + $0x148] ss:$48 sps:$4 sm:$0xff]   ;;  %s6698_s3 = scalar_lea.vmem %s7505_s10, 128  ;;  %s6794_s27 = smov [#allocation14]  }
 0x10b   : > { %1379 = vmatprep.subr.bf16.mxu0 %v6081_v34  ;;  %1420 = vmatprep.subr.bf16.mxu1 %v6084_v35  ;;  %v6153_v34 = vld [vmem:[#allocation5 + $0x1a4] ss:$48 sps:$4 sm:$0xff]   ;;  %v6156_v35 = vld [vmem:[#allocation5 + $0x1ac] ss:$48 sps:$4 sm:$0xff]   ;;  %p6699_p6 = scmp.ne.s32.totalorder %s7505_s10, %s6698_s3  ;;  %s6702_s16 = sshll.u32 %s6794_s27, 4  ;;  %s6703_s16 = int_to_ptr.vmem [resolvable:$false] %s6702_s16 }
 0x10c   : > { %p6705_p11 = scmp.lt.s32.totalorder %s7505_s10, %s6703_s16 }
 0x10d   : > { %p6700_p10 = pnand %p6699_p6, %p7619_p5 }
 0x10e   : > { %s7503_s12 = scalar_lea.hbm %s7618_s0, %s5507_s1 }
 0x10f   : > { %p6701_p1 = pneg %p6700_p10 }
 0x179   : > { %v629_v37 = vpop.xlane.xlu0 %628 }
 0x17a   : > { %v631_v38 = vmul.f32 0.03125, %v629_v37  ;;  %v6151_v37 = vld [vmem:[#allocation5 + $0x1a0] ss:$48 sps:$4 sm:$0xff]  }
 0x17c   : > { %v636_v40 = vmul.f32 %v631_v38, %v631_v38  ;;  %v638_v45 = vsub.f32 %v7172_v0, %v631_v38  ;;  %v6097_v0 = vld [vmem:[#allocation5 + $0x130] ss:$48 sps:$4 sm:$0xff]   ;;  %v6154_v38 = vld [vmem:[#allocation5 + $0x1a8] ss:$48 sps:$4 sm:$0xff]  }
 0x17d   : > { %v634_v39 = vpop.xlane.xlu0 %633 }
 0x17e   : > { %v635_v41 = vmul.f32 0.03125, %v634_v39  ;;  %v6159_v39 = vld [vmem:[#allocation5 + $0x204] ss:$48 sps:$4 sm:$0xff]  }
 0x180   : > { %v637_v42 = vsub.f32 %v635_v41, %v636_v40  ;;  %v6162_v40 = vld [vmem:[#allocation5 + $0x20c] ss:$48 sps:$4 sm:$0xff]   ;;  %v6157_v41 = vld [vmem:[#allocation5 + $0x200] ss:$48 sps:$4 sm:$0xff]  }
 0x182   : > { %v639_v43 = vadd.f32 1e-05, %v637_v42  ;;  %v6160_v42 = vld [vmem:[#allocation5 + $0x208] ss:$48 sps:$4 sm:$0xff]  }
 0x184   : > { %6455 = vrsqrt.f32 %v639_v43  ;;  %v6165_v43 = vld [vmem:[#allocation5 + $0x264] ss:$48 sps:$4 sm:$0xff]  }
 0x18e   : > { %v6456_v46 = vpop.eup %6455 }
 0x18f   : > { %v641_v48 = vmul.f32 %v6456_v46, %v638_v45  ;;  %v6163_v45 = vld [vmem:[#allocation5 + $0x260] ss:$48 sps:$4 sm:$0xff]   ;;  %v6166_v46 = vld [vmem:[#allocation5 + $0x268] ss:$48 sps:$4 sm:$0xff]  }
 0x191   : > { %v648_v49 = vmul.f32 %v5147_v44, %v641_v48  ;;  %v6168_v44 = vld [vmem:[#allocation5 + $0x26c] ss:$48 sps:$4 sm:$0xff]  }
 0x192   : > { %v6174_v48 = vld [vmem:[#allocation5 + $0x2cc] ss:$48 sps:$4 sm:$0xff]  }
 0x193   : > { %v655_v52 = vadd.f32 %v5148_v47, %v648_v49  ;;  %v6171_v47 = vld [vmem:[#allocation5 + $0x2c4] ss:$48 sps:$4 sm:$0xff]   ;;  %v6169_v49 = vld [vmem:[#allocation5 + $0x2c0] ss:$48 sps:$4 sm:$0xff]  }
 0x195   : > { %v7186_v55 = vpack.c.bf16 %v655_v52, %v655_v52 }
 0x197   : > { %1330 = vmatmul.mubr.bf16.vlgmr.msra.gmra.mrb[0].mxu0 %v7186_v55  ;;  %1371 = vmatmul.mubr.bf16.vlgmr.msra.gmra.mrb[0].mxu1 %v7186_v55 }
 0x198   : > { %1380 = vmatpush1.bf16.msra.mxu0 %v6079_v50  ;;  %1421 = vmatpush1.bf16.msra.mxu1 %v6082_v51  ;;  %v6172_v50 = vld [vmem:[#allocation5 + $0x2c8] ss:$48 sps:$4 sm:$0xff]   ;;  %v6792_v51 = vmov 0.0  }
 0x199   : > { %1381 = vmatprep.subr.bf16.mxu0 %v6087_v53  ;;  %1422 = vmatprep.subr.bf16.mxu1 %v6090_v54 }
 0x19a   : > { %1411 = vmatprep.mubr.bf16.mxu0 %v6791_v36  ;;  %1452 = vmatprep.mubr.bf16.mxu1 %v6791_v36 }
 0x19c   : > { %1382 = vmatpush1.bf16.msra.mxu0 %v6085_v56  ;;  %1423 = vmatpush1.bf16.msra.mxu1 %v6088_v57 }
 0x19d   : > { %1383 = vmatprep.subr.bf16.mxu0 %v6093_v58  ;;  %1424 = vmatprep.subr.bf16.mxu1 %v6096_v59 }
 0x1a0   : > { %1384 = vmatpush1.bf16.msra.mxu0 %v6091_v60  ;;  %1425 = vmatpush1.bf16.msra.mxu1 %v6094_v61  ;;  %v757_v60 = vlaneseq }
 0x1a1   : > { %1385 = vmatprep.subr.bf16.mxu0 %v6099_v62  ;;  %1426 = vmatprep.subr.bf16.mxu1 %v6102_v63 }
 0x1a2   : > { %v7206_v61 = vshrl.u32 %v757_v60, 7 }
 0x1a4   : > { %1386 = vmatpush1.bf16.msra.mxu0 %v6097_v0  ;;  %1427 = vmatpush1.bf16.msra.mxu1 %v6100_v1  ;;  %v775_v62 = vsub.s32 4, %v7206_v61  ;;  %v783_v63 = vsub.s32 6, %v7206_v61  ;;  %v7210_v0 = vld [vmem:[#allocation7] sm:$0xff] }
 0x1a5   : > { %1387 = vmatprep.subr.bf16.mxu0 %v6105_v2  ;;  %1428 = vmatprep.subr.bf16.mxu1 %v6108_v3  ;;  %v7219_v3 = vsub.s32 0, %v7206_v61 }
 0x1a6   : > { %v776_v1 = vrot.slane %v7210_v0, %v775_v62  ;;  %v784_v2 = vrot.slane %v7210_v0, %v783_v63 }
 0x1a8   : > { %1388 = vmatpush1.bf16.msra.mxu0 %v6103_v4  ;;  %1429 = vmatpush1.bf16.msra.mxu1 %v6106_v5  ;;  %v7222_v4 = vsub.s32 2, %v7206_v61  ;;  %v787_v5 = vsub.s32 7, %v7206_v61 }
 0x1a9   : > { %1389 = vmatprep.subr.bf16.mxu0 %v6111_v6  ;;  %1430 = vmatprep.subr.bf16.mxu1 %v6114_v7 }
 0x1ac   : > { %1390 = vmatpush1.bf16.msra.mxu0 %v6109_v8  ;;  %1431 = vmatpush1.bf16.msra.mxu1 %v6112_v9 }
 0x1ad   : > { %1391 = vmatprep.subr.bf16.mxu0 %v6117_v10  ;;  %1432 = vmatprep.subr.bf16.mxu1 %v6120_v11 }
 0x1b0   : > { %1392 = vmatpush1.bf16.msra.mxu0 %v6115_v12  ;;  %1433 = vmatpush1.bf16.msra.mxu1 %v6118_v13  ;;  %v760_v12 = vrot.slane %v7210_v0, %v7219_v3  ;;  %v768_v13 = vrot.slane %v7210_v0, %v7222_v4 }
 0x1b1   : > { %1393 = vmatprep.subr.bf16.mxu0 %v6123_v14  ;;  %1434 = vmatprep.subr.bf16.mxu1 %v6126_v15 }
 0x1b4   : > { %1394 = vmatpush1.bf16.msra.mxu0 %v6121_v16  ;;  %1435 = vmatpush1.bf16.msra.mxu1 %v6124_v17 }
 0x1b5   : > { %1461 = vmatprep.subr.bf16.mxu0 %v6129_v18  ;;  %1502 = vmatprep.subr.bf16.mxu1 %v6132_v19  ;;  %v788_v18 = vrot.slane %v7210_v0, %v787_v5 }
 0x1b7   : > { %1412 = vmatmul.mubr.bf16.vlgmr.msra.gmra.mrb[4].mxu0 %v7186_v55  ;;  %1453 = vmatmul.mubr.bf16.vlgmr.msra.gmra.mrb[4].mxu1 %v7186_v55 }
 0x1b8   : > { %1462 = vmatpush1.bf16.msra.mxu0 %v6127_v20  ;;  %1503 = vmatpush1.bf16.msra.mxu1 %v6130_v21 }
 0x1b9   : > { %1463 = vmatprep.subr.bf16.mxu0 %v6135_v22  ;;  %1504 = vmatprep.subr.bf16.mxu1 %v6138_v23  ;;  %v7235_v23 = vsub.s32 3, %v7206_v61 }
 0x1ba   : > { %1493 = vmatprep.mubr.bf16.mxu0 %v6791_v36  ;;  %1534 = vmatprep.mubr.bf16.mxu1 %v6791_v36 }
 0x1bc   : > { %1464 = vmatpush1.bf16.msra.mxu0 %v6133_v24  ;;  %1505 = vmatpush1.bf16.msra.mxu1 %v6136_v25 }
 0x1bd   : > { %1465 = vmatprep.subr.bf16.mxu0 %v6141_v26  ;;  %1506 = vmatprep.subr.bf16.mxu1 %v6144_v27  ;;  %v772_v27 = vrot.slane %v7210_v0, %v7235_v23 }
 0x1c0   : > { %1466 = vmatpush1.bf16.msra.mxu0 %v6139_v28  ;;  %1507 = vmatpush1.bf16.msra.mxu1 %v6142_v29 }
 0x1c1   : > { %1467 = vmatprep.subr.bf16.mxu0 %v6147_v30  ;;  %1508 = vmatprep.subr.bf16.mxu1 %v6150_v31  ;;  %v754_v31 = vld [vmem:[#allocation7 + $0x8] sm:$0xf] }
 0x1c4   : > { %1468 = vmatpush1.bf16.msra.mxu0 %v6145_v32  ;;  %1509 = vmatpush1.bf16.msra.mxu1 %v6148_v33  ;;  %v7246_v32 = vsub.s32 1, %v7206_v61  ;;  %v792_v33 = vrot.slane %v754_v31, %v7219_v3 }
 0x1c5   : > { %1469 = vmatprep.subr.bf16.mxu0 %v6153_v34  ;;  %1510 = vmatprep.subr.bf16.mxu1 %v6156_v35  ;;  %v800_v34 = vrot.slane %v754_v31, %v7222_v4 }
 0x1c6   : > { %v796_v35 = vrot.slane %v754_v31, %v7246_v32 }
 0x1c8   : > { %1470 = vmatpush1.bf16.msra.mxu0 %v6151_v37  ;;  %1511 = vmatpush1.bf16.msra.mxu1 %v6154_v38  ;;  %v804_v37 = vrot.slane %v754_v31, %v7235_v23 }
 0x1c9   : > { %1471 = vmatprep.subr.bf16.mxu0 %v6159_v39  ;;  %1512 = vmatprep.subr.bf16.mxu1 %v6162_v40 }
 0x1cc   : > { %1472 = vmatpush1.bf16.msra.mxu0 %v6157_v41  ;;  %1513 = vmatpush1.bf16.msra.mxu1 %v6160_v42 }
 0x1cd   : > { %1473 = vmatprep.subr.bf16.mxu0 %v6165_v43  ;;  %1514 = vmatprep.subr.bf16.mxu1 %v6168_v44 }
 0x1d0   : > { %1474 = vmatpush1.bf16.msra.mxu0 %v6163_v45  ;;  %1515 = vmatpush1.bf16.msra.mxu1 %v6166_v46 }
 0x1d1   : > { %1475 = vmatprep.subr.bf16.mxu0 %v6171_v47  ;;  %1516 = vmatprep.subr.bf16.mxu1 %v6174_v48 }
 0x1d4   : > { %1476 = vmatpush1.bf16.msra.mxu0 %v6169_v49  ;;  %1517 = vmatpush1.bf16.msra.mxu1 %v6172_v50 }
 0x1d5   : > { %5719 = vmatprep.subr.bf16.mxu1 %v6792_v51  ;;  %5743 = vmatprep.subr.bf16.mxu0 %v6792_v51 }
 0x1d7   : > { %1494 = vmatmul.mubr.bf16.vlgmr.msra.gmra.mrb[8].mxu0 %v7186_v55  ;;  %1535 = vmatmul.mubr.bf16.vlgmr.msra.gmra.mrb[8].mxu1 %v7186_v55 }
 0x1d8   : > { %5721 = vmatprep.mubr.msk.bf16.mxu1 %vm6793_vm0, %v6792_v51  ;;  %5745 = vmatprep.mubr.msk.bf16.mxu0 %vm6793_vm0, %v6792_v51 }
 0x26a   : > { %v1331_v52 = vpop.f32.mrb[0].mxu0  ;;  %v1372_v53 = vpop.f32.mrb[0].mxu1 }
 0x26b   : > { %v7204_v54 = vpop.f32.mrb[1].mxu0  ;;  %v1374_v56 = vpop.f32.mrb[1].mxu1  ;;  %v1332_v21 = vadd.f32 %v1331_v52, %v760_v12  ;;  %v1373_v22 = vadd.f32 %v1372_v53, %v768_v13 }
 0x26c   : > { %v1335_v57 = vpop.f32.mrb[2].mxu0  ;;  %v1376_v58 = vpop.f32.mrb[2].mxu1  ;;  %v1375_v29 = vadd.f32 %v1374_v56, %v772_v27 }
 0x26d   : > { %v1336_v55 = vpop.f32.mrb[3].mxu0  ;;  %v1377_v59 = vpop.f32.mrb[3].mxu1  ;;  %v1543_v25 = vpack.c.bf16 %v1332_v21, %v1332_v21  ;;  %v1749_v26 = vpack.c.bf16 %v1373_v22, %v1373_v22 }
 0x26e   : > { %v1851_v30 = vpack.c.bf16 %v1375_v29, %v1375_v29 }
 0x28a   : > { %v1413_v6 = vpop.f32.mrb[4].mxu0  ;;  %v1454_v7 = vpop.f32.mrb[4].mxu1 }
 0x28b   : > { %v1414_v8 = vadd.f32 %v1413_v6, %v776_v1  ;;  %v1455_v9 = vadd.f32 %v1454_v7, %v784_v2  ;;  %v7225_v10 = vpop.f32.mrb[5].mxu0  ;;  %v1456_v11 = vpop.f32.mrb[5].mxu1 }
 0x28c   : > { %v1417_v14 = vpop.f32.mrb[6].mxu0  ;;  %v1458_v15 = vpop.f32.mrb[6].mxu1  ;;  %v1457_v24 = vadd.f32 %v1456_v11, %v788_v18 }
 0x28d   : > { %v1544_v16 = vpack.c.bf16 %v1414_v8, %v1414_v8  ;;  %v1750_v17 = vpack.c.bf16 %v1455_v9, %v1455_v9  ;;  %v1418_v19 = vpop.f32.mrb[7].mxu0  ;;  %v1459_v20 = vpop.f32.mrb[7].mxu1 }
 0x28e   : > { %v1852_v28 = vpack.c.bf16 %v1457_v24, %v1457_v24  ;;  %v779_v20 = vsub.s32 5, %v7206_v61 }
 0x28f   : > { %5720 = vmatpush3.bf16.xpose.msra.mxu1 %v1544_v16  ;;  %5744 = vmatpush3.bf16.xpose.msra.mxu0 %v1750_v17 }
 0x290   : > { %5755 = vmatprep.subr.bf16.mxu0 %v6792_v51  ;;  %5725 = vmatprep.subr.bf16.mxu1 %v6792_v51  ;;  %v780_v21 = vrot.slane %v7210_v0, %v779_v20 }
 0x292   : > { %v1416_v24 = vadd.f32 %v7225_v10, %v780_v21  ;;  %v6193_v21 = vld [vmem:[#allocation8 + $0x30] sm:$0xff]  }
 0x296   : > { %5722 = vmatmul.mubr.bf16.vlgmr.msra.gmra.mrb[12].mxu1 %v1543_v25  ;;  %5746 = vmatmul.mubr.bf16.vlgmr.msra.gmra.mrb[12].mxu0 %v1749_v26  ;;  %v764_v26 = vrot.slane %v7210_v0, %v7246_v32 }
 0x297   : > { %5756 = vmatpush3.bf16.xpose.msra.mxu0 %v1852_v28  ;;  %5757 = vmatprep.mubr.msk.bf16.mxu0 %vm6793_vm0, %v6792_v51  ;;  %v1648_v28 = vpack.c.bf16 %v1416_v24, %v1416_v24 }
 0x298   : > { %5727 = vmatprep.mubr.msk.bf16.mxu1 %vm6793_vm0, %v6792_v51  ;;  %v1334_v29 = vadd.f32 %v7204_v54, %v764_v26 }
 0x29a   : > { %v1647_v31 = vpack.c.bf16 %v1334_v29, %v1334_v29 }
 0x29e   : > { %5758 = vmatmul.mubr.bf16.vlgmr.msra.gmra.mrb[16].mxu0 %v1851_v30 }
 0x2aa   : > { %v1495_v38 = vpop.f32.mrb[8].mxu0  ;;  %v1536_v39 = vpop.f32.mrb[8].mxu1 }
 0x2ab   : > { %v1496_v40 = vadd.f32 %v1495_v38, %v792_v33  ;;  %v7252_v41 = vadd.f32 %v1536_v39, %v800_v34  ;;  %v1497_v42 = vpop.f32.mrb[9].mxu0  ;;  %v1538_v43 = vpop.f32.mrb[9].mxu1 }
 0x2ac   : > { %v1498_v44 = vadd.f32 %v1497_v42, %v796_v35  ;;  %v7254_v45 = vadd.f32 %v1538_v43, %v804_v37  ;;  %v1499_v46 = vpop.f32.mrb[10].mxu0  ;;  %v1540_v47 = vpop.f32.mrb[10].mxu1 }
 0x2ad   : > { %v1545_v48 = vpack.c.bf16 %v1496_v40, %v1496_v40  ;;  %v1500_v49 = vpop.f32.mrb[11].mxu0  ;;  %v1541_v50 = vpop.f32.mrb[11].mxu1 }
 0x2ae   : > { %v1649_v30 = vpack.c.bf16 %v1498_v44, %v1498_v44 }
 0x2af   : > { %v1605_v52 = vsel %vm1603_vm1, %v1545_v48, 0 }
 0x2b0   : > { %5726 = vmatpush3.bf16.msra.mxu1 %v1605_v52  ;;  %v1707_v10 = vsel %vm1603_vm1, %v1649_v30, 0 }
 0x2b1   : > { %5731 = vmatprep.subr.bf16.mxu1 %v6792_v51 }
 0x369   : > { %v1580_v53 = vpop.f32.mrb[12].mxu1  ;;  %v1786_v56 = vpop.f32.mrb[12].mxu0 }
 0x36a   : > { %v1586_v57 = vmul.f32 0.35355338, %v1580_v53  ;;  %v5723_v58 = vpop.f32.mrb[13].mxu1  ;;  %v5747_v55 = vpop.f32.mrb[13].mxu0  ;;  %v1792_v16 = vmul.f32 0.35355338, %v1786_v56 }
 0x36b   : > { %v1583_v59 = vpop.f32.mrb[14].mxu1  ;;  %v1789_v60 = vpop.f32.mrb[14].mxu0 }
 0x36c   : > { %v5724_v1 = vpop.f32.mrb[15].mxu1  ;;  %v5748_v2 = vpop.f32.mrb[15].mxu0  ;;  %v1588_v6 = vsel %vm1587_vm2, %v1586_v57, -inf  ;;  %v1793_v18 = vsel %vm1587_vm2, %v1792_v16, -inf }
 0x36d   : > { %1589 = vmax.xlane.f32.xlu1 %v1588_v6  ;;  %v6175_v6 = vld [vmem:[#allocation8 + $0x40] sm:$0xff]  }
 0x36e   : > { %5526 = vmatprep.subr.bf16.mxu0 %v6175_v6 }
 0x371   : > { %v1888_v7 = vpop.f32.mrb[16].mxu0 }
 0x372   : > { %v5759_v8 = vpop.f32.mrb[17].mxu0  ;;  %v1894_v44 = vmul.f32 0.35355338, %v1888_v7  ;;  %v6176_v7 = vld [vmem:[#allocation8] sm:$0xff]  }
 0x373   : > { %v1891_v9 = vpop.f32.mrb[18].mxu0  ;;  %v6177_v8 = vld [vmem:[#allocation8 + $0x48] sm:$0xff]   ;;  %5527 = vmatpush3.bf16.msra.mxu0 %v6176_v7 }
 0x374   : > { %v5760_v11 = vpop.f32.mrb[19].mxu0  ;;  %v1895_v48 = vsel %vm1587_vm2, %v1894_v44, -inf  ;;  %v6178_v9 = vld [vmem:[#allocation8 + $0x8] sm:$0xff]   ;;  %5528 = vmatprep.subr.bf16.mxu0 %v6177_v8 }
 0x375   : > { %v6179_v11 = vld [vmem:[#allocation8 + $0x50] sm:$0xff]  }
 0x377   : > { %5529 = vmatpush3.bf16.msra.mxu0 %v6178_v9 }
 0x378   : > { %5530 = vmatprep.subr.bf16.mxu0 %v6179_v11 }
 0x3fa   : > { %v1590_v12 = vpop.xlane.xlu1 %1589 }
 0x3fb   : > { %v1591_v13 = vsub.f32 %v1586_v57, %v1590_v12  ;;  %v6180_v12 = vld [vmem:[#allocation8 + $0x10] sm:$0xff]  }
 0x3fc   : > { %5531 = vmatpush3.bf16.msra.mxu0 %v6180_v12 }
 0x3fd   : > { %v1592_v14 = vmul.f32 1.442695, %v1591_v13  ;;  %v6181_v13 = vld [vmem:[#allocation8 + $0x58] sm:$0xff]  }
 0x3fe   : > { %5532 = vmatprep.subr.bf16.mxu0 %v6181_v13 }
 0x3ff   : > { %6457 = vpow2.f32 %v1592_v14  ;;  %v6182_v14 = vld [vmem:[#allocation8 + $0x18] sm:$0xff]  }
 0x400   : > { %5533 = vmatpush3.bf16.msra.mxu0 %v6182_v14 }
 0x409   : > { %v6458_v15 = vpop.eup %6457 }
 0x40a   : > { %v1594_v17 = vsel %vm1587_vm2, %v6458_v15, 0.0 }
 0x40b   : > { %1595 = vadd.xlane.f32.xlu1 %v1594_v17  ;;  %v6187_v17 = vld [vmem:[#allocation8 + $0x68] sm:$0xff]  }
 0x40f   : > { %1794 = vmax.xlane.f32.xlu1 %v1793_v18  ;;  %v6189_v18 = vld [vmem:[#allocation8 + $0x28] sm:$0xff]  }
 0x498   : > { %v1596_v19 = vpop.xlane.xlu1 %1595 }
 0x499   : > { %6459 = vrcp.f32 %v1596_v19  ;;  %v6191_v19 = vld [vmem:[#allocation8 + $0x70] sm:$0xff]  }
 0x49c   : > { %v1795_v0 = vpop.xlane.xlu1 %1794 }
 0x49d   : > { %v1796_v33 = vsub.f32 %v1792_v16, %v1795_v0  ;;  %v6185_v16 = vld [vmem:[#allocation8 + $0x20] sm:$0xff]   ;;  %v1853_v0 = vpack.c.bf16 %v7254_v45, %v7254_v45  ;;  %v6190_v45 = vld [vmem:[#allocation8 + $0x88] sm:$0xff]  }
 0x49f   : > { %v1797_v37 = vmul.f32 1.442695, %v1796_v33 }
 0x4a1   : > { %6461 = vpow2.f32 %v1797_v37  ;;  %v1911_v37 = vsel %vm1603_vm1, %v1853_v0, 0 }
 0x4a3   : > { %v6460_v22 = vpop.eup %6459 }
 0x4a4   : > { %v1598_v25 = vmul.f32 %v6460_v22, %v6458_v15  ;;  %v6183_v15 = vld [vmem:[#allocation8 + $0x60] sm:$0xff]  }
 0x4a5   : > { %5534 = vmatprep.subr.bf16.mxu0 %v6183_v15 }
 0x4a6   : > { %v1599_v27 = vpack.c.bf16 %v1598_v25, %v1598_v25  ;;  %5535 = vmatpush3.bf16.msra.mxu0 %v6185_v16 }
 0x4a7   : > { %5536 = vmatprep.subr.bf16.mxu0 %v6187_v17 }
 0x4a8   : > { %5728 = vmatmul.mubr.msk.bf16.vlgmr.msra.gmra.mrb[16].mxu1 %vm1587_vm2, %v1599_v27  ;;  %v1751_v27 = vpack.c.bf16 %v7252_v41, %v7252_v41  ;;  %v6184_v41 = vld [vmem:[#allocation8 + $0xc0] sm:$0xff]  }
 0x4a9   : > { %5732 = vmatpush3.bf16.xpose.msra.mxu1 %v1648_v28  ;;  %5733 = vmatprep.mubr.msk.bf16.mxu1 %vm6793_vm0, %v6792_v51 }
 0x4aa   : > { %5737 = vmatprep.subr.bf16.mxu1 %v6792_v51  ;;  %5537 = vmatpush3.bf16.msra.mxu0 %v6189_v18 }
 0x4ab   : > { %v6462_v49 = vpop.eup %6461  ;;  %5538 = vmatprep.subr.bf16.mxu0 %v6191_v19 }
 0x4ac   : > { %v1799_v50 = vsel %vm1587_vm2, %v6462_v49, 0.0 }
 0x4ae   : > { %5539 = vmatpush3.bf16.msra.mxu0 %v6193_v21 }
 0x4b0   : > { %5734 = vmatmul.mubr.bf16.vlgmr.msra.gmra.mrb[20].mxu1 %v1647_v31  ;;  %v1809_v31 = vsel %vm1603_vm1, %v1751_v27, 0 }
 0x4b1   : > { %5738 = vmatpush3.bf16.msra.mxu1 %v1707_v10  ;;  %5739 = vmatprep.mubr.msk.bf16.mxu1 %vm6793_vm0, %v6792_v51 }
 0x4b2   : > { %5749 = vmatprep.subr.bf16.mxu1 %v6792_v51 }
 0x57b   : > { %v7277_v34 = vpop.f32.mrb[16].mxu1 }
 0x57c   : > { %v5729_v35 = vpop.f32.mrb[17].mxu1 }
 0x57d   : > { %v1644_v54 = vpop.f32.mrb[18].mxu1 }
 0x57e   : > { %v5730_v38 = vpop.f32.mrb[19].mxu1 }
 0x57f   : > { %v6186_v38 = vld [vmem:[#allocation8 + $0x80] sm:$0xff]  }
 0x583   : > { %v1684_v39 = vpop.f32.mrb[20].mxu1 }
 0x584   : > { %v1690_v40 = vmul.f32 0.35355338, %v1684_v39  ;;  %v5735_v42 = vpop.f32.mrb[21].mxu1 }
 0x585   : > { %v1687_v43 = vpop.f32.mrb[22].mxu1  ;;  %v6192_v42 = vld [vmem:[#allocation8 + $0xd0] sm:$0xff]  }
 0x586   : > { %v5736_v46 = vpop.f32.mrb[23].mxu1  ;;  %v1691_v47 = vsel %vm1587_vm2, %v1690_v40, -inf  ;;  %v6194_v43 = vld [vmem:[#allocation8 + $0x90] sm:$0xff]  }
 0x587   : > { %1692 = vmax.xlane.f32.xlu0 %v1691_v47  ;;  %v6196_v46 = vld [vmem:[#allocation8 + $0xd8] sm:$0xff]  }
 0x588   : > { %v6197_v47 = vld [vmem:[#allocation8 + $0x38] sm:$0xff]  }
 0x58b   : > { %1896 = vmax.xlane.f32.xlu0 %v1895_v48  ;;  %v6198_v48 = vld [vmem:[#allocation8 + $0x98] sm:$0xff]  }
 0x58f   : > { %1800 = vadd.xlane.f32.xlu0 %v1799_v50  ;;  %v6200_v50 = vld [vmem:[#allocation8 + $0xa0] sm:$0xff]  }
 0x614   : > { %v1693_v52 = vpop.xlane.xlu0 %1692 }
 0x615   : > { %v1694_v53 = vsub.f32 %v1690_v40, %v1693_v52  ;;  %v6188_v40 = vld [vmem:[#allocation8 + $0xc8] sm:$0xff]  }
 0x616   : > { %v6201_v52 = vld [vmem:[#allocation8 + $0xe8] sm:$0xff]  }
 0x617   : > { %v1695_v56 = vmul.f32 1.442695, %v1694_v53  ;;  %v6202_v53 = vld [vmem:[#allocation8 + $0xa8] sm:$0xff]  }
 0x618   : > { %v1897_v57 = vpop.xlane.xlu0 %1896 }
 0x619   : > { %6463 = vpow2.f32 %v1695_v56  ;;  %v1898_v58 = vsub.f32 %v1894_v44, %v1897_v57  ;;  %v6195_v44 = vld [vmem:[#allocation8 + $0x78] sm:$0xff]   ;;  %v6203_v56 = vld [vmem:[#allocation8 + $0xf0] sm:$0xff]  }
 0x61a   : > { %5540 = vmatprep.subr.bf16.mxu0 %v6195_v44  ;;  %v6204_v57 = vld [vmem:[#allocation8 + $0xb0] sm:$0xff]  }
 0x61b   : > { %v1899_v55 = vmul.f32 1.442695, %v1898_v58  ;;  %5541 = vmatpush3.bf16.msra.mxu0 %v6197_v47  ;;  %v6205_v58 = vld [vmem:[#allocation8 + $0xf8] sm:$0xff]  }
 0x61c   : > { %v1801_v24 = vpop.xlane.xlu0 %1800  ;;  %5767 = vmatprep.subr.bf16.mxu0 %v6792_v51 }
 0x61d   : > { %6465 = vpow2.f32 %v1899_v55  ;;  %v6206_v55 = vld [vmem:[#allocation8 + $0xb8] sm:$0xff]  }
 0x623   : > { %v6464_v59 = vpop.eup %6463 }
 0x624   : > { %v1697_v60 = vsel %vm1587_vm2, %v6464_v59, 0.0 }
 0x625   : > { %1698 = vadd.xlane.f32.xlu1 %v1697_v60 }
 0x627   : > { %v6466_v1 = vpop.eup %6465 }
 0x628   : > { %v1901_v2 = vsel %vm1587_vm2, %v6466_v1, 0.0 }
 0x629   : > { %1902 = vadd.xlane.f32.xlu1 %v1901_v2  ;;  %v1953_v2 = vpack.c.bf16 %v7277_v34, %v7277_v34  ;;  %v6207_v34 = vld [vmem:[#allocation10] sm:$0xff]  }
 0x6b2   : > { %v1699_v22 = vpop.xlane.xlu1 %1698 }
 0x6b3   : > { %6467 = vrcp.f32 %v1699_v22 }
 0x6b4   : > { %6469 = vrcp.f32 %v1801_v24 }
 0x6b6   : > { %v1903_v25 = vpop.xlane.xlu1 %1902 }
 0x6b7   : > { %6471 = vrcp.f32 %v1903_v25 }
 0x6bd   : > { %v6468_v26 = vpop.eup %6467 }
 0x6be   : > { %v1701_v28 = vmul.f32 %v6468_v26, %v6464_v59  ;;  %v6470_v30 = vpop.eup %6469  ;;  %v5249_v26 = vld [vmem:[%s7611_s4] ss:$0 sm:$0xff] }
 0x6bf   : > { %v1803_v10 = vmul.f32 %v6470_v30, %v6462_v49  ;;  %v6199_v49 = vld [vmem:[#allocation8 + $0xe0] sm:$0xff]  }
 0x6c0   : > { %v1702_v29 = vpack.c.bf16 %v1701_v28, %v1701_v28 }
 0x6c1   : > { %v1804_v33 = vpack.c.bf16 %v1803_v10, %v1803_v10  ;;  %v6472_v35 = vpop.eup %6471 }
 0x6c2   : > { %5740 = vmatmul.mubr.msk.bf16.vlgmr.msra.gmra.mrb[24].mxu1 %vm1587_vm2, %v1702_v29  ;;  %v1905_v54 = vmul.f32 %v6472_v35, %v6466_v1 }
 0x6c3   : > { %5750 = vmatpush3.bf16.msra.mxu1 %v1809_v31  ;;  %5751 = vmatprep.mubr.msk.bf16.mxu1 %vm6793_vm0, %v6792_v51 }
 0x6c4   : > { %5761 = vmatprep.subr.bf16.mxu1 %v6792_v51  ;;  %v1906_v39 = vpack.c.bf16 %v1905_v54, %v1905_v54  ;;  %v6209_v54 = vld [vmem:[#allocation10 + $0x10] sm:$0xff]  }
 0x6ca   : > { %5752 = vmatmul.mubr.msk.bf16.vlgmr.msra.gmra.mrb[28].mxu1 %vm1587_vm2, %v1804_v33  ;;  %v6499_v33 = vld [vmem:[%s7153_s20] sm:$0xff]  ;;  %s7613_s20 = sld [smem:[#allocation26_spill]] }
 0x6cb   : > { %5762 = vmatpush3.bf16.msra.mxu1 %v1911_v37  ;;  %5763 = vmatprep.mubr.msk.bf16.mxu1 %vm6793_vm0, %v6792_v51  ;;  %v6208_v37 = vld [vmem:[#allocation10 + $0x8] sm:$0xff]  }
 0x6cc   : > { %5548 = vmatprep.subr.bf16.mxu1 %v6184_v41 }
 0x6d2   : > { %5764 = vmatmul.mubr.msk.bf16.vlgmr.msra.gmra.mrb[32].mxu1 %vm1587_vm2, %v1906_v39  ;;  %v6211_v39 = vld [vmem:[#allocation10 + $0x20] sm:$0xff]  }
 0x6d3   : > { %5549 = vmatpush3.bf16.msra.mxu1 %v6186_v38  ;;  %v6210_v38 = vld [vmem:[#allocation10 + $0x18] sm:$0xff]  }
 0x6d4   : > { %5550 = vmatprep.subr.bf16.mxu1 %v6188_v40  ;;  %v6212_v40 = vld [vmem:[#allocation10 + $0x28] sm:$0xff]  }
 0x6d7   : > { %5551 = vmatpush3.bf16.msra.mxu1 %v6190_v45  ;;  %v6213_v45 = vld [vmem:[#allocation10 + $0x30] sm:$0xff]  }
 0x6d8   : > { %5552 = vmatprep.subr.bf16.mxu1 %v6192_v42  ;;  %v6214_v42 = vld [vmem:[#allocation10 + $0x38] sm:$0xff]  }
 0x6db   : > { %5553 = vmatpush3.bf16.msra.mxu1 %v6194_v43 }
 0x6dc   : > { %5554 = vmatprep.subr.bf16.mxu1 %v6196_v46 }
 0x6df   : > { %5555 = vmatpush3.bf16.msra.mxu1 %v6198_v48 }
 0x6e0   : > { %5556 = vmatprep.subr.bf16.mxu1 %v6199_v49 }
 0x6e3   : > { %5557 = vmatpush3.bf16.msra.mxu1 %v6200_v50 }
 0x6e4   : > { %5558 = vmatprep.subr.bf16.mxu1 %v6201_v52 }
 0x6e7   : > { %5559 = vmatpush3.bf16.msra.mxu1 %v6202_v53 }
 0x6e8   : > { %5560 = vmatprep.subr.bf16.mxu1 %v6203_v56  ;;  %v5282_v56 = vld [vmem:[%s7612_s18] ss:$0 sm:$0xff] }
 0x6eb   : > { %5561 = vmatpush3.bf16.msra.mxu1 %v6204_v57 }
 0x6ec   : > { %5562 = vmatprep.subr.bf16.mxu1 %v6205_v58  ;;  %v5283_v58 = vld [vmem:[%s7613_s20] ss:$0 sm:$0xff] }
 0x6ef   : > { %5563 = vmatpush3.bf16.msra.mxu1 %v6206_v55 }
 0x6f0   : > { %5787 = vmatprep.subr.bf16.mxu1 %v6792_v51 }
 0x795   : > { %v1743_v59 = vpop.f32.mrb[24].mxu1 }
 0x796   : > { %v1954_v60 = vpack.c.bf16 %v1743_v59, %v1743_v59  ;;  %v5741_v1 = vpop.f32.mrb[25].mxu1 }
 0x797   : > { %v1746_v6 = vpop.f32.mrb[26].mxu1  ;;  %v6215_v1 = vld [vmem:[#allocation11] sm:$0xff]  }
 0x798   : > { %v5742_v7 = vpop.f32.mrb[27].mxu1  ;;  %2252 = vmatprep.mubr.bf16.mxu0 %v1954_v60  ;;  %v6217_v6 = vld [vmem:[#allocation11 + $0x10] sm:$0xff]  }
 0x799   : > { %2253 = vmatmul.mubr.bf16.vlgmr.msra.gmra.mrb[20].mxu0 %v1953_v2  ;;  %v6216_v2 = vld [vmem:[#allocation11 + $0x8] sm:$0xff]   ;;  %v6218_v7 = vld [vmem:[#allocation11 + $0x18] sm:$0xff]  }
 0x79a   : > { %5783 = vmatprep.mubr.msk.bf16.mxu0 %vm6793_vm0, %v6792_v51  ;;  %5768 = vmatpush3.bf16.msra.mxu0 %v6207_v34 }
 0x79b   : > { %5769 = vmatprep.subr.bf16.mxu0 %v6792_v51 }
 0x79d   : > { %v1845_v8 = vpop.f32.mrb[28].mxu1 }
 0x79e   : > { %v5753_v9 = vpop.f32.mrb[29].mxu1  ;;  %v1955_v16 = vpack.c.bf16 %v1845_v8, %v1845_v8  ;;  %5770 = vmatpush3.bf16.msra.mxu0 %v6208_v37  ;;  %v6219_v8 = vld [vmem:[#allocation11 + $0x20] sm:$0xff]   ;;  %v6229_v37 = vld [vmem:[#allocation5 + $0x360] ss:$48 sps:$4 sm:$0xff]  }
 0x79f   : > { %v1848_v11 = vpop.f32.mrb[30].mxu1  ;;  %5771 = vmatprep.subr.bf16.mxu0 %v6792_v51  ;;  %v6220_v9 = vld [vmem:[#allocation11 + $0x28] sm:$0xff]  }
 0x7a0   : > { %v5754_v12 = vpop.f32.mrb[31].mxu1  ;;  %v6221_v11 = vld [vmem:[#allocation11 + $0x30] sm:$0xff]  }
 0x7a1   : > { %v6222_v12 = vld [vmem:[#allocation11 + $0x38] sm:$0xff]  }
 0x7a2   : > { %5772 = vmatpush3.bf16.msra.mxu0 %v6209_v54  ;;  %v6232_v54 = vld [vmem:[#allocation5 + $0x368] ss:$48 sps:$4 sm:$0xff]  }
 0x7a3   : > { %5773 = vmatprep.subr.bf16.mxu0 %v6792_v51 }
 0x7a5   : > { %v1947_v13 = vpop.f32.mrb[32].mxu1 }
 0x7a6   : > { %v1956_v14 = vpack.c.bf16 %v1947_v13, %v1947_v13  ;;  %v5765_v15 = vpop.f32.mrb[33].mxu1  ;;  %5774 = vmatpush3.bf16.msra.mxu0 %v6210_v38  ;;  %v5284_v13 = vld [vmem:[%s7614_s17] ss:$0 sm:$0xff] }
 0x7a7   : > { %v1950_v17 = vpop.f32.mrb[34].mxu1  ;;  %5775 = vmatprep.subr.bf16.mxu0 %v6792_v51 }
 0x7a8   : > { %v5766_v18 = vpop.f32.mrb[35].mxu1  ;;  %2292 = vmatprep.mubr.bf16.mxu1 %v1956_v14 }
 0x7a9   : > { %2293 = vmatmul.mubr.bf16.vlgmr.msra.gmra.mrb[36].mxu1 %v1955_v16 }
 0x7aa   : > { %5803 = vmatprep.mubr.msk.bf16.mxu1 %vm6793_vm0, %v6792_v51  ;;  %5776 = vmatpush3.bf16.msra.mxu0 %v6211_v39  ;;  %v5301_v39 = vld [vmem:[%s7615_s19] ss:$0 sm:$0xff] }
 0x7ab   : > { %5777 = vmatprep.subr.bf16.mxu0 %v6792_v51  ;;  %5788 = vmatpush3.bf16.msra.mxu1 %v6215_v1  ;;  %v6258_v1 = vld [vmem:[#allocation5 + $0x4ec] ss:$48 sps:$4 sm:$0xff]  }
 0x7ac   : > { %5789 = vmatprep.subr.bf16.mxu1 %v6792_v51 }
 0x7ae   : > { %5778 = vmatpush3.bf16.msra.mxu0 %v6212_v40 }
 0x7af   : > { %5779 = vmatprep.subr.bf16.mxu0 %v6792_v51  ;;  %5790 = vmatpush3.bf16.msra.mxu1 %v6216_v2  ;;  %v6253_v2 = vld [vmem:[#allocation5 + $0x4e0] ss:$48 sps:$4 sm:$0xff]  }
 0x7b0   : > { %5791 = vmatprep.subr.bf16.mxu1 %v6792_v51 }
 0x7b2   : > { %5780 = vmatpush3.bf16.msra.mxu0 %v6213_v45 }
 0x7b3   : > { %5781 = vmatprep.subr.bf16.mxu0 %v6792_v51  ;;  %5792 = vmatpush3.bf16.msra.mxu1 %v6217_v6  ;;  %v6256_v6 = vld [vmem:[#allocation5 + $0x4e8] ss:$48 sps:$4 sm:$0xff]  }
 0x7b4   : > { %5793 = vmatprep.subr.bf16.mxu1 %v6792_v51 }
 0x7b6   : > { %5782 = vmatpush3.bf16.msra.mxu0 %v6214_v42 }
 0x7b7   : > { %5794 = vmatpush3.bf16.msra.mxu1 %v6218_v7  ;;  %v6261_v7 = vld [vmem:[#allocation5 + $0x544] ss:$48 sps:$4 sm:$0xff]  }
 0x7b8   : > { %5795 = vmatprep.subr.bf16.mxu1 %v6792_v51 }
 0x7bb   : > { %5796 = vmatpush3.bf16.msra.mxu1 %v6219_v8  ;;  %v6264_v8 = vld [vmem:[#allocation5 + $0x54c] ss:$48 sps:$4 sm:$0xff]  }
 0x7bc   : > { %5797 = vmatprep.subr.bf16.mxu1 %v6792_v51 }
 0x7bf   : > { %5798 = vmatpush3.bf16.msra.mxu1 %v6220_v9  ;;  %v6259_v9 = vld [vmem:[#allocation5 + $0x540] ss:$48 sps:$4 sm:$0xff]  }
 0x7c0   : > { %5799 = vmatprep.subr.bf16.mxu1 %v6792_v51 }
 0x7c3   : > { %5800 = vmatpush3.bf16.msra.mxu1 %v6221_v11  ;;  %v6262_v11 = vld [vmem:[#allocation5 + $0x548] ss:$48 sps:$4 sm:$0xff]  }
 0x7c4   : > { %5801 = vmatprep.subr.bf16.mxu1 %v6792_v51 }
 0x7c7   : > { %5802 = vmatpush3.bf16.msra.mxu1 %v6222_v12  ;;  %v6265_v12 = vld [vmem:[#allocation5 + $0x5a0] ss:$48 sps:$4 sm:$0xff]  }
 0x86c   : > { %v5542_v19 = vpop.f32.mrb[20].mxu0 }
 0x86d   : > { %v5543_v21 = vpop.f32.mrb[21].mxu0 }
 0x86e   : > { %v5544_v22 = vadd.f32 %v5543_v21, %v5542_v19  ;;  %v5545_v24 = vpop.f32.mrb[22].mxu0 }
 0x86f   : > { %v5546_v25 = vpop.f32.mrb[23].mxu0 }
 0x870   : > { %v2255_v29 = vadd.f32 %v5544_v22, %v5249_v26 }
 0x87c   : > { %v5564_v27 = vpop.f32.mrb[36].mxu1 }
 0x87d   : > { %v5565_v28 = vpop.f32.mrb[37].mxu1 }
 0x87e   : > { %v5566_v30 = vadd.f32 %v5565_v28, %v5564_v27  ;;  %v5567_v31 = vpop.f32.mrb[38].mxu1 }
 0x87f   : > { %v5568_v10 = vpop.f32.mrb[39].mxu1  ;;  %v6225_v31 = vld [vmem:[#allocation5 + $0x304] ss:$48 sps:$4 sm:$0xff]  }
 0x880   : > { %v2295_v0 = vadd.f32 %v5566_v30, %v2255_v29  ;;  %v6223_v30 = vld [vmem:[#allocation5 + $0x300] ss:$48 sps:$4 sm:$0xff]   ;;  %v6226_v10 = vld [vmem:[#allocation5 + $0x308] ss:$48 sps:$4 sm:$0xff]   ;;  %3239 = vmatprep.subr.bf16.mxu0 %v6225_v31 }
 0x882   : > { %v7311_v41 = vadd.f32 %v6499_v33, %v2295_v0  ;;  %v6228_v0 = vld [vmem:[#allocation5 + $0x30c] ss:$48 sps:$4 sm:$0xff]   ;;  %v6231_v33 = vld [vmem:[#allocation5 + $0x364] ss:$48 sps:$4 sm:$0xff]  }
 0x883   : > { %3280 = vmatprep.subr.bf16.mxu1 %v6228_v0  ;;  %v6271_v0 = vld [vmem:[#allocation5 + $0x310] ss:$48 sps:$4 sm:$0xff]  }
 0x884   : > { %2303 = vadd.xlane.f32.xlu0 %v7311_v41  ;;  %v2306_v35 = vmul.f32 %v7311_v41, %v7311_v41 }
 0x886   : > { %2307 = vadd.xlane.f32.xlu1 %v2306_v35  ;;  %v6234_v35 = vld [vmem:[#allocation5 + $0x36c] ss:$48 sps:$4 sm:$0xff]  }
 0x911   : > { %v2304_v43 = vpop.xlane.xlu0 %2303 }
 0x912   : > { %v2305_v44 = vmul.f32 0.03125, %v2304_v43 }
 0x913   : > { %v2308_v46 = vpop.xlane.xlu1 %2307 }
 0x914   : > { %v2310_v47 = vmul.f32 %v2305_v44, %v2305_v44  ;;  %v2309_v48 = vmul.f32 0.03125, %v2308_v46  ;;  %v2312_v52 = vsub.f32 %v7311_v41, %v2305_v44 }
 0x916   : > { %v2311_v49 = vsub.f32 %v2309_v48, %v2310_v47  ;;  %v6237_v47 = vld [vmem:[#allocation5 + $0x3c4] ss:$48 sps:$4 sm:$0xff]   ;;  %v6240_v48 = vld [vmem:[#allocation5 + $0x3cc] ss:$48 sps:$4 sm:$0xff]  }
 0x918   : > { %v2313_v50 = vadd.f32 1e-05, %v2311_v49  ;;  %v6235_v49 = vld [vmem:[#allocation5 + $0x3c0] ss:$48 sps:$4 sm:$0xff]  }
 0x91a   : > { %6473 = vrsqrt.f32 %v2313_v50  ;;  %v6238_v50 = vld [vmem:[#allocation5 + $0x3c8] ss:$48 sps:$4 sm:$0xff]  }
 0x924   : > { %v6474_v53 = vpop.eup %6473 }
 0x925   : > { %v2315_v57 = vmul.f32 %v6474_v53, %v2312_v52  ;;  %v6246_v52 = vld [vmem:[#allocation5 + $0x42c] ss:$48 sps:$4 sm:$0xff]   ;;  %v6241_v53 = vld [vmem:[#allocation5 + $0x420] ss:$48 sps:$4 sm:$0xff]  }
 0x927   : > { %v2322_v55 = vmul.f32 %v5282_v56, %v2315_v57  ;;  %v6244_v56 = vld [vmem:[#allocation5 + $0x428] ss:$48 sps:$4 sm:$0xff]   ;;  %v6249_v57 = vld [vmem:[#allocation5 + $0x484] ss:$48 sps:$4 sm:$0xff]  }
 0x929   : > { %v2329_v59 = vadd.f32 %v5283_v58, %v2322_v55  ;;  %v6252_v58 = vld [vmem:[#allocation5 + $0x48c] ss:$48 sps:$4 sm:$0xff]   ;;  %v6247_v55 = vld [vmem:[#allocation5 + $0x480] ss:$48 sps:$4 sm:$0xff]  }
 0x92b   : > { %v2330_v60 = vpack.c.bf16 %v2329_v59, %v2329_v59  ;;  %v6250_v59 = vld [vmem:[#allocation5 + $0x488] ss:$48 sps:$4 sm:$0xff]  }
 0x92d   : > { %5784 = vmatmul.mubr.bf16.vlgmr.msra.gmra.mrb[24].mxu0 %v2330_v60  ;;  %v6255_v60 = vld [vmem:[#allocation5 + $0x4e4] ss:$48 sps:$4 sm:$0xff]  }
 0x92e   : > { %3271 = vmatprep.mubr.bf16.mxu0 %v6791_v36  ;;  %3240 = vmatpush1.bf16.msra.mxu0 %v6223_v30  ;;  %v5305_v30 = vld [vmem:[%s7553_s6 + $0x1] ss:$0 sm:$0xff] }
 0x92f   : > { %3241 = vmatprep.subr.bf16.mxu0 %v6231_v33  ;;  %v6274_v33 = vld [vmem:[#allocation5 + $0x318] ss:$48 sps:$4 sm:$0xff]  }
 0x932   : > { %3242 = vmatpush1.bf16.msra.mxu0 %v6229_v37  ;;  %v6279_v37 = vld [vmem:[#allocation5 + $0x374] ss:$48 sps:$4 sm:$0xff]  }
 0x933   : > { %3243 = vmatprep.subr.bf16.mxu0 %v6237_v47  ;;  %v6294_v47 = vld [vmem:[#allocation5 + $0x43c] ss:$48 sps:$4 sm:$0xff]  }
 0x936   : > { %3244 = vmatpush1.bf16.msra.mxu0 %v6235_v49  ;;  %v6292_v49 = vld [vmem:[#allocation5 + $0x438] ss:$48 sps:$4 sm:$0xff]  }
 0xa00   : > { %v2436_v14 = vpop.f32.mrb[24].mxu0 }
 0xa01   : > { %v2437_v15 = vadd.f32 %v5284_v13, %v2436_v14  ;;  %v5785_v16 = vpop.f32.mrb[25].mxu0  ;;  %v6267_v13 = vld [vmem:[#allocation5 + $0x5a4] ss:$48 sps:$4 sm:$0xff]   ;;  %v6268_v14 = vld [vmem:[#allocation5 + $0x5a8] ss:$48 sps:$4 sm:$0xff]  }
 0xa02   : > { %v2439_v17 = vpop.f32.mrb[26].mxu0  ;;  %v6273_v16 = vld [vmem:[#allocation5 + $0x314] ss:$48 sps:$4 sm:$0xff]  }
 0xa03   : > { %v2442_v18 = vmul.f32 %v2437_v15, %v2437_v15  ;;  %v5786_v34 = vpop.f32.mrb[27].mxu0  ;;  %v6276_v17 = vld [vmem:[#allocation5 + $0x31c] ss:$48 sps:$4 sm:$0xff]  }
 0xa05   : > { %v2443_v19 = vmul.f32 %v2442_v18, %v2437_v15 }
 0xa07   : > { %v2444_v21 = vmul.f32 0.044715, %v2443_v19 }
 0xa09   : > { %v2445_v22 = vadd.f32 %v2444_v21, %v2437_v15 }
 0xa0b   : > { %v2446_v24 = vmul.f32 0.7978846, %v2445_v22 }
 0xa0d   : > { %6475 = vtanh.f32 %v2446_v24 }
 0xa17   : > { %v6476_v25 = vpop.eup %6475 }
 0xa18   : > { %v2448_v26 = vadd.f32 1.0, %v6476_v25 }
 0xa1a   : > { %v2449_v27 = vmul.f32 0.5, %v2448_v26 }
 0xa1c   : > { %v2450_v28 = vmul.f32 %v2449_v27, %v2437_v15  ;;  %v6270_v15 = vld [vmem:[#allocation5 + $0x5ac] ss:$48 sps:$4 sm:$0xff]  }
 0xa1e   : > { %v2451_v29 = vpack.c.bf16 %v2450_v28, %v2450_v28  ;;  %v5304_v28 = vld [vmem:[%s7552_s5 + $0x1] ss:$0 sm:$0xff] }
 0xa20   : > { %5804 = vmatmul.mubr.bf16.vlgmr.msra.gmra.mrb[40].mxu1 %v2451_v29 }
 0xa21   : > { %3312 = vmatprep.mubr.bf16.mxu1 %v6791_v36  ;;  %3281 = vmatpush1.bf16.msra.mxu1 %v6226_v10 }
 0xa22   : > { %3282 = vmatprep.subr.bf16.mxu1 %v6234_v35 }
 0xa25   : > { %3283 = vmatpush1.bf16.msra.mxu1 %v6232_v54  ;;  %v6282_v54 = vld [vmem:[#allocation5 + $0x37c] ss:$48 sps:$4 sm:$0xff]  }
 0xa26   : > { %3284 = vmatprep.subr.bf16.mxu1 %v6240_v48  ;;  %v6289_v48 = vld [vmem:[#allocation5 + $0x430] ss:$48 sps:$4 sm:$0xff]  }
 0xa29   : > { %3285 = vmatpush1.bf16.msra.mxu1 %v6238_v50  ;;  %v6297_v50 = vld [vmem:[#allocation5 + $0x494] ss:$48 sps:$4 sm:$0xff]  }
 0xa2a   : > { %3286 = vmatprep.subr.bf16.mxu1 %v6246_v52  ;;  %v6295_v52 = vld [vmem:[#allocation5 + $0x490] ss:$48 sps:$4 sm:$0xff]  }
 0xa2d   : > { %3287 = vmatpush1.bf16.msra.mxu1 %v6244_v56  ;;  %v6303_v56 = vld [vmem:[#allocation5 + $0x4f4] ss:$48 sps:$4 sm:$0xff]  }
 0xa2e   : > { %3288 = vmatprep.subr.bf16.mxu1 %v6252_v58  ;;  %v6301_v58 = vld [vmem:[#allocation5 + $0x4f0] ss:$48 sps:$4 sm:$0xff]  }
 0xa31   : > { %3289 = vmatpush1.bf16.msra.mxu1 %v6250_v59  ;;  %v6309_v59 = vld [vmem:[#allocation5 + $0x554] ss:$48 sps:$4 sm:$0xff]  }
 0xa32   : > { %3290 = vmatprep.subr.bf16.mxu1 %v6258_v1  ;;  %v6307_v1 = vld [vmem:[#allocation5 + $0x550] ss:$48 sps:$4 sm:$0xff]  }
 0xa35   : > { %3291 = vmatpush1.bf16.msra.mxu1 %v6256_v6  ;;  %v6315_v6 = vld [vmem:[#allocation5 + $0x5b4] ss:$48 sps:$4 sm:$0xff]  }
 0xa36   : > { %3292 = vmatprep.subr.bf16.mxu1 %v6264_v8  ;;  %v6313_v8 = vld [vmem:[#allocation5 + $0x5b0] ss:$48 sps:$4 sm:$0xff]  }
 0xa39   : > { %3293 = vmatpush1.bf16.msra.mxu1 %v6262_v11  ;;  %v6321_v11 = vld [vmem:[#allocation5 + $0x324] ss:$48 sps:$4 sm:$0xff]  }
 0xa3a   : > { %3294 = vmatprep.subr.bf16.mxu1 %v6270_v15  ;;  %v6327_v15 = vld [vmem:[#allocation5 + $0x384] ss:$48 sps:$4 sm:$0xff]  }
 0xa3d   : > { %3295 = vmatpush1.bf16.msra.mxu1 %v6268_v14  ;;  %v6322_v14 = vld [vmem:[#allocation5 + $0x328] ss:$48 sps:$4 sm:$0xff]  }
 0xa3e   : > { %3362 = vmatprep.subr.bf16.mxu1 %v6276_v17  ;;  %v6325_v17 = vld [vmem:[#allocation5 + $0x380] ss:$48 sps:$4 sm:$0xff]  }
 0xaf3   : > { %v2550_v38 = vpop.f32.mrb[40].mxu1 }
 0xaf4   : > { %v2556_v40 = vadd.f32 %v2550_v38, %v7311_v41  ;;  %v5805_v45 = vpop.f32.mrb[41].mxu1  ;;  %v6243_v41 = vld [vmem:[#allocation5 + $0x424] ss:$48 sps:$4 sm:$0xff]   ;;  %v6277_v38 = vld [vmem:[#allocation5 + $0x370] ss:$48 sps:$4 sm:$0xff]  }
 0xaf5   : > { %v2553_v42 = vpop.f32.mrb[42].mxu1  ;;  %3245 = vmatprep.subr.bf16.mxu0 %v6243_v41  ;;  %v6288_v45 = vld [vmem:[#allocation5 + $0x3dc] ss:$48 sps:$4 sm:$0xff]  }
 0xaf6   : > { %v7345_v43 = vadd.f32 %v5301_v39, %v2556_v40  ;;  %v5806_v44 = vpop.f32.mrb[43].mxu1  ;;  %3246 = vmatpush1.bf16.msra.mxu0 %v6241_v53  ;;  %v6280_v39 = vld [vmem:[#allocation5 + $0x378] ss:$48 sps:$4 sm:$0xff]   ;;  %v6285_v40 = vld [vmem:[#allocation5 + $0x3d4] ss:$48 sps:$4 sm:$0xff]  }
 0xaf7   : > { %3247 = vmatprep.subr.bf16.mxu0 %v6249_v57  ;;  %v6283_v42 = vld [vmem:[#allocation5 + $0x3d0] ss:$48 sps:$4 sm:$0xff]   ;;  %v6286_v44 = vld [vmem:[#allocation5 + $0x3d8] ss:$48 sps:$4 sm:$0xff]   ;;  %v6300_v41 = vld [vmem:[#allocation5 + $0x49c] ss:$48 sps:$4 sm:$0xff]  }
 0xaf8   : > { %2569 = vadd.xlane.f32.xlu0 %v7345_v43  ;;  %v2572_v46 = vmul.f32 %v7345_v43, %v7345_v43  ;;  %v6298_v53 = vld [vmem:[#allocation5 + $0x498] ss:$48 sps:$4 sm:$0xff]   ;;  %v6306_v57 = vld [vmem:[#allocation5 + $0x4fc] ss:$48 sps:$4 sm:$0xff]  }
 0xafa   : > { %2573 = vadd.xlane.f32.xlu1 %v2572_v46  ;;  %3248 = vmatpush1.bf16.msra.mxu0 %v6247_v55  ;;  %v6291_v46 = vld [vmem:[#allocation5 + $0x434] ss:$48 sps:$4 sm:$0xff]   ;;  %v6304_v55 = vld [vmem:[#allocation5 + $0x4f8] ss:$48 sps:$4 sm:$0xff]  }
 0xafb   : > { %3249 = vmatprep.subr.bf16.mxu0 %v6255_v60  ;;  %v6312_v60 = vld [vmem:[#allocation5 + $0x55c] ss:$48 sps:$4 sm:$0xff]  }
 0xafe   : > { %3250 = vmatpush1.bf16.msra.mxu0 %v6253_v2  ;;  %v6310_v2 = vld [vmem:[#allocation5 + $0x558] ss:$48 sps:$4 sm:$0xff]  }
 0xaff   : > { %3251 = vmatprep.subr.bf16.mxu0 %v6261_v7  ;;  %v6318_v7 = vld [vmem:[#allocation5 + $0x5bc] ss:$48 sps:$4 sm:$0xff]  }
 0xb02   : > { %3252 = vmatpush1.bf16.msra.mxu0 %v6259_v9  ;;  %v6316_v9 = vld [vmem:[#allocation5 + $0x5b8] ss:$48 sps:$4 sm:$0xff]  }
 0xb03   : > { %3253 = vmatprep.subr.bf16.mxu0 %v6267_v13  ;;  %v6319_v13 = vld [vmem:[#allocation5 + $0x320] ss:$48 sps:$4 sm:$0xff]  }
 0xb06   : > { %3254 = vmatpush1.bf16.msra.mxu0 %v6265_v12  ;;  %v6324_v12 = vld [vmem:[#allocation5 + $0x32c] ss:$48 sps:$4 sm:$0xff]  }
 0xb07   : > { %3321 = vmatprep.subr.bf16.mxu0 %v6273_v16  ;;  %v6330_v16 = vld [vmem:[#allocation5 + $0x38c] ss:$48 sps:$4 sm:$0xff]  }
 0xb85   : > { %v2570_v18 = vpop.xlane.xlu0 %2569 }
 0xb86   : > { %v2571_v34 = vmul.f32 0.03125, %v2570_v18  ;;  %v6328_v18 = vld [vmem:[#allocation5 + $0x388] ss:$48 sps:$4 sm:$0xff]  }
 0xb87   : > { %v2574_v19 = vpop.xlane.xlu1 %2573 }
 0xb88   : > { %v2576_v21 = vmul.f32 %v2571_v34, %v2571_v34  ;;  %v2575_v22 = vmul.f32 0.03125, %v2574_v19  ;;  %v2578_v26 = vsub.f32 %v7345_v43, %v2571_v34  ;;  %v6333_v34 = vld [vmem:[#allocation5 + $0x3e4] ss:$48 sps:$4 sm:$0xff]   ;;  %v6336_v19 = vld [vmem:[#allocation5 + $0x3ec] ss:$48 sps:$4 sm:$0xff]  }
 0xb8a   : > { %v2577_v24 = vsub.f32 %v2575_v22, %v2576_v21  ;;  %v6331_v21 = vld [vmem:[#allocation5 + $0x3e0] ss:$48 sps:$4 sm:$0xff]   ;;  %v6334_v22 = vld [vmem:[#allocation5 + $0x3e8] ss:$48 sps:$4 sm:$0xff]  }
 0xb8c   : > { %v2579_v25 = vadd.f32 1e-05, %v2577_v24  ;;  %v6339_v24 = vld [vmem:[#allocation5 + $0x444] ss:$48 sps:$4 sm:$0xff]  }
 0xb8e   : > { %6477 = vrsqrt.f32 %v2579_v25  ;;  %v6342_v25 = vld [vmem:[#allocation5 + $0x44c] ss:$48 sps:$4 sm:$0xff]  }
 0xb98   : > { %v6478_v27 = vpop.eup %6477 }
 0xb99   : > { %v2581_v29 = vmul.f32 %v6478_v27, %v2578_v26  ;;  %v6337_v26 = vld [vmem:[#allocation5 + $0x440] ss:$48 sps:$4 sm:$0xff]   ;;  %v6340_v27 = vld [vmem:[#allocation5 + $0x448] ss:$48 sps:$4 sm:$0xff]  }
 0xb9b   : > { %v2588_v31 = vmul.f32 %v5304_v28, %v2581_v29  ;;  %v6345_v28 = vld [vmem:[#allocation5 + $0x4a4] ss:$48 sps:$4 sm:$0xff]   ;;  %v6348_v29 = vld [vmem:[#allocation5 + $0x4ac] ss:$48 sps:$4 sm:$0xff]  }
 0xb9d   : > { %v2595_v10 = vadd.f32 %v5305_v30, %v2588_v31  ;;  %v6343_v30 = vld [vmem:[#allocation5 + $0x4a0] ss:$48 sps:$4 sm:$0xff]   ;;  %v6351_v31 = vld [vmem:[#allocation5 + $0x504] ss:$48 sps:$4 sm:$0xff]  }
 0xb9f   : > { %v7357_v35 = vpack.c.bf16 %v2595_v10, %v2595_v10  ;;  %v6354_v10 = vld [vmem:[#allocation5 + $0x50c] ss:$48 sps:$4 sm:$0xff]  }
 0xba1   : > { %3272 = vmatmul.mubr.bf16.vlgmr.msra.gmra.mrb[28].mxu0 %v7357_v35  ;;  %3313 = vmatmul.mubr.bf16.vlgmr.msra.gmra.mrb[44].mxu1 %v7357_v35 }
 0xba2   : > { %3322 = vmatpush1.bf16.msra.mxu0 %v6271_v0  ;;  %3363 = vmatpush1.bf16.msra.mxu1 %v6274_v33  ;;  %v6349_v0 = vld [vmem:[#allocation5 + $0x500] ss:$48 sps:$4 sm:$0xff]   ;;  %v6352_v33 = vld [vmem:[#allocation5 + $0x508] ss:$48 sps:$4 sm:$0xff]  }
 0xba3   : > { %3323 = vmatprep.subr.bf16.mxu0 %v6279_v37  ;;  %3364 = vmatprep.subr.bf16.mxu1 %v6282_v54  ;;  %v6357_v37 = vld [vmem:[#allocation5 + $0x564] ss:$48 sps:$4 sm:$0xff]   ;;  %v6360_v54 = vld [vmem:[#allocation5 + $0x56c] ss:$48 sps:$4 sm:$0xff]  }
 0xba4   : > { %3353 = vmatprep.mubr.bf16.mxu0 %v6791_v36  ;;  %3394 = vmatprep.mubr.bf16.mxu1 %v6791_v36 }
 0xba6   : > { %3324 = vmatpush1.bf16.msra.mxu0 %v6277_v38  ;;  %3365 = vmatpush1.bf16.msra.mxu1 %v6280_v39  ;;  %v6355_v38 = vld [vmem:[#allocation5 + $0x560] ss:$48 sps:$4 sm:$0xff]   ;;  %v6358_v39 = vld [vmem:[#allocation5 + $0x568] ss:$48 sps:$4 sm:$0xff]  }
 0xba7   : > { %3325 = vmatprep.subr.bf16.mxu0 %v6285_v40  ;;  %3366 = vmatprep.subr.bf16.mxu1 %v6288_v45  ;;  %v6363_v40 = vld [vmem:[#allocation5 + $0x5c4] ss:$48 sps:$4 sm:$0xff]   ;;  %v6366_v45 = vld [vmem:[#allocation5 + $0x5cc] ss:$48 sps:$4 sm:$0xff]  }
 0xbaa   : > { %3326 = vmatpush1.bf16.msra.mxu0 %v6283_v42  ;;  %3367 = vmatpush1.bf16.msra.mxu1 %v6286_v44  ;;  %v6361_v42 = vld [vmem:[#allocation5 + $0x5c0] ss:$48 sps:$4 sm:$0xff]   ;;  %v6364_v44 = vld [vmem:[#allocation5 + $0x5c8] ss:$48 sps:$4 sm:$0xff]  }
 0xbab   : > { %3327 = vmatprep.subr.bf16.mxu0 %v6291_v46  ;;  %3368 = vmatprep.subr.bf16.mxu1 %v6294_v47 }
 0xbae   : > { %3328 = vmatpush1.bf16.msra.mxu0 %v6289_v48  ;;  %3369 = vmatpush1.bf16.msra.mxu1 %v6292_v49 }
 0xbaf   : > { %3329 = vmatprep.subr.bf16.mxu0 %v6297_v50  ;;  %3370 = vmatprep.subr.bf16.mxu1 %v6300_v41 }
 0xbb2   : > { %3330 = vmatpush1.bf16.msra.mxu0 %v6295_v52  ;;  %3371 = vmatpush1.bf16.msra.mxu1 %v6298_v53 }
 0xbb3   : > { %3331 = vmatprep.subr.bf16.mxu0 %v6303_v56  ;;  %3372 = vmatprep.subr.bf16.mxu1 %v6306_v57  ;;  %v2695_v56 = vld [vmem:[#allocation7 + $0xc] sm:$0xff] }
 0xbb4   : > { %v2718_v57 = vrot.slane %v2695_v56, %v775_v62 }
 0xbb6   : > { %3332 = vmatpush1.bf16.msra.mxu0 %v6301_v58  ;;  %3373 = vmatpush1.bf16.msra.mxu1 %v6304_v55 }
 0xbb7   : > { %3333 = vmatprep.subr.bf16.mxu0 %v6309_v59  ;;  %3374 = vmatprep.subr.bf16.mxu1 %v6312_v60 }
 0xbba   : > { %3334 = vmatpush1.bf16.msra.mxu0 %v6307_v1  ;;  %3375 = vmatpush1.bf16.msra.mxu1 %v6310_v2  ;;  %v2702_v1 = vrot.slane %v2695_v56, %v7219_v3 }
 0xbbb   : > { %3335 = vmatprep.subr.bf16.mxu0 %v6315_v6  ;;  %3376 = vmatprep.subr.bf16.mxu1 %v6318_v7 }
 0xbbe   : > { %3336 = vmatpush1.bf16.msra.mxu0 %v6313_v8  ;;  %3377 = vmatpush1.bf16.msra.mxu1 %v6316_v9  ;;  %v2722_v8 = vrot.slane %v2695_v56, %v779_v20 }
 0xbbf   : > { %3403 = vmatprep.subr.bf16.mxu0 %v6321_v11  ;;  %3444 = vmatprep.subr.bf16.mxu1 %v6324_v12 }
 0xbc1   : > { %3354 = vmatmul.mubr.bf16.vlgmr.msra.gmra.mrb[32].mxu0 %v7357_v35  ;;  %3395 = vmatmul.mubr.bf16.vlgmr.msra.gmra.mrb[48].mxu1 %v7357_v35 }
 0xbc2   : > { %3404 = vmatpush1.bf16.msra.mxu0 %v6319_v13  ;;  %3445 = vmatpush1.bf16.msra.mxu1 %v6322_v14  ;;  %v2706_v14 = vrot.slane %v2695_v56, %v7246_v32 }
 0xbc3   : > { %3405 = vmatprep.subr.bf16.mxu0 %v6327_v15  ;;  %3446 = vmatprep.subr.bf16.mxu1 %v6330_v16  ;;  %v2726_v15 = vrot.slane %v2695_v56, %v783_v63 }
 0xbc4   : > { %3435 = vmatprep.mubr.bf16.mxu0 %v6791_v36  ;;  %3476 = vmatprep.mubr.bf16.mxu1 %v6791_v36  ;;  %v6346_v36 = vld [vmem:[#allocation5 + $0x4a8] ss:$48 sps:$4 sm:$0xff]  }
 0xbc6   : > { %3406 = vmatpush1.bf16.msra.mxu0 %v6325_v17  ;;  %3447 = vmatpush1.bf16.msra.mxu1 %v6328_v18  ;;  %v2710_v18 = vrot.slane %v2695_v56, %v7222_v4 }
 0xbc7   : > { %3407 = vmatprep.subr.bf16.mxu0 %v6333_v34  ;;  %3448 = vmatprep.subr.bf16.mxu1 %v6336_v19 }
 0xbca   : > { %3408 = vmatpush1.bf16.msra.mxu0 %v6331_v21  ;;  %3449 = vmatpush1.bf16.msra.mxu1 %v6334_v22  ;;  %v2730_v21 = vrot.slane %v2695_v56, %v787_v5 }
 0xbcb   : > { %3409 = vmatprep.subr.bf16.mxu0 %v6339_v24  ;;  %3450 = vmatprep.subr.bf16.mxu1 %v6342_v25  ;;  %v2714_v25 = vrot.slane %v2695_v56, %v7235_v23 }
 0xbce   : > { %3410 = vmatpush1.bf16.msra.mxu0 %v6337_v26  ;;  %3451 = vmatpush1.bf16.msra.mxu1 %v6340_v27  ;;  %v2696_v26 = vld [vmem:[#allocation7 + $0x14] sm:$0xf] }
 0xbcf   : > { %3411 = vmatprep.subr.bf16.mxu0 %v6345_v28  ;;  %3452 = vmatprep.subr.bf16.mxu1 %v6348_v29  ;;  %v2734_v28 = vrot.slane %v2696_v26, %v7219_v3  ;;  %v2742_v5 = vrot.slane %v2696_v26, %v7222_v4 }
 0xbd2   : > { %3412 = vmatpush1.bf16.msra.mxu0 %v6343_v30  ;;  %3453 = vmatpush1.bf16.msra.mxu1 %v6346_v36  ;;  %v2738_v30 = vrot.slane %v2696_v26, %v7246_v32  ;;  %v2746_v36 = vrot.slane %v2696_v26, %v7235_v23 }
 0xbd3   : > { %3413 = vmatprep.subr.bf16.mxu0 %v6351_v31  ;;  %3454 = vmatprep.subr.bf16.mxu1 %v6354_v10 }
 0xbd6   : > { %3414 = vmatpush1.bf16.msra.mxu0 %v6349_v0  ;;  %3455 = vmatpush1.bf16.msra.mxu1 %v6352_v33 }
 0xbd7   : > { %3415 = vmatprep.subr.bf16.mxu0 %v6357_v37  ;;  %3456 = vmatprep.subr.bf16.mxu1 %v6360_v54 }
 0xbda   : > { %3416 = vmatpush1.bf16.msra.mxu0 %v6355_v38  ;;  %3457 = vmatpush1.bf16.msra.mxu1 %v6358_v39 }
 0xbdb   : > { %3417 = vmatprep.subr.bf16.mxu0 %v6363_v40  ;;  %3458 = vmatprep.subr.bf16.mxu1 %v6366_v45 }
 0xbde   : > { %3418 = vmatpush1.bf16.msra.mxu0 %v6361_v42  ;;  %3459 = vmatpush1.bf16.msra.mxu1 %v6364_v44 }
 0xbdf   : > { %5807 = vmatprep.subr.bf16.mxu0 %v6792_v51  ;;  %5813 = vmatprep.subr.bf16.mxu1 %v6792_v51 }
 0xbe1   : > { %3436 = vmatmul.mubr.bf16.vlgmr.msra.gmra.mrb[36].mxu0 %v7357_v35  ;;  %3477 = vmatmul.mubr.bf16.vlgmr.msra.gmra.mrb[52].mxu1 %v7357_v35 }
 0xbe2   : > { %5809 = vmatprep.mubr.msk.bf16.mxu0 %vm6793_vm0, %v6792_v51  ;;  %5815 = vmatprep.mubr.msk.bf16.mxu1 %vm6793_vm0, %v6792_v51 }
 0xc74   : > { %v3273_v46 = vpop.f32.mrb[28].mxu0  ;;  %v3314_v47 = vpop.f32.mrb[44].mxu1 }
 0xc75   : > { %v3275_v48 = vpop.f32.mrb[29].mxu0  ;;  %v3316_v49 = vpop.f32.mrb[45].mxu1  ;;  %v3274_v12 = vadd.f32 %v3273_v46, %v2702_v1  ;;  %v3315_v63 = vadd.f32 %v3314_v47, %v2710_v18 }
 0xc76   : > { %v3277_v50 = vpop.f32.mrb[30].mxu0  ;;  %v3318_v41 = vpop.f32.mrb[46].mxu1  ;;  %v3276_v20 = vadd.f32 %v3275_v48, %v2706_v14  ;;  %v3317_v29 = vadd.f32 %v3316_v49, %v2714_v25 }
 0xc77   : > { %v3278_v52 = vpop.f32.mrb[31].mxu0  ;;  %v3319_v53 = vpop.f32.mrb[47].mxu1  ;;  %v3485_v13 = vpack.c.bf16 %v3274_v12, %v3274_v12  ;;  %v3689_v24 = vpack.c.bf16 %v3315_v63, %v3315_v63 }
 0xc78   : > { %v3587_v34 = vpack.c.bf16 %v3276_v20, %v3276_v20  ;;  %v3791_v38 = vpack.c.bf16 %v3317_v29, %v3317_v29 }
 0xc94   : > { %v3355_v58 = vpop.f32.mrb[32].mxu0  ;;  %v3396_v35 = vpop.f32.mrb[48].mxu1 }
 0xc95   : > { %v3356_v55 = vadd.f32 %v3355_v58, %v2718_v57  ;;  %v3357_v59 = vpop.f32.mrb[33].mxu0  ;;  %v3398_v60 = vpop.f32.mrb[49].mxu1  ;;  %v3397_v17 = vadd.f32 %v3396_v35, %v2726_v15 }
 0xc96   : > { %v3359_v2 = vpop.f32.mrb[34].mxu0  ;;  %v3400_v6 = vpop.f32.mrb[50].mxu1  ;;  %v3358_v62 = vadd.f32 %v3357_v59, %v2722_v8  ;;  %v3399_v22 = vadd.f32 %v3398_v60, %v2730_v21 }
 0xc97   : > { %v3486_v7 = vpack.c.bf16 %v3356_v55, %v3356_v55  ;;  %v3360_v9 = vpop.f32.mrb[35].mxu0  ;;  %v3401_v11 = vpop.f32.mrb[51].mxu1  ;;  %v3690_v19 = vpack.c.bf16 %v3397_v17, %v3397_v17 }
 0xc98   : > { %v3588_v16 = vpack.c.bf16 %v3358_v62, %v3358_v62  ;;  %v3792_v27 = vpack.c.bf16 %v3399_v22, %v3399_v22 }
 0xc99   : > { %5808 = vmatpush3.bf16.xpose.msra.mxu0 %v3486_v7 }
 0xc9a   : > { %5819 = vmatprep.subr.bf16.mxu0 %v6792_v51 }
 0xca0   : > { %5810 = vmatmul.mubr.bf16.vlgmr.msra.gmra.mrb[40].mxu0 %v3485_v13 }
 0xca1   : > { %5820 = vmatpush3.bf16.xpose.msra.mxu0 %v3588_v16  ;;  %5821 = vmatprep.mubr.msk.bf16.mxu0 %vm6793_vm0, %v6792_v51 }
 0xca2   : > { %5831 = vmatprep.subr.bf16.mxu0 %v6792_v51 }
 0xca8   : > { %5822 = vmatmul.mubr.bf16.vlgmr.msra.gmra.mrb[44].mxu0 %v3587_v34 }
 0xca9   : > { %5832 = vmatpush3.bf16.xpose.msra.mxu0 %v3690_v19  ;;  %5833 = vmatprep.mubr.msk.bf16.mxu0 %vm6793_vm0, %v6792_v51 }
 0xcaa   : > { %5843 = vmatprep.subr.bf16.mxu0 %v6792_v51 }
 0xcb0   : > { %5834 = vmatmul.mubr.bf16.vlgmr.msra.gmra.mrb[48].mxu0 %v3689_v24 }
 0xcb1   : > { %5844 = vmatpush3.bf16.xpose.msra.mxu0 %v3792_v27  ;;  %5845 = vmatprep.mubr.msk.bf16.mxu0 %vm6793_vm0, %v6792_v51 }
 0xcb4   : > { %v3437_v31 = vpop.f32.mrb[36].mxu0  ;;  %v3478_v10 = vpop.f32.mrb[52].mxu1 }
 0xcb5   : > { %v3438_v0 = vadd.f32 %v3437_v31, %v2734_v28  ;;  %v7400_v33 = vadd.f32 %v3478_v10, %v2742_v5  ;;  %v3439_v37 = vpop.f32.mrb[37].mxu0  ;;  %v3480_v54 = vpop.f32.mrb[53].mxu1  ;;  %v6369_v31 = vld [vmem:[#allocation8 + $0x148] sm:$0xff]  }
 0xcb6   : > { %v7402_v39 = vadd.f32 %v3439_v37, %v2738_v30  ;;  %v7404_v3 = vadd.f32 %v3480_v54, %v2746_v36  ;;  %v3441_v4 = vpop.f32.mrb[38].mxu0  ;;  %v3482_v40 = vpop.f32.mrb[54].mxu1  ;;  %v6367_v30 = vld [vmem:[#allocation8 + $0x140] sm:$0xff]   ;;  %v6370_v10 = vld [vmem:[#allocation8 + $0x108] sm:$0xff]   ;;  %v6372_v37 = vld [vmem:[#allocation8 + $0x110] sm:$0xff]  }
 0xcb7   : > { %v3487_v45 = vpack.c.bf16 %v3438_v0, %v3438_v0  ;;  %v3442_v42 = vpop.f32.mrb[39].mxu0  ;;  %v3483_v44 = vpop.f32.mrb[55].mxu1  ;;  %v6368_v36 = vld [vmem:[#allocation8 + $0x100] sm:$0xff]   ;;  %5604 = vmatprep.subr.bf16.mxu0 %v6367_v30  ;;  %v6371_v0 = vld [vmem:[#allocation8 + $0x150] sm:$0xff]   ;;  %v6373_v54 = vld [vmem:[#allocation8 + $0x158] sm:$0xff]  }
 0xcb8   : > { %5846 = vmatmul.mubr.bf16.vlgmr.msra.gmra.mrb[52].mxu0 %v3791_v38  ;;  %v6374_v38 = vld [vmem:[#allocation8 + $0x118] sm:$0xff]   ;;  %v6375_v4 = vld [vmem:[#allocation8 + $0x160] sm:$0xff]  }
 0xcb9   : > { %v3545_v23 = vsel %vm1603_vm1, %v3487_v45, 0  ;;  %5605 = vmatpush3.bf16.msra.mxu0 %v6368_v36  ;;  %v6377_v40 = vld [vmem:[#allocation8 + $0x120] sm:$0xff]  }
 0xcba   : > { %5814 = vmatpush3.bf16.msra.mxu1 %v3545_v23  ;;  %5606 = vmatprep.subr.bf16.mxu0 %v6369_v31  ;;  %v3589_v23 = vpack.c.bf16 %v7402_v39, %v7402_v39 }
 0xcbb   : > { %5825 = vmatprep.subr.bf16.mxu1 %v6792_v51 }
 0xcbd   : > { %5607 = vmatpush3.bf16.msra.mxu0 %v6370_v10 }
 0xcbe   : > { %5608 = vmatprep.subr.bf16.mxu0 %v6371_v0 }
 0xcc1   : > { %5609 = vmatpush3.bf16.msra.mxu0 %v6372_v37 }
 0xcc2   : > { %5610 = vmatprep.subr.bf16.mxu0 %v6373_v54 }
 0xcc5   : > { %5611 = vmatpush3.bf16.msra.mxu0 %v6374_v38 }
 0xcc6   : > { %5612 = vmatprep.subr.bf16.mxu0 %v6375_v4 }
 0xcc9   : > { %5613 = vmatpush3.bf16.msra.mxu0 %v6377_v40 }
 0xd73   : > { %v3522_v32 = vpop.f32.mrb[40].mxu0 }
 0xd74   : > { %v3528_v46 = vmul.f32 0.35355338, %v3522_v32  ;;  %v5811_v47 = vpop.f32.mrb[41].mxu0 }
 0xd75   : > { %v3525_v48 = vpop.f32.mrb[42].mxu0  ;;  %v3647_v47 = vsel %vm1603_vm1, %v3589_v23, 0  ;;  %v6399_v23 = vld [vmem:[#allocation10 + $0x40] sm:$0xff]  }
 0xd76   : > { %v5812_v49 = vpop.f32.mrb[43].mxu0  ;;  %v3529_v50 = vsel %vm1587_vm2, %v3528_v46, -inf }
 0xd77   : > { %3530 = vmax.xlane.f32.xlu0 %v3529_v50  ;;  %v3691_v50 = vpack.c.bf16 %v7400_v33, %v7400_v33 }
 0xd7b   : > { %v3624_v41 = vpop.f32.mrb[44].mxu0 }
 0xd7c   : > { %v3630_v52 = vmul.f32 0.35355338, %v3624_v41  ;;  %v5823_v53 = vpop.f32.mrb[45].mxu0 }
 0xd7d   : > { %v3627_v56 = vpop.f32.mrb[46].mxu0 }
 0xd7e   : > { %v5824_v57 = vpop.f32.mrb[47].mxu0  ;;  %v3631_v58 = vsel %vm1587_vm2, %v3630_v52, -inf }
 0xd7f   : > { %3632 = vmax.xlane.f32.xlu1 %v3631_v58  ;;  %v3793_v57 = vpack.c.bf16 %v7404_v3, %v7404_v3  ;;  %v6379_v3 = vld [vmem:[#allocation8 + $0x168] sm:$0xff]  }
 0xd80   : > { %5614 = vmatprep.subr.bf16.mxu0 %v6379_v3  ;;  %v6406_v3 = vld [vmem:[#allocation10 + $0x78] sm:$0xff]  }
 0xd83   : > { %v3726_v35 = vpop.f32.mrb[48].mxu0 }
 0xd84   : > { %v3732_v55 = vmul.f32 0.35355338, %v3726_v35  ;;  %v5835_v59 = vpop.f32.mrb[49].mxu0  ;;  %v6376_v35 = vld [vmem:[#allocation8 + $0x1c0] sm:$0xff]  }
 0xd85   : > { %v3729_v60 = vpop.f32.mrb[50].mxu0 }
 0xd86   : > { %v5836_v1 = vpop.f32.mrb[51].mxu0  ;;  %v3733_v2 = vsel %vm1587_vm2, %v3732_v55, -inf }
 0xd87   : > { %3734 = vmax.xlane.f32.xlu0 %v3733_v2  ;;  %v6378_v1 = vld [vmem:[#allocation8 + $0x180] sm:$0xff]  }
 0xd8b   : > { %v3828_v6 = vpop.f32.mrb[52].mxu0 }
 0xd8c   : > { %v3834_v7 = vmul.f32 0.35355338, %v3828_v6  ;;  %v5847_v8 = vpop.f32.mrb[53].mxu0  ;;  %v6380_v6 = vld [vmem:[#allocation8 + $0x1c8] sm:$0xff]  }
 0xd8d   : > { %v3831_v9 = vpop.f32.mrb[54].mxu0  ;;  %v6382_v8 = vld [vmem:[#allocation8 + $0x188] sm:$0xff]  }
 0xd8e   : > { %v5848_v11 = vpop.f32.mrb[55].mxu0  ;;  %v3835_v12 = vsel %vm1587_vm2, %v3834_v7, -inf  ;;  %v6383_v9 = vld [vmem:[#allocation8 + $0x170] sm:$0xff]  }
 0xd8f   : > { %3836 = vmax.xlane.f32.xlu1 %v3835_v12  ;;  %v6384_v11 = vld [vmem:[#allocation8 + $0x1d0] sm:$0xff]  }
 0xd90   : > { %v6385_v12 = vld [vmem:[#allocation8 + $0x130] sm:$0xff]  }
 0xe04   : > { %v3531_v62 = vpop.xlane.xlu0 %3530 }
 0xe05   : > { %v3532_v13 = vsub.f32 %v3528_v46, %v3531_v62  ;;  %v6386_v62 = vld [vmem:[#allocation8 + $0x190] sm:$0xff]  }
 0xe07   : > { %v3533_v14 = vmul.f32 1.442695, %v3532_v13  ;;  %v6387_v13 = vld [vmem:[#allocation8 + $0x178] sm:$0xff]  }
 0xe09   : > { %6479 = vpow2.f32 %v3533_v14  ;;  %v6388_v14 = vld [vmem:[#allocation8 + $0x1d8] sm:$0xff]  }
 0xe0c   : > { %v3633_v15 = vpop.xlane.xlu1 %3632 }
 0xe0d   : > { %v3634_v16 = vsub.f32 %v3630_v52, %v3633_v15  ;;  %v3749_v52 = vsel %vm1603_vm1, %v3691_v50, 0  ;;  %v6389_v15 = vld [vmem:[#allocation8 + $0x138] sm:$0xff]  }
 0xe0e   : > { %v5407_v50 = vld [vmem:[%s7611_s4 + $0x1] ss:$0 sm:$0xff]  ;;  %s6704_s4 = scalar_lea.vmem %s6703_s16, 256 }
 0xe0f   : > { %v3635_v20 = vmul.f32 1.442695, %v3634_v16  ;;  %v6390_v16 = vld [vmem:[#allocation8 + $0x198] sm:$0xff]   ;;  %p6706_p12 = scmp.lt.s32.totalorder %s6704_s4, %s6698_s3 }
 0xe11   : > { %6481 = vpow2.f32 %v3635_v20  ;;  %v6391_v20 = vld [vmem:[#allocation8 + $0x1e0] sm:$0xff]   ;;  %p6707_p13 = por %p6706_p12, %p6705_p11 }
 0xe13   : > { %v6480_v17 = vpop.eup %6479  ;;  %p6708_p3 = pnand %p6707_p13, %p6701_p1 }
 0xe14   : > { %v3735_v18 = vpop.xlane.xlu0 %3734  ;;  %v3535_v34 = vsel %vm1587_vm2, %v6480_v17, 0.0 }
 0xe15   : > { %v3736_v19 = vsub.f32 %v3732_v55, %v3735_v18  ;;  %3536 = vadd.xlane.f32.xlu0 %v3535_v34  ;;  %v3851_v55 = vsel %vm1603_vm1, %v3793_v57, 0  ;;  %v6393_v18 = vld [vmem:[#allocation8 + $0x1e8] sm:$0xff]  }
 0xe16   : > { %v6394_v34 = vld [vmem:[#allocation8 + $0x1a8] sm:$0xff]  }
 0xe17   : > { %v3737_v21 = vmul.f32 1.442695, %v3736_v19  ;;  %v6395_v19 = vld [vmem:[#allocation8 + $0x1f0] sm:$0xff]  }
 0xe19   : > { %6483 = vpow2.f32 %v3737_v21  ;;  %v6396_v21 = vld [vmem:[#allocation8 + $0x1b0] sm:$0xff]  }
 0xe1b   : > { %v6482_v63 = vpop.eup %6481 }
 0xe1c   : > { %v3837_v22 = vpop.xlane.xlu1 %3836  ;;  %v3637_v24 = vsel %vm1587_vm2, %v6482_v63, 0.0 }
 0xe1d   : > { %v3838_v25 = vsub.f32 %v3834_v7, %v3837_v22  ;;  %3638 = vadd.xlane.f32.xlu1 %v3637_v24  ;;  %v6381_v7 = vld [vmem:[#allocation8 + $0x128] sm:$0xff]   ;;  %v6398_v22 = vld [vmem:[#allocation8 + $0x1b8] sm:$0xff]  }
 0xe1e   : > { %5615 = vmatpush3.bf16.msra.mxu0 %v6381_v7 }
 0xe1f   : > { %v3839_v26 = vmul.f32 1.442695, %v3838_v25  ;;  %5616 = vmatprep.subr.bf16.mxu0 %v6383_v9 }
 0xe21   : > { %6485 = vpow2.f32 %v3839_v26 }
 0xe22   : > { %5617 = vmatpush3.bf16.msra.mxu0 %v6385_v12 }
 0xe23   : > { %v6484_v27 = vpop.eup %6483  ;;  %5618 = vmatprep.subr.bf16.mxu0 %v6387_v13 }
 0xe24   : > { %v3739_v28 = vsel %vm1587_vm2, %v6484_v27, 0.0 }
 0xe25   : > { %3740 = vadd.xlane.f32.xlu0 %v3739_v28 }
 0xe26   : > { %5619 = vmatpush3.bf16.msra.mxu0 %v6389_v15  ;;  %v5442_v15 = vld [vmem:[%s7612_s18 + $0x1] ss:$0 sm:$0xff] }
 0xe27   : > { %5855 = vmatprep.subr.bf16.mxu0 %v6792_v51 }
 0xe2b   : > { %v6486_v5 = vpop.eup %6485 }
 0xe2c   : > { %v3841_v29 = vsel %vm1587_vm2, %v6486_v5, 0.0 }
 0xe2d   : > { %3842 = vadd.xlane.f32.xlu1 %v3841_v29 }
 0xea2   : > { %v3537_v45 = vpop.xlane.xlu0 %3536 }
 0xea3   : > { %6487 = vrcp.f32 %v3537_v45 }
 0xeaa   : > { %v3639_v42 = vpop.xlane.xlu1 %3638 }
 0xeab   : > { %6489 = vrcp.f32 %v3639_v42 }
 0xead   : > { %v6488_v44 = vpop.eup %6487 }
 0xeae   : > { %v3539_v32 = vmul.f32 %v6488_v44, %v6480_v17  ;;  %v6392_v17 = vld [vmem:[#allocation8 + $0x1a0] sm:$0xff]  }
 0xeb0   : > { %v3540_v46 = vpack.c.bf16 %v3539_v32, %v3539_v32 }
 0xeb2   : > { %5816 = vmatmul.mubr.msk.bf16.vlgmr.msra.gmra.mrb[56].mxu1 %vm1587_vm2, %v3540_v46  ;;  %v3741_v48 = vpop.xlane.xlu0 %3740 }
 0xeb3   : > { %5826 = vmatpush3.bf16.msra.mxu1 %v3647_v47  ;;  %6491 = vrcp.f32 %v3741_v48  ;;  %5827 = vmatprep.mubr.msk.bf16.mxu1 %vm6793_vm0, %v6792_v51 }
 0xeb4   : > { %5837 = vmatprep.subr.bf16.mxu1 %v6792_v51 }
 0xeb5   : > { %v6490_v49 = vpop.eup %6489 }
 0xeb6   : > { %v3641_v41 = vmul.f32 %v6490_v49, %v6482_v63  ;;  %v6397_v63 = vld [vmem:[#allocation8 + $0x1f8] sm:$0xff]  }
 0xeb8   : > { %v3642_v39 = vpack.c.bf16 %v3641_v41, %v3641_v41 }
 0xeba   : > { %5828 = vmatmul.mubr.msk.bf16.vlgmr.msra.gmra.mrb[60].mxu1 %vm1587_vm2, %v3642_v39  ;;  %v3843_v53 = vpop.xlane.xlu1 %3842 }
 0xebb   : > { %5838 = vmatpush3.bf16.msra.mxu1 %v3749_v52  ;;  %6493 = vrcp.f32 %v3843_v53  ;;  %5839 = vmatprep.mubr.msk.bf16.mxu1 %vm6793_vm0, %v6792_v51 }
 0xebc   : > { %5849 = vmatprep.subr.bf16.mxu1 %v6792_v51 }
 0xebd   : > { %v6492_v56 = vpop.eup %6491 }
 0xebe   : > { %v3743_v58 = vmul.f32 %v6492_v56, %v6484_v27 }
 0xec0   : > { %v3744_v33 = vpack.c.bf16 %v3743_v58, %v3743_v58 }
 0xec2   : > { %5840 = vmatmul.mubr.msk.bf16.vlgmr.msra.gmra.mrb[64].mxu1 %vm1587_vm2, %v3744_v33 }
 0xec3   : > { %5850 = vmatpush3.bf16.msra.mxu1 %v3851_v55  ;;  %5851 = vmatprep.mubr.msk.bf16.mxu1 %vm6793_vm0, %v6792_v51  ;;  %v6400_v55 = vld [vmem:[#allocation10 + $0x48] sm:$0xff]  }
 0xec4   : > { %5626 = vmatprep.subr.bf16.mxu1 %v6376_v35 }
 0xec5   : > { %v6494_v59 = vpop.eup %6493 }
 0xec6   : > { %v3845_v60 = vmul.f32 %v6494_v59, %v6486_v5  ;;  %v6401_v59 = vld [vmem:[#allocation10 + $0x50] sm:$0xff]  }
 0xec8   : > { %v3846_v2 = vpack.c.bf16 %v3845_v60, %v3845_v60  ;;  %v6402_v60 = vld [vmem:[#allocation10 + $0x58] sm:$0xff]  }
 0xeca   : > { %5852 = vmatmul.mubr.msk.bf16.vlgmr.msra.gmra.mrb[68].mxu1 %vm1587_vm2, %v3846_v2  ;;  %v6405_v2 = vld [vmem:[#allocation10 + $0x70] sm:$0xff]  }
 0xecb   : > { %5627 = vmatpush3.bf16.msra.mxu1 %v6378_v1  ;;  %v6403_v1 = vld [vmem:[#allocation10 + $0x60] sm:$0xff]  }
 0xecc   : > { %5628 = vmatprep.subr.bf16.mxu1 %v6380_v6 }
 0xecf   : > { %5629 = vmatpush3.bf16.msra.mxu1 %v6382_v8 }
 0xed0   : > { %5630 = vmatprep.subr.bf16.mxu1 %v6384_v11 }
 0xed3   : > { %5631 = vmatpush3.bf16.msra.mxu1 %v6386_v62 }
 0xed4   : > { %5632 = vmatprep.subr.bf16.mxu1 %v6388_v14 }
 0xed7   : > { %5633 = vmatpush3.bf16.msra.mxu1 %v6390_v16 }
 0xed8   : > { %5634 = vmatprep.subr.bf16.mxu1 %v6391_v20  ;;  %v5443_v20 = vld [vmem:[%s7613_s20 + $0x1] ss:$0 sm:$0xff] }
 0xedb   : > { %5635 = vmatpush3.bf16.msra.mxu1 %v6392_v17 }
 0xedc   : > { %5636 = vmatprep.subr.bf16.mxu1 %v6393_v18 }
 0xedf   : > { %5637 = vmatpush3.bf16.msra.mxu1 %v6394_v34 }
 0xee0   : > { %5638 = vmatprep.subr.bf16.mxu1 %v6395_v19  ;;  %v6407_v19 = vld [vmem:[#allocation11 + $0x40] sm:$0xff]  }
 0xee3   : > { %5639 = vmatpush3.bf16.msra.mxu1 %v6396_v21  ;;  %v6408_v21 = vld [vmem:[#allocation11 + $0x48] sm:$0xff]  }
 0xee4   : > { %5640 = vmatprep.subr.bf16.mxu1 %v6397_v63  ;;  %v6409_v63 = vld [vmem:[#allocation11 + $0x50] sm:$0xff]  }
 0xee7   : > { %5641 = vmatpush3.bf16.msra.mxu1 %v6398_v22  ;;  %v6410_v22 = vld [vmem:[#allocation11 + $0x58] sm:$0xff]  }
 0xee8   : > { %5875 = vmatprep.subr.bf16.mxu1 %v6792_v51 }
 0xf85   : > { %v3581_v24 = vpop.f32.mrb[56].mxu1 }
 0xf86   : > { %v5817_v25 = vpop.f32.mrb[57].mxu1  ;;  %v3893_v30 = vpack.c.bf16 %v3581_v24, %v3581_v24  ;;  %v6411_v24 = vld [vmem:[#allocation11 + $0x60] sm:$0xff]  }
 0xf87   : > { %v3584_v26 = vpop.f32.mrb[58].mxu1  ;;  %v6412_v25 = vld [vmem:[#allocation11 + $0x68] sm:$0xff]  }
 0xf88   : > { %v5818_v27 = vpop.f32.mrb[59].mxu1  ;;  %v6413_v26 = vld [vmem:[#allocation11 + $0x70] sm:$0xff]  }
 0xf89   : > { %v6414_v27 = vld [vmem:[#allocation11 + $0x78] sm:$0xff]  }
 0xf8d   : > { %v3683_v28 = vpop.f32.mrb[60].mxu1 }
 0xf8e   : > { %v3894_v5 = vpack.c.bf16 %v3683_v28, %v3683_v28  ;;  %v5829_v29 = vpop.f32.mrb[61].mxu1  ;;  %v6415_v28 = vld [vmem:[#allocation13 + $0x40] sm:$0xff]  }
 0xf8f   : > { %v3686_v36 = vpop.f32.mrb[62].mxu1  ;;  %v6417_v29 = vld [vmem:[#allocation13 + $0xc0] sm:$0xff]  }
 0xf90   : > { %v5830_v31 = vpop.f32.mrb[63].mxu1  ;;  %4194 = vmatprep.mubr.bf16.mxu0 %v3894_v5  ;;  %v6416_v5 = vld [vmem:[#allocation13] sm:$0xff]   ;;  %v6420_v36 = vld [vmem:[#allocation13 + $0x8] sm:$0xff]  }
 0xf91   : > { %4195 = vmatmul.mubr.bf16.vlgmr.msra.gmra.mrb[56].mxu0 %v3893_v30  ;;  %v6419_v30 = vld [vmem:[#allocation13 + $0x48] sm:$0xff]   ;;  %v6423_v31 = vld [vmem:[#allocation13 + $0x50] sm:$0xff]  }
 0xf92   : > { %5871 = vmatprep.mubr.msk.bf16.mxu0 %vm6793_vm0, %v6792_v51  ;;  %5856 = vmatpush3.bf16.msra.mxu0 %v6399_v23 }
 0xf93   : > { %5857 = vmatprep.subr.bf16.mxu0 %v6792_v51 }
 0xf95   : > { %v3785_v10 = vpop.f32.mrb[64].mxu1 }
 0xf96   : > { %v5841_v0 = vpop.f32.mrb[65].mxu1  ;;  %v3895_v45 = vpack.c.bf16 %v3785_v10, %v3785_v10  ;;  %5858 = vmatpush3.bf16.msra.mxu0 %v6400_v55  ;;  %v6424_v10 = vld [vmem:[#allocation13 + $0x10] sm:$0xff]   ;;  %v6422_v55 = vld [vmem:[#allocation13 + $0x88] sm:$0xff]  }
 0xf97   : > { %v3788_v37 = vpop.f32.mrb[66].mxu1  ;;  %5859 = vmatprep.subr.bf16.mxu0 %v6792_v51  ;;  %v6427_v0 = vld [vmem:[#allocation13 + $0x58] sm:$0xff]  }
 0xf98   : > { %v5842_v54 = vpop.f32.mrb[67].mxu1  ;;  %v6428_v37 = vld [vmem:[#allocation13 + $0x18] sm:$0xff]  }
 0xf99   : > { %v6431_v54 = vld [vmem:[#allocation13 + $0x60] sm:$0xff]  }
 0xf9a   : > { %5860 = vmatpush3.bf16.msra.mxu0 %v6401_v59  ;;  %v6425_v59 = vld [vmem:[#allocation13 + $0xd0] sm:$0xff]  }
 0xf9b   : > { %5861 = vmatprep.subr.bf16.mxu0 %v6792_v51 }
 0xf9d   : > { %v3887_v38 = vpop.f32.mrb[68].mxu1 }
 0xf9e   : > { %v3896_v4 = vpack.c.bf16 %v3887_v38, %v3887_v38  ;;  %v5853_v40 = vpop.f32.mrb[69].mxu1  ;;  %5862 = vmatpush3.bf16.msra.mxu0 %v6402_v60  ;;  %v6432_v38 = vld [vmem:[#allocation13 + $0x20] sm:$0xff]   ;;  %v6426_v60 = vld [vmem:[#allocation13 + $0x90] sm:$0xff]  }
 0xf9f   : > { %v3890_v42 = vpop.f32.mrb[70].mxu1  ;;  %5863 = vmatprep.subr.bf16.mxu0 %v6792_v51  ;;  %v6436_v40 = vld [vmem:[#allocation13 + $0x28] sm:$0xff]  }
 0xfa0   : > { %v5854_v44 = vpop.f32.mrb[71].mxu1  ;;  %4234 = vmatprep.mubr.bf16.mxu1 %v3896_v4  ;;  %v6435_v4 = vld [vmem:[#allocation13 + $0x68] sm:$0xff]  }
 0xfa1   : > { %4235 = vmatmul.mubr.bf16.vlgmr.msra.gmra.mrb[72].mxu1 %v3895_v45  ;;  %v5445_v45 = vld [vmem:[%s7614_s17 + $0x1] ss:$0 sm:$0xff] }
 0xfa2   : > { %5891 = vmatprep.mubr.msk.bf16.mxu1 %vm6793_vm0, %v6792_v51  ;;  %5864 = vmatpush3.bf16.msra.mxu0 %v6403_v1  ;;  %v6429_v1 = vld [vmem:[#allocation13 + $0xd8] sm:$0xff]  }
 0xfa3   : > { %5865 = vmatprep.subr.bf16.mxu0 %v6792_v51  ;;  %5876 = vmatpush3.bf16.msra.mxu1 %v6407_v19 }
 0xfa4   : > { %5877 = vmatprep.subr.bf16.mxu1 %v6792_v51 }
 0xfa7   : > { %5878 = vmatpush3.bf16.msra.mxu1 %v6408_v21 }
 0xfa8   : > { %5879 = vmatprep.subr.bf16.mxu1 %v6792_v51 }
 0xfab   : > { %5880 = vmatpush3.bf16.msra.mxu1 %v6409_v63 }
 0xfac   : > { %5881 = vmatprep.subr.bf16.mxu1 %v6792_v51 }
 0xfaf   : > { %5882 = vmatpush3.bf16.msra.mxu1 %v6410_v22 }
 0xfb0   : > { %5883 = vmatprep.subr.bf16.mxu1 %v6792_v51 }
 0xfb3   : > { %5884 = vmatpush3.bf16.msra.mxu1 %v6411_v24 }
 0xfb4   : > { %5885 = vmatprep.subr.bf16.mxu1 %v6792_v51 }
 0xfb7   : > { %5886 = vmatpush3.bf16.msra.mxu1 %v6412_v25 }
 0xfb8   : > { %5887 = vmatprep.subr.bf16.mxu1 %v6792_v51 }
 0xfbb   : > { %5888 = vmatpush3.bf16.msra.mxu1 %v6413_v26 }
 0xfbc   : > { %5889 = vmatprep.subr.bf16.mxu1 %v6792_v51 }
 0xfbf   : > { %5890 = vmatpush3.bf16.msra.mxu1 %v6414_v27 }
 0xfc0   : > { %5688 = vmatprep.subr.bf16.mxu1 %v6417_v29  ;;  %v6448_v29 = vld [vmem:[#allocation13 + $0x108] sm:$0xff]  }
0x1064   : > { %v5620_v32 = vpop.f32.mrb[56].mxu0 }
0x1065   : > { %v5621_v46 = vpop.f32.mrb[57].mxu0 }
0x1066   : > { %v5622_v47 = vadd.f32 %v5621_v46, %v5620_v32  ;;  %v5623_v48 = vpop.f32.mrb[58].mxu0 }
0x1067   : > { %v5624_v49 = vpop.f32.mrb[59].mxu0 }
0x1068   : > { %v4197_v52 = vadd.f32 %v5622_v47, %v5407_v50 }
0x1074   : > { %v5642_v41 = vpop.f32.mrb[72].mxu1 }
0x1075   : > { %v5643_v39 = vpop.f32.mrb[73].mxu1 }
0x1076   : > { %v5644_v53 = vadd.f32 %v5643_v39, %v5642_v41  ;;  %v5645_v56 = vpop.f32.mrb[74].mxu1 }
0x1077   : > { %v5646_v57 = vpop.f32.mrb[75].mxu1 }
0x1078   : > { %v4237_v58 = vadd.f32 %v5644_v53, %v4197_v52  ;;  %v6418_v57 = vld [vmem:[#allocation13 + $0x80] sm:$0xff]  }
0x107a   : > { %v7448_v33 = vadd.f32 %v4237_v58, %v7345_v43  ;;  %v6404_v43 = vld [vmem:[#allocation10 + $0x68] sm:$0xff]  }
0x107b   : > { %5866 = vmatpush3.bf16.msra.mxu0 %v6404_v43  ;;  %v6430_v43 = vld [vmem:[#allocation13 + $0x98] sm:$0xff]  }
0x107c   : > { %4247 = vadd.xlane.f32.xlu0 %v7448_v33  ;;  %v4250_v35 = vmul.f32 %v7448_v33, %v7448_v33  ;;  %5867 = vmatprep.subr.bf16.mxu0 %v6792_v51 }
0x107e   : > { %4251 = vadd.xlane.f32.xlu1 %v4250_v35  ;;  %v6421_v35 = vld [vmem:[#allocation13 + $0xc8] sm:$0xff]  }
0x107f   : > { %5868 = vmatpush3.bf16.msra.mxu0 %v6405_v2  ;;  %v6433_v2 = vld [vmem:[#allocation13 + $0xe0] sm:$0xff]  }
0x1080   : > { %5869 = vmatprep.subr.bf16.mxu0 %v6792_v51 }
0x1083   : > { %5870 = vmatpush3.bf16.msra.mxu0 %v6406_v3  ;;  %v6434_v3 = vld [vmem:[#allocation13 + $0xa0] sm:$0xff]  }
0x1084   : > { %5666 = vmatprep.subr.bf16.mxu0 %v6415_v28  ;;  %v6447_v28 = vld [vmem:[#allocation13 + $0x100] sm:$0xff]  }
0x1109   : > { %v4248_v6 = vpop.xlane.xlu0 %4247 }
0x110a   : > { %v4249_v7 = vmul.f32 0.03125, %v4248_v6  ;;  %v6437_v6 = vld [vmem:[#allocation13 + $0xe8] sm:$0xff]  }
0x110b   : > { %v4252_v8 = vpop.xlane.xlu1 %4251 }
0x110c   : > { %v4254_v9 = vmul.f32 %v4249_v7, %v4249_v7  ;;  %v4253_v11 = vmul.f32 0.03125, %v4252_v8  ;;  %v4256_v13 = vsub.f32 %v7448_v33, %v4249_v7  ;;  %v6438_v7 = vld [vmem:[#allocation13 + $0xa8] sm:$0xff]   ;;  %v6439_v8 = vld [vmem:[#allocation13 + $0x70] sm:$0xff]  }
0x110e   : > { %v4255_v12 = vsub.f32 %v4253_v11, %v4254_v9  ;;  %v6440_v9 = vld [vmem:[#allocation13 + $0x30] sm:$0xff]  }
0x110f   : > { %v6441_v11 = vld [vmem:[#allocation13 + $0xf0] sm:$0xff]  }
0x1110   : > { %v4257_v62 = vadd.f32 1e-05, %v4255_v12  ;;  %v6442_v12 = vld [vmem:[#allocation13 + $0xb0] sm:$0xff]  }
0x1112   : > { %6495 = vrsqrt.f32 %v4257_v62  ;;  %v6443_v62 = vld [vmem:[#allocation13 + $0x78] sm:$0xff]  }
0x111c   : > { %v6496_v14 = vpop.eup %6495 }
0x111d   : > { %v4259_v16 = vmul.f32 %v6496_v14, %v4256_v13  ;;  %v6444_v13 = vld [vmem:[#allocation13 + $0x38] sm:$0xff]  }
0x111e   : > { %v6445_v14 = vld [vmem:[#allocation13 + $0xf8] sm:$0xff]  }
0x111f   : > { %v4266_v17 = vmul.f32 %v5442_v15, %v4259_v16  ;;  %v6446_v15 = vld [vmem:[#allocation13 + $0xb8] sm:$0xff]  }
0x1121   : > { %v4273_v18 = vadd.f32 %v5443_v20, %v4266_v17  ;;  %v5463_v20 = vld [vmem:[%s7615_s19 + $0x1] ss:$0 sm:$0xff] }
0x1123   : > { %v4274_v34 = vpack.c.bf16 %v4273_v18, %v4273_v18 }
0x1125   : > { %5872 = vmatmul.mubr.bf16.vlgmr.msra.gmra.mrb[60].mxu0 %v4274_v34 }
0x1126   : > { %5667 = vmatpush3.bf16.msra.mxu0 %v6416_v5 }
0x1127   : > { %5668 = vmatprep.subr.bf16.mxu0 %v6419_v30  ;;  %v6450_v30 = vld [vmem:[#allocation13 + $0x118] sm:$0xff]  }
0x112a   : > { %5669 = vmatpush3.bf16.msra.mxu0 %v6420_v36  ;;  %v6451_v36 = vld [vmem:[#allocation13 + $0x120] sm:$0xff]  }
0x112b   : > { %5670 = vmatprep.subr.bf16.mxu0 %v6423_v31  ;;  %v6452_v31 = vld [vmem:[#allocation13 + $0x128] sm:$0xff]  }
0x112e   : > { %5671 = vmatpush3.bf16.msra.mxu0 %v6424_v10  ;;  %v6453_v10 = vld [vmem:[#allocation13 + $0x130] sm:$0xff]  }
0x112f   : > { %5672 = vmatprep.subr.bf16.mxu0 %v6427_v0  ;;  %v6454_v0 = vld [vmem:[#allocation13 + $0x138] sm:$0xff]  }
0x1132   : > { %5673 = vmatpush3.bf16.msra.mxu0 %v6428_v37 }
0x1133   : > { %5674 = vmatprep.subr.bf16.mxu0 %v6431_v54 }
0x1136   : > { %5675 = vmatpush3.bf16.msra.mxu0 %v6432_v38 }
0x1137   : > { %5676 = vmatprep.subr.bf16.mxu0 %v6435_v4 }
0x113a   : > { %5677 = vmatpush3.bf16.msra.mxu0 %v6436_v40  ;;  %v5464_v40 = vld [vmem:[%s7616_s8] ss:$0 sm:$0xff] }
0x113b   : > { %5678 = vmatprep.subr.bf16.mxu0 %v6439_v8 }
0x113e   : > { %5679 = vmatpush3.bf16.msra.mxu0 %v6440_v9 }
0x113f   : > { %5680 = vmatprep.subr.bf16.mxu0 %v6443_v62 }
0x1142   : > { %5681 = vmatpush3.bf16.msra.mxu0 %v6444_v13 }
0x1143   : > { %5895 = vmatprep.subr.bf16.mxu0 %v6792_v51 }
0x11f8   : > { %v4382_v42 = vpop.f32.mrb[60].mxu0 }
0x11f9   : > { %v4383_v44 = vadd.f32 %v5445_v45, %v4382_v42  ;;  %v5873_v23 = vpop.f32.mrb[61].mxu0 }
0x11fa   : > { %v4385_v32 = vpop.f32.mrb[62].mxu0 }
0x11fb   : > { %v4388_v46 = vmul.f32 %v4383_v44, %v4383_v44  ;;  %v5874_v47 = vpop.f32.mrb[63].mxu0 }
0x11fd   : > { %v4389_v48 = vmul.f32 %v4388_v46, %v4383_v44 }
0x11ff   : > { %v4390_v49 = vmul.f32 0.044715, %v4389_v48 }
0x1201   : > { %v4391_v50 = vadd.f32 %v4390_v49, %v4383_v44 }
0x1203   : > { %v4392_v41 = vmul.f32 0.7978846, %v4391_v50  ;;  %v5505_v50 = vld [vmem:[%s7617_s15] ss:$0 sm:$0xff]  ;;  %s4987_s15 = scalar_lea.sflag [#allocation4], %s7147_s2 }
0x1204   : > { %vm4977_vm3 = vcmp.lt.s32.totalorder %v7206_v61, %v5505_v50 }
0x1205   : > { %6497 = vtanh.f32 %v4392_v41 }
0x120f   : > { %v6498_v39 = vpop.eup %6497 }
0x1210   : > { %v4394_v52 = vadd.f32 1.0, %v6498_v39 }
0x1212   : > { %v4395_v53 = vmul.f32 0.5, %v4394_v52 }
0x1214   : > { %v4396_v56 = vmul.f32 %v4395_v53, %v4383_v44 }
0x1216   : > { %v4397_v58 = vpack.c.bf16 %v4396_v56, %v4396_v56 }
0x1218   : > { %5892 = vmatmul.mubr.bf16.vlgmr.msra.gmra.mrb[76].mxu1 %v4397_v58 }
0x1219   : > { %5689 = vmatpush3.bf16.msra.mxu1 %v6418_v57 }
0x121a   : > { %5690 = vmatprep.subr.bf16.mxu1 %v6421_v35 }
0x121d   : > { %5691 = vmatpush3.bf16.msra.mxu1 %v6422_v55 }
0x121e   : > { %5692 = vmatprep.subr.bf16.mxu1 %v6425_v59 }
0x1221   : > { %5693 = vmatpush3.bf16.msra.mxu1 %v6426_v60 }
0x1222   : > { %5694 = vmatprep.subr.bf16.mxu1 %v6429_v1 }
0x1225   : > { %5695 = vmatpush3.bf16.msra.mxu1 %v6430_v43 }
0x1226   : > { %5696 = vmatprep.subr.bf16.mxu1 %v6433_v2 }
0x1229   : > { %5697 = vmatpush3.bf16.msra.mxu1 %v6434_v3 }
0x122a   : > { %5698 = vmatprep.subr.bf16.mxu1 %v6437_v6 }
0x122d   : > { %5699 = vmatpush3.bf16.msra.mxu1 %v6438_v7 }
0x122e   : > { %5700 = vmatprep.subr.bf16.mxu1 %v6441_v11 }
0x1231   : > { %5701 = vmatpush3.bf16.msra.mxu1 %v6442_v12 }
0x1232   : > { %5702 = vmatprep.subr.bf16.mxu1 %v6445_v14 }
0x1235   : > { %5703 = vmatpush3.bf16.msra.mxu1 %v6446_v15 }
0x12eb   : > { %v4497_v16 = vpop.f32.mrb[76].mxu1 }
0x12ec   : > { %v4503_v17 = vadd.f32 %v4497_v16, %v7448_v33  ;;  %v5893_v18 = vpop.f32.mrb[77].mxu1  ;;  %v6449_v33 = vld [vmem:[#allocation13 + $0x110] sm:$0xff]  }
0x12ed   : > { %v4500_v34 = vpop.f32.mrb[78].mxu1 }
0x12ee   : > { %v4512_v19 = vadd.f32 %v5463_v20, %v4503_v17  ;;  %v5894_v21 = vpop.f32.mrb[79].mxu1 }
0x12f0   : > { %v4513_v63 = vrot.slane %v4512_v19, 1  ;;  %v4515_v22 = vrot.slane %v4512_v19, 3  ;;  %v4514_v24 = vrot.slane %v4512_v19, 2  ;;  %v4517_v5 = vpack.c.bf16 %v4512_v19, %v4512_v19 }
0x12f1   : > { %v4516_v37 = vrot.slane %v4512_v19, 4 }
0x12f2   : > { %v4518_v25 = vpack.c.bf16 %v4513_v63, %v4513_v63  ;;  %v4520_v26 = vpack.c.bf16 %v4515_v22, %v4515_v22  ;;  %v4519_v27 = vpack.c.bf16 %v4514_v24, %v4514_v24 }
0x12f3   : > { %v4521_v54 = vpack.c.bf16 %v4516_v37, %v4516_v37 }
0x12f4   : > { %4881 = vmatprep.mubr.bf16.mxu0 %v4518_v25  ;;  %4921 = vmatprep.mubr.bf16.mxu1 %v4520_v26 }
0x12f5   : > { %4882 = vmatmul.mubr.bf16.vlgmr.msra.gmra.mrb[64].mxu0 %v4517_v5  ;;  %4922 = vmatmul.mubr.bf16.vlgmr.msra.gmra.mrb[80].mxu1 %v4519_v27 }
0x12f6   : > { %5896 = vmatpush3.bf16.msra.mxu0 %v6447_v28  ;;  %5911 = vmatprep.mubr.msk.bf16.mxu0 %vm6793_vm0, %v6792_v51 }
0x12f7   : > { %5897 = vmatprep.subr.bf16.mxu0 %v6792_v51 }
0x12fa   : > { %5898 = vmatpush3.bf16.msra.mxu0 %v6448_v29 }
0x12fb   : > { %5899 = vmatprep.subr.bf16.mxu0 %v6792_v51 }
0x12fe   : > { %5900 = vmatpush3.bf16.msra.mxu0 %v6449_v33 }
0x12ff   : > { %5901 = vmatprep.subr.bf16.mxu0 %v6792_v51 }
0x1302   : > { %5902 = vmatpush3.bf16.msra.mxu0 %v6450_v30 }
0x1303   : > { %5903 = vmatprep.subr.bf16.mxu0 %v6792_v51 }
0x1306   : > { %5904 = vmatpush3.bf16.msra.mxu0 %v6451_v36 }
0x1307   : > { %5905 = vmatprep.subr.bf16.mxu0 %v6792_v51 }
0x130a   : > { %5906 = vmatpush3.bf16.msra.mxu0 %v6452_v31 }
0x130b   : > { %5907 = vmatprep.subr.bf16.mxu0 %v6792_v51 }
0x130e   : > { %5908 = vmatpush3.bf16.msra.mxu0 %v6453_v10 }
0x130f   : > { %5909 = vmatprep.subr.bf16.mxu0 %v6792_v51 }
0x1312   : > { %5910 = vmatpush3.bf16.msra.mxu0 %v6454_v0 }
0x1315   : > { %5912 = vmatmul.mubr.bf16.vlgmr.msra.gmra.mrb[68].mxu0 %v4521_v54 }
0x13c8   : > { %v5682_v38 = vpop.f32.mrb[64].mxu0  ;;  %v5704_v4 = vpop.f32.mrb[80].mxu1 }
0x13c9   : > { %v5683_v45 = vpop.f32.mrb[65].mxu0  ;;  %v5705_v42 = vpop.f32.mrb[81].mxu1 }
0x13ca   : > { %v5684_v44 = vadd.f32 %v5683_v45, %v5682_v38  ;;  %v5706_v23 = vadd.f32 %v5705_v42, %v5704_v4  ;;  %v5685_v32 = vpop.f32.mrb[66].mxu0  ;;  %v5707_v46 = vpop.f32.mrb[82].mxu1 }
0x13cb   : > { %v5686_v47 = vpop.f32.mrb[67].mxu0  ;;  %v5708_v48 = vpop.f32.mrb[83].mxu1 }
0x13cc   : > { %v4884_v51 = vadd.f32 %v5684_v44, %v5464_v40 }
0x13ce   : > { %v4924_v49 = vadd.f32 %v5706_v23, %v4884_v51 }
0x13e8   : > { %v4963_v41 = vpop.f32.mrb[68].mxu0 }
0x13e9   : > { %v4964_v39 = vadd.f32 %v4963_v41, %v4924_v49  ;;  %v5913_v52 = vpop.f32.mrb[69].mxu0 }
0x13ea   : > { %v4966_v53 = vpop.f32.mrb[70].mxu0 }
0x13eb   : > { %v4969_v56 = vmax.f32 %v4964_v39, 0.0  ;;  %v5914_v57 = vpop.f32.mrb[71].mxu0 }
0x13ed   : > { %v4978_v58 = vsel %vm4977_vm3, %v4969_v56, 0.0 }
0x13ee   : > { %v4979_v35 = vrot.slane %v4978_v58, 4 }
0x13f0   : > { %v4980_v55 = vmax.f32 %v4978_v58, %v4979_v35 }
0x13f2   : > { %v4981_v59 = vrot.slane %v4980_v55, 2 }
0x13f4   : > { %v4982_v60 = vmax.f32 %v4980_v55, %v4981_v59 }
0x13f6   : > { %v4983_v1 = vrot.slane %v4982_v60, 1 }
0x13f8   : > { %v4984_v43 = vmax.f32 %v4982_v60, %v4983_v1 }
0x13fa   : > { %4985 = vst [vmem:[%s623_s28] sm:$0xff] %v4984_v43 }
0x13fb   : > { %6711 = shalt.err (!%p6708_p3)
}
0x13fc   : > { %s6712_s2 = scalar_lea.hbm %s7503_s12, 128  ;;  %s6716_s14 = scalar_lea.hbm %s7618_s0, 256 }
0x13fd   : > { %p6713_p7 = scmp.ne.s32.totalorder %s7503_s12, %s6712_s2  ;;  %p6717_p8 = scmp.lt.u32.totalorder %s7503_s12, %s7618_s0 }
0x13fe   : > { %p6718_p0 = scmp.lt.u32.totalorder %s6716_s14, %s6712_s2  ;;  %p6720_p6 = scmp.lt.u32.totalorder %s6712_s2, %s7503_s12 }
0x13ff   : > { %p6714_p9 = pnand %p6713_p7, %p7619_p5 }
0x1400   : > { %p6719_p2 = por %p6718_p0, %p6717_p8 }
0x1401   : > { %p6715_p4 = pneg %p6714_p9 }
0x1402   : > { %p6721_p10 = por %p6720_p6, %p6719_p2 }
0x1404   : > { %p6722_p1 = pnand %p6721_p10, %p6715_p4 }
0x1406   : > { %6725 = shalt.err (!%p6722_p1)
}
0x1407   : > { %5941 = dma.vmem_to_hbm [thread:$0]  (%p7619_p5), %s7505_s10, 128, %s7503_s12, %s4987_s15  }
0x1408 PF: > { %s5012_s3 = sand.u32 1, %s6764_s21   ;;  %p7620_p11 = scmp.ne.s32.totalorder %s7601_s26, 0 }
0x1409   : > { %p7621_p12 = scmp.ge.s32.totalorder %s6776_s24, 2  ;;  %s5013_s4 = scalar_lea.sflag [#allocation4], %s5012_s3 }
0x140b   : > { %p5967_p13 = pnand %p7621_p12, %p7620_p11 }
0x140d   : > { %6759 = dma.done.wait (!%p5967_p13), %s5013_s4, 128  }
0x140e   : > { %6761 = vsyncadd (!%p5967_p13), %s5013_s4, 4294967168  ;;  %p32_p3 = scmp.ge.s32.totalorder %s7071_s29, 4   ;;  %s7622_s21 = smov %s6768_s22 }
0x140f   : > { %s7623_s22 = smov %s6772_s23  ;;  %s7624_s23 = smov %s7082_s25 }
0x1410   : > { %s7625_s24 = smov %s7071_s29  ;;  %34 = sbr.rel (!%p32_p3) target bundleno = 21 (0x15), region = 165 }
0x1417   :  { %5018 = vsyncpa [#allocation3], 1 }
0x1418   :  { %5020 = vsyncpa [#allocation3 + $0x1], 1 }
0x1419   :  { %5021 = vsyncpa [#allocation6], 1 }
0x141a   :  { %5022 = vsyncpa [#allocation9], 1 }
0x141b   :  { %5023 = vsyncpa [#allocation12], 1 }
0x141c   :  { %5024 = vsyncpa [#allocation4], 1 }
0x141d   :  { %5026 = vsyncpa [#allocation4 + $0x1], 1 }

</bundles_post_ra>
